<compile_context>
chip_gen: v6e
topology: v6e:2x2x1
jax: 0.10.0
libtpu: 0.0.40
codegen_flags: <defaults>
</compile_context>

<pallas_src>
import functools

import jax
import jax.numpy as jnp
from jax.experimental import pallas as pl
from jax.experimental.pallas import tpu as pltpu

INITRANGE = 0.04

# genotype: 6-tuple; genotype[4] = recurrent [(activation, pred_state)],
#           genotype[5] = concat indices (states averaged for the output).
GENOTYPE = (
    None, None, None, None,
    [('tanh', 0), ('relu', 1), ('sigmoid', 1), ('identity', 2)],
    [1, 2, 3, 4],
)


def _act(name):
    if name == 'tanh':
        return jnp.tanh
    if name == 'relu':
        return lambda x: jnp.maximum(x, 0.0)
    if name == 'sigmoid':
        return jax.nn.sigmoid
    if name == 'identity':
        return lambda x: x
    raise NotImplementedError(name)


def darts_cell_kernel(x_ref, h0_ref, w0x_ref, w0h_ref, ws_ref, out_ref, *,
                      recurrent, concat, nhid):
    """Single grid step == entire sequence.

    x_ref   : (T, B, ninp)        full input sequence (VMEM resident)
    h0_ref  : (B, nhid)           initial hidden state
    w0x_ref : (ninp, 2*nhid)      row-split of W0 (input part)
    w0h_ref : (nhid, 2*nhid)      row-split of W0 (hidden part)
    ws_ref  : (steps, nhid, 2*nhid) per-DAG-step gate matrices
    out_ref : (T, B, nhid)        all hidden states (one slab writeback)
    """
    T, B, ninp = x_ref.shape

    # Hoisted input projection: one big (T*B, ninp) @ (ninp, 2*nhid) GEMM,
    # done once for the whole sequence (good MXU fill, off the serial path).
    x_all = x_ref[...].reshape(T * B, ninp)
    xw_all = jnp.dot(x_all, w0x_ref[...], preferred_element_type=jnp.float32)
    xw_all = xw_all.reshape(T, B, 2 * nhid)

    inv_n = 1.0 / float(len(concat))
    h = h0_ref[...]                          # (B, nhid) carried value

    # Fully unrolled time loop (T static) -> LLO gets full visibility.
    for t in range(T):
        # _compute_init_state: xh @ W0 == x@W0[:ninp] + h@W0[ninp:]
        ch0 = xw_all[t] + jnp.dot(h, w0h_ref[...],
                                  preferred_element_type=jnp.float32)
        c0 = jax.nn.sigmoid(ch0[:, :nhid])
        hh0 = jnp.tanh(ch0[:, nhid:])
        states = [h + c0 * (hh0 - h)]

        # genotype DAG (statically unrolled); one fused (nhid, 2*nhid) matmul
        # per edge, c/h halves extracted with static lane slices.
        for i, (name, pred) in enumerate(recurrent):
            sp = states[pred]
            ch = jnp.dot(sp, ws_ref[i], preferred_element_type=jnp.float32)
            c = jax.nn.sigmoid(ch[:, :nhid])
            hc = _act(name)(ch[:, nhid:])
            states.append(sp + c * (hc - sp))

        # output = mean over concat states
        out = states[concat[0]]
        for idx in concat[1:]:
            out = out + states[idx]
        h = out * inv_n
        out_ref[t] = h


def darts_cell_forward(inputs, hidden, W0, Ws, nhid, genotype=GENOTYPE):
    """inputs: (T, B, ninp); hidden: (1, B, nhid); W0: (ninp+nhid, 2*nhid);
    Ws: (steps, nhid, 2*nhid).  Returns (hiddens (T,B,nhid), last (1,B,nhid))."""
    T, B, ninp = inputs.shape
    recurrent = tuple(genotype[4])
    concat = tuple(genotype[5])
    steps = len(recurrent)

    # Row-split W0 (input rows vs. hidden rows) -- exactly equivalent to
    # concat(x, h) @ W0.  No column splits: gate pairs use one wide matmul.
    W0x = W0[:ninp, :]
    W0h = W0[ninp:, :]
    h0 = hidden[0]

    kernel = functools.partial(
        darts_cell_kernel, recurrent=recurrent, concat=concat, nhid=nhid)

    flops = (2 * T * B * (ninp + nhid) * (2 * nhid)
             + 2 * T * steps * B * nhid * (2 * nhid))
    transcendentals = T * B * nhid * (2 + 2 * steps)
    bytes_accessed = 4 * (T * B * ninp + B * nhid
                          + (ninp + nhid) * 2 * nhid
                          + steps * nhid * 2 * nhid
                          + T * B * nhid)

    hiddens = pl.pallas_call(
        kernel,
        out_shape=jax.ShapeDtypeStruct((T, B, nhid), jnp.float32),
        grid_spec=pltpu.PrefetchScalarGridSpec(
            num_scalar_prefetch=0,
            grid=(1,),
            in_specs=[
                pl.BlockSpec((T, B, ninp), lambda i: (0, 0, 0)),
                pl.BlockSpec((B, nhid), lambda i: (0, 0)),
                pl.BlockSpec((ninp, 2 * nhid), lambda i: (0, 0)),
                pl.BlockSpec((nhid, 2 * nhid), lambda i: (0, 0)),
                pl.BlockSpec((steps, nhid, 2 * nhid), lambda i: (0, 0, 0)),
            ],
            out_specs=pl.BlockSpec((T, B, nhid), lambda i: (0, 0, 0)),
        ),
        compiler_params=pltpu.CompilerParams(
            dimension_semantics=("arbitrary",),
            vmem_limit_bytes=32 * 1024 * 1024,
        ),
        cost_estimate=pl.CostEstimate(
            flops=flops,
            transcendentals=transcendentals,
            bytes_accessed=bytes_accessed,
        ),
    )(inputs, h0, W0x, W0h, Ws)

    return hiddens, hiddens[-1][None]


def darts_cell_reference(inputs, hidden, W0, Ws, nhid, genotype=GENOTYPE):
    """Pure-JAX reference mirroring the PyTorch forward (eval mode)."""
    recurrent, concat = genotype[4], genotype[5]
    h = hidden[0]
    outs = []
    for t in range(inputs.shape[0]):
        x = inputs[t]
        xh = jnp.concatenate([x, h], axis=-1)
        ch = xh @ W0
        c0 = jax.nn.sigmoid(ch[:, :nhid])
        h0 = jnp.tanh(ch[:, nhid:])
        s0 = h + c0 * (h0 - h)
        states = [s0]
        for i, (name, pred) in enumerate(recurrent):
            sp = states[pred]
            chi = sp @ Ws[i]
            c = jax.nn.sigmoid(chi[:, :nhid])
            hh = _act(name)(chi[:, nhid:])
            states.append(sp + c * (hh - sp))
        out = jnp.mean(jnp.stack([states[i] for i in concat], -1), -1)
        outs.append(out)
        h = out
    hs = jnp.stack(outs)
    return hs, hs[-1][None]


if __name__ == "__main__":
    T, B, ninp, nhid = 8, 8, 32, 32
    steps = len(GENOTYPE[4])

    key = jax.random.PRNGKey(0)
    k_x, k_h, k_w0, k_ws = jax.random.split(key, 4)

    inputs = jax.random.normal(k_x, (T, B, ninp), dtype=jnp.float32)
    hidden = jax.random.normal(k_h, (1, B, nhid), dtype=jnp.float32)
    W0 = jax.random.uniform(k_w0, (ninp + nhid, 2 * nhid),
                            minval=-INITRANGE, maxval=INITRANGE,
                            dtype=jnp.float32)
    Ws = jax.random.uniform(k_ws, (steps, nhid, 2 * nhid),
                            minval=-INITRANGE, maxval=INITRANGE,
                            dtype=jnp.float32)

    hiddens, last = darts_cell_forward(inputs, hidden, W0, Ws, nhid)
    jax.block_until_ready((hiddens, last))

    ref_h, ref_last = darts_cell_reference(inputs, hidden, W0, Ws, nhid)
    assert hiddens.shape == (T, B, nhid) and last.shape == (1, B, nhid)
    assert jnp.allclose(hiddens, ref_h, atol=1e-4, rtol=1e-4)
    assert jnp.allclose(last, ref_last, atol=1e-4, rtol=1e-4)

    print("KERNEL_OK")
</pallas_src>

<mosaic_0001>
module attributes {stable_mosaic.version = 11 : i64} {
  func.func @darts_cell_kernel(%arg0: i32, %arg1: memref<8x8x32xf32, #tpu.memory_space<vmem>>, %arg2: memref<8x32xf32, #tpu.memory_space<vmem>>, %arg3: memref<32x64xf32, #tpu.memory_space<vmem>>, %arg4: memref<32x64xf32, #tpu.memory_space<vmem>>, %arg5: memref<4x32x64xf32, #tpu.memory_space<vmem>>, %arg6: memref<8x8x32xf32, #tpu.memory_space<vmem>>) attributes {dimension_semantics = [#tpu.dimension_semantics<arbitrary>], iteration_bounds = array<i64: 1>, scalar_prefetch = 0 : i64, scratch_operands = 0 : i64, tpu.core_type = #tpu.core_type<tc>, window_params = [{pipeline_mode = #tpu.pipeline_mode<synchronous>, transform_indices = @transform_0, window_bounds = array<i64: 8, 8, 32>}, {pipeline_mode = #tpu.pipeline_mode<synchronous>, transform_indices = @transform_1, window_bounds = array<i64: 8, 32>}, {pipeline_mode = #tpu.pipeline_mode<synchronous>, transform_indices = @transform_2, window_bounds = array<i64: 32, 64>}, {pipeline_mode = #tpu.pipeline_mode<synchronous>, transform_indices = @transform_3, window_bounds = array<i64: 32, 64>}, {pipeline_mode = #tpu.pipeline_mode<synchronous>, transform_indices = @transform_4, window_bounds = array<i64: 4, 32, 64>}, {pipeline_mode = #tpu.pipeline_mode<synchronous>, transform_indices = @transform_5, window_bounds = array<i64: 8, 8, 32>}]} {
    %c0 = arith.constant 0 : index
    %c0_0 = arith.constant 0 : index
    %c0_1 = arith.constant 0 : index
    %0 = vector.load %arg1[%c0, %c0_0, %c0_1] : memref<8x8x32xf32, #tpu.memory_space<vmem>>, vector<8x8x32xf32>
    %1 = vector.shape_cast %0 : vector<8x8x32xf32> to vector<64x32xf32>
    %c0_2 = arith.constant 0 : index
    %c0_3 = arith.constant 0 : index
    %2 = vector.load %arg3[%c0_2, %c0_3] : memref<32x64xf32, #tpu.memory_space<vmem>>, vector<32x64xf32>
    %cst = arith.constant dense<0.000000e+00> : vector<64x64xf32>
    %3 = tpu.matmul %1, %2, %cst {dimension_numbers = #tpu.dot_dimension_numbers<[1], [0], [0], [1], [0, 0, 1, 1], [], []>} : vector<64x32xf32>, vector<32x64xf32>, vector<64x64xf32> -> vector<64x64xf32>
    %4 = vector.shape_cast %3 : vector<64x64xf32> to vector<8x8x64xf32>
    %c0_4 = arith.constant 0 : index
    %c0_5 = arith.constant 0 : index
    %5 = vector.load %arg2[%c0_4, %c0_5] : memref<8x32xf32, #tpu.memory_space<vmem>>, vector<8x32xf32>
    %6 = vector.extract_strided_slice %4 {offsets = [0, 0, 0], sizes = [1, 8, 64], strides = [1, 1, 1]} : vector<8x8x64xf32> to vector<1x8x64xf32>
    %7 = vector.shape_cast %6 : vector<1x8x64xf32> to vector<8x64xf32>
    %c0_6 = arith.constant 0 : index
    %c0_7 = arith.constant 0 : index
    %8 = vector.load %arg4[%c0_6, %c0_7] : memref<32x64xf32, #tpu.memory_space<vmem>>, vector<32x64xf32>
    %cst_8 = arith.constant dense<0.000000e+00> : vector<8x64xf32>
    %9 = tpu.matmul %5, %8, %cst_8 {dimension_numbers = #tpu.dot_dimension_numbers<[1], [0], [0], [1], [0, 0, 1, 1], [], []>} : vector<8x32xf32>, vector<32x64xf32>, vector<8x64xf32> -> vector<8x64xf32>
    %10 = arith.addf %7, %9 : vector<8x64xf32>
    %11 = vector.extract_strided_slice %10 {offsets = [0, 0], sizes = [8, 32], strides = [1, 1]} : vector<8x64xf32> to vector<8x32xf32>
    %12 = arith.negf %11 : vector<8x32xf32>
    %13 = math.exp %12 : vector<8x32xf32>
    %cst_9 = arith.constant 1.000000e+00 : f32
    %14 = vector.broadcast %cst_9 : f32 to vector<8x32xf32>
    %15 = arith.addf %14, %13 : vector<8x32xf32>
    %16 = arith.divf %14, %15 : vector<8x32xf32>
    %17 = vector.extract_strided_slice %10 {offsets = [0, 32], sizes = [8, 32], strides = [1, 1]} : vector<8x64xf32> to vector<8x32xf32>
    %18 = math.tanh %17 : vector<8x32xf32>
    %19 = arith.subf %18, %5 : vector<8x32xf32>
    %20 = arith.mulf %16, %19 : vector<8x32xf32>
    %21 = arith.addf %5, %20 : vector<8x32xf32>
    %c0_10 = arith.constant 0 : index
    %c0_11 = arith.constant 0 : index
    %c0_12 = arith.constant 0 : index
    %22 = vector.load %arg5[%c0_10, %c0_11, %c0_12] : memref<4x32x64xf32, #tpu.memory_space<vmem>>, vector<1x32x64xf32>
    %23 = vector.shape_cast %22 : vector<1x32x64xf32> to vector<32x64xf32>
    %cst_13 = arith.constant dense<0.000000e+00> : vector<8x64xf32>
    %24 = tpu.matmul %21, %23, %cst_13 {dimension_numbers = #tpu.dot_dimension_numbers<[1], [0], [0], [1], [0, 0, 1, 1], [], []>} : vector<8x32xf32>, vector<32x64xf32>, vector<8x64xf32> -> vector<8x64xf32>
    %25 = vector.extract_strided_slice %24 {offsets = [0, 0], sizes = [8, 32], strides = [1, 1]} : vector<8x64xf32> to vector<8x32xf32>
    %26 = arith.negf %25 : vector<8x32xf32>
    %27 = math.exp %26 : vector<8x32xf32>
    %cst_14 = arith.constant 1.000000e+00 : f32
    %28 = vector.broadcast %cst_14 : f32 to vector<8x32xf32>
    %29 = arith.addf %28, %27 : vector<8x32xf32>
    %30 = arith.divf %28, %29 : vector<8x32xf32>
    %31 = vector.extract_strided_slice %24 {offsets = [0, 32], sizes = [8, 32], strides = [1, 1]} : vector<8x64xf32> to vector<8x32xf32>
    %32 = math.tanh %31 : vector<8x32xf32>
    %33 = arith.subf %32, %21 : vector<8x32xf32>
    %34 = arith.mulf %30, %33 : vector<8x32xf32>
    %35 = arith.addf %21, %34 : vector<8x32xf32>
    %c1 = arith.constant 1 : index
    %c0_15 = arith.constant 0 : index
    %c0_16 = arith.constant 0 : index
    %36 = vector.load %arg5[%c1, %c0_15, %c0_16] : memref<4x32x64xf32, #tpu.memory_space<vmem>>, vector<1x32x64xf32>
    %37 = vector.shape_cast %36 : vector<1x32x64xf32> to vector<32x64xf32>
    %cst_17 = arith.constant dense<0.000000e+00> : vector<8x64xf32>
    %38 = tpu.matmul %35, %37, %cst_17 {dimension_numbers = #tpu.dot_dimension_numbers<[1], [0], [0], [1], [0, 0, 1, 1], [], []>} : vector<8x32xf32>, vector<32x64xf32>, vector<8x64xf32> -> vector<8x64xf32>
    %39 = vector.extract_strided_slice %38 {offsets = [0, 0], sizes = [8, 32], strides = [1, 1]} : vector<8x64xf32> to vector<8x32xf32>
    %40 = arith.negf %39 : vector<8x32xf32>
    %41 = math.exp %40 : vector<8x32xf32>
    %cst_18 = arith.constant 1.000000e+00 : f32
    %42 = vector.broadcast %cst_18 : f32 to vector<8x32xf32>
    %43 = arith.addf %42, %41 : vector<8x32xf32>
    %44 = arith.divf %42, %43 : vector<8x32xf32>
    %45 = vector.extract_strided_slice %38 {offsets = [0, 32], sizes = [8, 32], strides = [1, 1]} : vector<8x64xf32> to vector<8x32xf32>
    %cst_19 = arith.constant 0.000000e+00 : f32
    %46 = vector.broadcast %cst_19 : f32 to vector<8x32xf32>
    %47 = arith.maximumf %45, %46 : vector<8x32xf32>
    %48 = arith.subf %47, %35 : vector<8x32xf32>
    %49 = arith.mulf %44, %48 : vector<8x32xf32>
    %50 = arith.addf %35, %49 : vector<8x32xf32>
    %c2 = arith.constant 2 : index
    %c0_20 = arith.constant 0 : index
    %c0_21 = arith.constant 0 : index
    %51 = vector.load %arg5[%c2, %c0_20, %c0_21] : memref<4x32x64xf32, #tpu.memory_space<vmem>>, vector<1x32x64xf32>
    %52 = vector.shape_cast %51 : vector<1x32x64xf32> to vector<32x64xf32>
    %cst_22 = arith.constant dense<0.000000e+00> : vector<8x64xf32>
    %53 = tpu.matmul %35, %52, %cst_22 {dimension_numbers = #tpu.dot_dimension_numbers<[1], [0], [0], [1], [0, 0, 1, 1], [], []>} : vector<8x32xf32>, vector<32x64xf32>, vector<8x64xf32> -> vector<8x64xf32>
    %54 = vector.extract_strided_slice %53 {offsets = [0, 0], sizes = [8, 32], strides = [1, 1]} : vector<8x64xf32> to vector<8x32xf32>
    %55 = arith.negf %54 : vector<8x32xf32>
    %56 = math.exp %55 : vector<8x32xf32>
    %cst_23 = arith.constant 1.000000e+00 : f32
    %57 = vector.broadcast %cst_23 : f32 to vector<8x32xf32>
    %58 = arith.addf %57, %56 : vector<8x32xf32>
    %59 = arith.divf %57, %58 : vector<8x32xf32>
    %60 = vector.extract_strided_slice %53 {offsets = [0, 32], sizes = [8, 32], strides = [1, 1]} : vector<8x64xf32> to vector<8x32xf32>
    %61 = arith.negf %60 : vector<8x32xf32>
    %62 = math.exp %61 : vector<8x32xf32>
    %cst_24 = arith.constant 1.000000e+00 : f32
    %63 = vector.broadcast %cst_24 : f32 to vector<8x32xf32>
    %64 = arith.addf %63, %62 : vector<8x32xf32>
    %65 = arith.divf %63, %64 : vector<8x32xf32>
    %66 = arith.subf %65, %35 : vector<8x32xf32>
    %67 = arith.mulf %59, %66 : vector<8x32xf32>
    %68 = arith.addf %35, %67 : vector<8x32xf32>
    %c3 = arith.constant 3 : index
    %c0_25 = arith.constant 0 : index
    %c0_26 = arith.constant 0 : index
    %69 = vector.load %arg5[%c3, %c0_25, %c0_26] : memref<4x32x64xf32, #tpu.memory_space<vmem>>, vector<1x32x64xf32>
    %70 = vector.shape_cast %69 : vector<1x32x64xf32> to vector<32x64xf32>
    %cst_27 = arith.constant dense<0.000000e+00> : vector<8x64xf32>
    %71 = tpu.matmul %50, %70, %cst_27 {dimension_numbers = #tpu.dot_dimension_numbers<[1], [0], [0], [1], [0, 0, 1, 1], [], []>} : vector<8x32xf32>, vector<32x64xf32>, vector<8x64xf32> -> vector<8x64xf32>
    %72 = vector.extract_strided_slice %71 {offsets = [0, 0], sizes = [8, 32], strides = [1, 1]} : vector<8x64xf32> to vector<8x32xf32>
    %73 = arith.negf %72 : vector<8x32xf32>
    %74 = math.exp %73 : vector<8x32xf32>
    %cst_28 = arith.constant 1.000000e+00 : f32
    %75 = vector.broadcast %cst_28 : f32 to vector<8x32xf32>
    %76 = arith.addf %75, %74 : vector<8x32xf32>
    %77 = arith.divf %75, %76 : vector<8x32xf32>
    %78 = vector.extract_strided_slice %71 {offsets = [0, 32], sizes = [8, 32], strides = [1, 1]} : vector<8x64xf32> to vector<8x32xf32>
    %79 = arith.subf %78, %50 : vector<8x32xf32>
    %80 = arith.mulf %77, %79 : vector<8x32xf32>
    %81 = arith.addf %50, %80 : vector<8x32xf32>
    %82 = arith.addf %35, %50 : vector<8x32xf32>
    %83 = arith.addf %82, %68 : vector<8x32xf32>
    %84 = arith.addf %83, %81 : vector<8x32xf32>
    %cst_29 = arith.constant 2.500000e-01 : f32
    %85 = vector.broadcast %cst_29 : f32 to vector<8x32xf32>
    %86 = arith.mulf %84, %85 : vector<8x32xf32>
    %c0_30 = arith.constant 0 : index
    %c0_31 = arith.constant 0 : index
    %c0_32 = arith.constant 0 : index
    %87 = vector.load %arg6[%c0_30, %c0_31, %c0_32] : memref<8x8x32xf32, #tpu.memory_space<vmem>>, vector<1x8x32xf32>
    %88 = vector.shape_cast %87 : vector<1x8x32xf32> to vector<8x32xf32>
    %89 = vector.shape_cast %86 : vector<8x32xf32> to vector<1x8x32xf32>
    tpu.vector_store %arg6[%c0_30, %c0_31, %c0_32], %89 {strides = array<i32>} : memref<8x8x32xf32, #tpu.memory_space<vmem>>, vector<1x8x32xf32>,
    %90 = vector.extract_strided_slice %4 {offsets = [1, 0, 0], sizes = [1, 8, 64], strides = [1, 1, 1]} : vector<8x8x64xf32> to vector<1x8x64xf32>
    %91 = vector.shape_cast %90 : vector<1x8x64xf32> to vector<8x64xf32>
    %c0_33 = arith.constant 0 : index
    %c0_34 = arith.constant 0 : index
    %92 = vector.load %arg4[%c0_33, %c0_34] : memref<32x64xf32, #tpu.memory_space<vmem>>, vector<32x64xf32>
    %cst_35 = arith.constant dense<0.000000e+00> : vector<8x64xf32>
    %93 = tpu.matmul %86, %92, %cst_35 {dimension_numbers = #tpu.dot_dimension_numbers<[1], [0], [0], [1], [0, 0, 1, 1], [], []>} : vector<8x32xf32>, vector<32x64xf32>, vector<8x64xf32> -> vector<8x64xf32>
    %94 = arith.addf %91, %93 : vector<8x64xf32>
    %95 = vector.extract_strided_slice %94 {offsets = [0, 0], sizes = [8, 32], strides = [1, 1]} : vector<8x64xf32> to vector<8x32xf32>
    %96 = arith.negf %95 : vector<8x32xf32>
    %97 = math.exp %96 : vector<8x32xf32>
    %cst_36 = arith.constant 1.000000e+00 : f32
    %98 = vector.broadcast %cst_36 : f32 to vector<8x32xf32>
    %99 = arith.addf %98, %97 : vector<8x32xf32>
    %100 = arith.divf %98, %99 : vector<8x32xf32>
    %101 = vector.extract_strided_slice %94 {offsets = [0, 32], sizes = [8, 32], strides = [1, 1]} : vector<8x64xf32> to vector<8x32xf32>
    %102 = math.tanh %101 : vector<8x32xf32>
    %103 = arith.subf %102, %86 : vector<8x32xf32>
    %104 = arith.mulf %100, %103 : vector<8x32xf32>
    %105 = arith.addf %86, %104 : vector<8x32xf32>
    %c0_37 = arith.constant 0 : index
    %c0_38 = arith.constant 0 : index
    %c0_39 = arith.constant 0 : index
    %106 = vector.load %arg5[%c0_37, %c0_38, %c0_39] : memref<4x32x64xf32, #tpu.memory_space<vmem>>, vector<1x32x64xf32>
    %107 = vector.shape_cast %106 : vector<1x32x64xf32> to vector<32x64xf32>
    %cst_40 = arith.constant dense<0.000000e+00> : vector<8x64xf32>
    %108 = tpu.matmul %105, %107, %cst_40 {dimension_numbers = #tpu.dot_dimension_numbers<[1], [0], [0], [1], [0, 0, 1, 1], [], []>} : vector<8x32xf32>, vector<32x64xf32>, vector<8x64xf32> -> vector<8x64xf32>
    %109 = vector.extract_strided_slice %108 {offsets = [0, 0], sizes = [8, 32], strides = [1, 1]} : vector<8x64xf32> to vector<8x32xf32>
    %110 = arith.negf %109 : vector<8x32xf32>
    %111 = math.exp %110 : vector<8x32xf32>
    %cst_41 = arith.constant 1.000000e+00 : f32
    %112 = vector.broadcast %cst_41 : f32 to vector<8x32xf32>
    %113 = arith.addf %112, %111 : vector<8x32xf32>
    %114 = arith.divf %112, %113 : vector<8x32xf32>
    %115 = vector.extract_strided_slice %108 {offsets = [0, 32], sizes = [8, 32], strides = [1, 1]} : vector<8x64xf32> to vector<8x32xf32>
    %116 = math.tanh %115 : vector<8x32xf32>
    %117 = arith.subf %116, %105 : vector<8x32xf32>
    %118 = arith.mulf %114, %117 : vector<8x32xf32>
    %119 = arith.addf %105, %118 : vector<8x32xf32>
    %c1_42 = arith.constant 1 : index
    %c0_43 = arith.constant 0 : index
    %c0_44 = arith.constant 0 : index
    %120 = vector.load %arg5[%c1_42, %c0_43, %c0_44] : memref<4x32x64xf32, #tpu.memory_space<vmem>>, vector<1x32x64xf32>
    %121 = vector.shape_cast %120 : vector<1x32x64xf32> to vector<32x64xf32>
    %cst_45 = arith.constant dense<0.000000e+00> : vector<8x64xf32>
    %122 = tpu.matmul %119, %121, %cst_45 {dimension_numbers = #tpu.dot_dimension_numbers<[1], [0], [0], [1], [0, 0, 1, 1], [], []>} : vector<8x32xf32>, vector<32x64xf32>, vector<8x64xf32> -> vector<8x64xf32>
    %123 = vector.extract_strided_slice %122 {offsets = [0, 0], sizes = [8, 32], strides = [1, 1]} : vector<8x64xf32> to vector<8x32xf32>
    %124 = arith.negf %123 : vector<8x32xf32>
    %125 = math.exp %124 : vector<8x32xf32>
    %cst_46 = arith.constant 1.000000e+00 : f32
    %126 = vector.broadcast %cst_46 : f32 to vector<8x32xf32>
    %127 = arith.addf %126, %125 : vector<8x32xf32>
    %128 = arith.divf %126, %127 : vector<8x32xf32>
    %129 = vector.extract_strided_slice %122 {offsets = [0, 32], sizes = [8, 32], strides = [1, 1]} : vector<8x64xf32> to vector<8x32xf32>
    %cst_47 = arith.constant 0.000000e+00 : f32
    %130 = vector.broadcast %cst_47 : f32 to vector<8x32xf32>
    %131 = arith.maximumf %129, %130 : vector<8x32xf32>
    %132 = arith.subf %131, %119 : vector<8x32xf32>
    %133 = arith.mulf %128, %132 : vector<8x32xf32>
    %134 = arith.addf %119, %133 : vector<8x32xf32>
    %c2_48 = arith.constant 2 : index
    %c0_49 = arith.constant 0 : index
    %c0_50 = arith.constant 0 : index
    %135 = vector.load %arg5[%c2_48, %c0_49, %c0_50] : memref<4x32x64xf32, #tpu.memory_space<vmem>>, vector<1x32x64xf32>
    %136 = vector.shape_cast %135 : vector<1x32x64xf32> to vector<32x64xf32>
    %cst_51 = arith.constant dense<0.000000e+00> : vector<8x64xf32>
    %137 = tpu.matmul %119, %136, %cst_51 {dimension_numbers = #tpu.dot_dimension_numbers<[1], [0], [0], [1], [0, 0, 1, 1], [], []>} : vector<8x32xf32>, vector<32x64xf32>, vector<8x64xf32> -> vector<8x64xf32>
    %138 = vector.extract_strided_slice %137 {offsets = [0, 0], sizes = [8, 32], strides = [1, 1]} : vector<8x64xf32> to vector<8x32xf32>
    %139 = arith.negf %138 : vector<8x32xf32>
    %140 = math.exp %139 : vector<8x32xf32>
    %cst_52 = arith.constant 1.000000e+00 : f32
    %141 = vector.broadcast %cst_52 : f32 to vector<8x32xf32>
    %142 = arith.addf %141, %140 : vector<8x32xf32>
    %143 = arith.divf %141, %142 : vector<8x32xf32>
    %144 = vector.extract_strided_slice %137 {offsets = [0, 32], sizes = [8, 32], strides = [1, 1]} : vector<8x64xf32> to vector<8x32xf32>
    %145 = arith.negf %144 : vector<8x32xf32>
    %146 = math.exp %145 : vector<8x32xf32>
    %cst_53 = arith.constant 1.000000e+00 : f32
    %147 = vector.broadcast %cst_53 : f32 to vector<8x32xf32>
    %148 = arith.addf %147, %146 : vector<8x32xf32>
    %149 = arith.divf %147, %148 : vector<8x32xf32>
    %150 = arith.subf %149, %119 : vector<8x32xf32>
    %151 = arith.mulf %143, %150 : vector<8x32xf32>
    %152 = arith.addf %119, %151 : vector<8x32xf32>
    %c3_54 = arith.constant 3 : index
    %c0_55 = arith.constant 0 : index
    %c0_56 = arith.constant 0 : index
    %153 = vector.load %arg5[%c3_54, %c0_55, %c0_56] : memref<4x32x64xf32, #tpu.memory_space<vmem>>, vector<1x32x64xf32>
    %154 = vector.shape_cast %153 : vector<1x32x64xf32> to vector<32x64xf32>
    %cst_57 = arith.constant dense<0.000000e+00> : vector<8x64xf32>
    %155 = tpu.matmul %134, %154, %cst_57 {dimension_numbers = #tpu.dot_dimension_numbers<[1], [0], [0], [1], [0, 0, 1, 1], [], []>} : vector<8x32xf32>, vector<32x64xf32>, vector<8x64xf32> -> vector<8x64xf32>
    %156 = vector.extract_strided_slice %155 {offsets = [0, 0], sizes = [8, 32], strides = [1, 1]} : vector<8x64xf32> to vector<8x32xf32>
    %157 = arith.negf %156 : vector<8x32xf32>
    %158 = math.exp %157 : vector<8x32xf32>
    %cst_58 = arith.constant 1.000000e+00 : f32
    %159 = vector.broadcast %cst_58 : f32 to vector<8x32xf32>
    %160 = arith.addf %159, %158 : vector<8x32xf32>
    %161 = arith.divf %159, %160 : vector<8x32xf32>
    %162 = vector.extract_strided_slice %155 {offsets = [0, 32], sizes = [8, 32], strides = [1, 1]} : vector<8x64xf32> to vector<8x32xf32>
    %163 = arith.subf %162, %134 : vector<8x32xf32>
    %164 = arith.mulf %161, %163 : vector<8x32xf32>
    %165 = arith.addf %134, %164 : vector<8x32xf32>
    %166 = arith.addf %119, %134 : vector<8x32xf32>
    %167 = arith.addf %166, %152 : vector<8x32xf32>
    %168 = arith.addf %167, %165 : vector<8x32xf32>
    %cst_59 = arith.constant 2.500000e-01 : f32
    %169 = vector.broadcast %cst_59 : f32 to vector<8x32xf32>
    %170 = arith.mulf %168, %169 : vector<8x32xf32>
    %c1_60 = arith.constant 1 : index
    %c0_61 = arith.constant 0 : index
    %c0_62 = arith.constant 0 : index
    %171 = vector.load %arg6[%c1_60, %c0_61, %c0_62] : memref<8x8x32xf32, #tpu.memory_space<vmem>>, vector<1x8x32xf32>
    %172 = vector.shape_cast %171 : vector<1x8x32xf32> to vector<8x32xf32>
    %173 = vector.shape_cast %170 : vector<8x32xf32> to vector<1x8x32xf32>
    tpu.vector_store %arg6[%c1_60, %c0_61, %c0_62], %173 {strides = array<i32>} : memref<8x8x32xf32, #tpu.memory_space<vmem>>, vector<1x8x32xf32>,
    %174 = vector.extract_strided_slice %4 {offsets = [2, 0, 0], sizes = [1, 8, 64], strides = [1, 1, 1]} : vector<8x8x64xf32> to vector<1x8x64xf32>
    %175 = vector.shape_cast %174 : vector<1x8x64xf32> to vector<8x64xf32>
    %c0_63 = arith.constant 0 : index
    %c0_64 = arith.constant 0 : index
    %176 = vector.load %arg4[%c0_63, %c0_64] : memref<32x64xf32, #tpu.memory_space<vmem>>, vector<32x64xf32>
    %cst_65 = arith.constant dense<0.000000e+00> : vector<8x64xf32>
    %177 = tpu.matmul %170, %176, %cst_65 {dimension_numbers = #tpu.dot_dimension_numbers<[1], [0], [0], [1], [0, 0, 1, 1], [], []>} : vector<8x32xf32>, vector<32x64xf32>, vector<8x64xf32> -> vector<8x64xf32>
    %178 = arith.addf %175, %177 : vector<8x64xf32>
    %179 = vector.extract_strided_slice %178 {offsets = [0, 0], sizes = [8, 32], strides = [1, 1]} : vector<8x64xf32> to vector<8x32xf32>
    %180 = arith.negf %179 : vector<8x32xf32>
    %181 = math.exp %180 : vector<8x32xf32>
    %cst_66 = arith.constant 1.000000e+00 : f32
    %182 = vector.broadcast %cst_66 : f32 to vector<8x32xf32>
    %183 = arith.addf %182, %181 : vector<8x32xf32>
    %184 = arith.divf %182, %183 : vector<8x32xf32>
    %185 = vector.extract_strided_slice %178 {offsets = [0, 32], sizes = [8, 32], strides = [1, 1]} : vector<8x64xf32> to vector<8x32xf32>
    %186 = math.tanh %185 : vector<8x32xf32>
    %187 = arith.subf %186, %170 : vector<8x32xf32>
    %188 = arith.mulf %184, %187 : vector<8x32xf32>
    %189 = arith.addf %170, %188 : vector<8x32xf32>
    %c0_67 = arith.constant 0 : index
    %c0_68 = arith.constant 0 : index
    %c0_69 = arith.constant 0 : index
    %190 = vector.load %arg5[%c0_67, %c0_68, %c0_69] : memref<4x32x64xf32, #tpu.memory_space<vmem>>, vector<1x32x64xf32>
    %191 = vector.shape_cast %190 : vector<1x32x64xf32> to vector<32x64xf32>
    %cst_70 = arith.constant dense<0.000000e+00> : vector<8x64xf32>
    %192 = tpu.matmul %189, %191, %cst_70 {dimension_numbers = #tpu.dot_dimension_numbers<[1], [0], [0], [1], [0, 0, 1, 1], [], []>} : vector<8x32xf32>, vector<32x64xf32>, vector<8x64xf32> -> vector<8x64xf32>
    %193 = vector.extract_strided_slice %192 {offsets = [0, 0], sizes = [8, 32], strides = [1, 1]} : vector<8x64xf32> to vector<8x32xf32>
    %194 = arith.negf %193 : vector<8x32xf32>
    %195 = math.exp %194 : vector<8x32xf32>
    %cst_71 = arith.constant 1.000000e+00 : f32
    %196 = vector.broadcast %cst_71 : f32 to vector<8x32xf32>
    %197 = arith.addf %196, %195 : vector<8x32xf32>
    %198 = arith.divf %196, %197 : vector<8x32xf32>
    %199 = vector.extract_strided_slice %192 {offsets = [0, 32], sizes = [8, 32], strides = [1, 1]} : vector<8x64xf32> to vector<8x32xf32>
    %200 = math.tanh %199 : vector<8x32xf32>
    %201 = arith.subf %200, %189 : vector<8x32xf32>
    %202 = arith.mulf %198, %201 : vector<8x32xf32>
    %203 = arith.addf %189, %202 : vector<8x32xf32>
    %c1_72 = arith.constant 1 : index
    %c0_73 = arith.constant 0 : index
    %c0_74 = arith.constant 0 : index
    %204 = vector.load %arg5[%c1_72, %c0_73, %c0_74] : memref<4x32x64xf32, #tpu.memory_space<vmem>>, vector<1x32x64xf32>
    %205 = vector.shape_cast %204 : vector<1x32x64xf32> to vector<32x64xf32>
    %cst_75 = arith.constant dense<0.000000e+00> : vector<8x64xf32>
    %206 = tpu.matmul %203, %205, %cst_75 {dimension_numbers = #tpu.dot_dimension_numbers<[1], [0], [0], [1], [0, 0, 1, 1], [], []>} : vector<8x32xf32>, vector<32x64xf32>, vector<8x64xf32> -> vector<8x64xf32>
    %207 = vector.extract_strided_slice %206 {offsets = [0, 0], sizes = [8, 32], strides = [1, 1]} : vector<8x64xf32> to vector<8x32xf32>
    %208 = arith.negf %207 : vector<8x32xf32>
    %209 = math.exp %208 : vector<8x32xf32>
    %cst_76 = arith.constant 1.000000e+00 : f32
    %210 = vector.broadcast %cst_76 : f32 to vector<8x32xf32>
    %211 = arith.addf %210, %209 : vector<8x32xf32>
    %212 = arith.divf %210, %211 : vector<8x32xf32>
    %213 = vector.extract_strided_slice %206 {offsets = [0, 32], sizes = [8, 32], strides = [1, 1]} : vector<8x64xf32> to vector<8x32xf32>
    %cst_77 = arith.constant 0.000000e+00 : f32
    %214 = vector.broadcast %cst_77 : f32 to vector<8x32xf32>
    %215 = arith.maximumf %213, %214 : vector<8x32xf32>
    %216 = arith.subf %215, %203 : vector<8x32xf32>
    %217 = arith.mulf %212, %216 : vector<8x32xf32>
    %218 = arith.addf %203, %217 : vector<8x32xf32>
    %c2_78 = arith.constant 2 : index
    %c0_79 = arith.constant 0 : index
    %c0_80 = arith.constant 0 : index
    %219 = vector.load %arg5[%c2_78, %c0_79, %c0_80] : memref<4x32x64xf32, #tpu.memory_space<vmem>>, vector<1x32x64xf32>
    %220 = vector.shape_cast %219 : vector<1x32x64xf32> to vector<32x64xf32>
    %cst_81 = arith.constant dense<0.000000e+00> : vector<8x64xf32>
    %221 = tpu.matmul %203, %220, %cst_81 {dimension_numbers = #tpu.dot_dimension_numbers<[1], [0], [0], [1], [0, 0, 1, 1], [], []>} : vector<8x32xf32>, vector<32x64xf32>, vector<8x64xf32> -> vector<8x64xf32>
    %222 = vector.extract_strided_slice %221 {offsets = [0, 0], sizes = [8, 32], strides = [1, 1]} : vector<8x64xf32> to vector<8x32xf32>
    %223 = arith.negf %222 : vector<8x32xf32>
    %224 = math.exp %223 : vector<8x32xf32>
    %cst_82 = arith.constant 1.000000e+00 : f32
    %225 = vector.broadcast %cst_82 : f32 to vector<8x32xf32>
    %226 = arith.addf %225, %224 : vector<8x32xf32>
    %227 = arith.divf %225, %226 : vector<8x32xf32>
    %228 = vector.extract_strided_slice %221 {offsets = [0, 32], sizes = [8, 32], strides = [1, 1]} : vector<8x64xf32> to vector<8x32xf32>
    %229 = arith.negf %228 : vector<8x32xf32>
    %230 = math.exp %229 : vector<8x32xf32>
    %cst_83 = arith.constant 1.000000e+00 : f32
    %231 = vector.broadcast %cst_83 : f32 to vector<8x32xf32>
    %232 = arith.addf %231, %230 : vector<8x32xf32>
    %233 = arith.divf %231, %232 : vector<8x32xf32>
    %234 = arith.subf %233, %203 : vector<8x32xf32>
    %235 = arith.mulf %227, %234 : vector<8x32xf32>
    %236 = arith.addf %203, %235 : vector<8x32xf32>
    %c3_84 = arith.constant 3 : index
    %c0_85 = arith.constant 0 : index
    %c0_86 = arith.constant 0 : index
    %237 = vector.load %arg5[%c3_84, %c0_85, %c0_86] : memref<4x32x64xf32, #tpu.memory_space<vmem>>, vector<1x32x64xf32>
    %238 = vector.shape_cast %237 : vector<1x32x64xf32> to vector<32x64xf32>
    %cst_87 = arith.constant dense<0.000000e+00> : vector<8x64xf32>
    %239 = tpu.matmul %218, %238, %cst_87 {dimension_numbers = #tpu.dot_dimension_numbers<[1], [0], [0], [1], [0, 0, 1, 1], [], []>} : vector<8x32xf32>, vector<32x64xf32>, vector<8x64xf32> -> vector<8x64xf32>
    %240 = vector.extract_strided_slice %239 {offsets = [0, 0], sizes = [8, 32], strides = [1, 1]} : vector<8x64xf32> to vector<8x32xf32>
    %241 = arith.negf %240 : vector<8x32xf32>
    %242 = math.exp %241 : vector<8x32xf32>
    %cst_88 = arith.constant 1.000000e+00 : f32
    %243 = vector.broadcast %cst_88 : f32 to vector<8x32xf32>
    %244 = arith.addf %243, %242 : vector<8x32xf32>
    %245 = arith.divf %243, %244 : vector<8x32xf32>
    %246 = vector.extract_strided_slice %239 {offsets = [0, 32], sizes = [8, 32], strides = [1, 1]} : vector<8x64xf32> to vector<8x32xf32>
    %247 = arith.subf %246, %218 : vector<8x32xf32>
    %248 = arith.mulf %245, %247 : vector<8x32xf32>
    %249 = arith.addf %218, %248 : vector<8x32xf32>
    %250 = arith.addf %203, %218 : vector<8x32xf32>
    %251 = arith.addf %250, %236 : vector<8x32xf32>
    %252 = arith.addf %251, %249 : vector<8x32xf32>
    %cst_89 = arith.constant 2.500000e-01 : f32
    %253 = vector.broadcast %cst_89 : f32 to vector<8x32xf32>
    %254 = arith.mulf %252, %253 : vector<8x32xf32>
    %c2_90 = arith.constant 2 : index
    %c0_91 = arith.constant 0 : index
    %c0_92 = arith.constant 0 : index
    %255 = vector.load %arg6[%c2_90, %c0_91, %c0_92] : memref<8x8x32xf32, #tpu.memory_space<vmem>>, vector<1x8x32xf32>
    %256 = vector.shape_cast %255 : vector<1x8x32xf32> to vector<8x32xf32>
    %257 = vector.shape_cast %254 : vector<8x32xf32> to vector<1x8x32xf32>
    tpu.vector_store %arg6[%c2_90, %c0_91, %c0_92], %257 {strides = array<i32>} : memref<8x8x32xf32, #tpu.memory_space<vmem>>, vector<1x8x32xf32>,
    %258 = vector.extract_strided_slice %4 {offsets = [3, 0, 0], sizes = [1, 8, 64], strides = [1, 1, 1]} : vector<8x8x64xf32> to vector<1x8x64xf32>
    %259 = vector.shape_cast %258 : vector<1x8x64xf32> to vector<8x64xf32>
    %c0_93 = arith.constant 0 : index
    %c0_94 = arith.constant 0 : index
    %260 = vector.load %arg4[%c0_93, %c0_94] : memref<32x64xf32, #tpu.memory_space<vmem>>, vector<32x64xf32>
    %cst_95 = arith.constant dense<0.000000e+00> : vector<8x64xf32>
    %261 = tpu.matmul %254, %260, %cst_95 {dimension_numbers = #tpu.dot_dimension_numbers<[1], [0], [0], [1], [0, 0, 1, 1], [], []>} : vector<8x32xf32>, vector<32x64xf32>, vector<8x64xf32> -> vector<8x64xf32>
    %262 = arith.addf %259, %261 : vector<8x64xf32>
    %263 = vector.extract_strided_slice %262 {offsets = [0, 0], sizes = [8, 32], strides = [1, 1]} : vector<8x64xf32> to vector<8x32xf32>
    %264 = arith.negf %263 : vector<8x32xf32>
    %265 = math.exp %264 : vector<8x32xf32>
    %cst_96 = arith.constant 1.000000e+00 : f32
    %266 = vector.broadcast %cst_96 : f32 to vector<8x32xf32>
    %267 = arith.addf %266, %265 : vector<8x32xf32>
    %268 = arith.divf %266, %267 : vector<8x32xf32>
    %269 = vector.extract_strided_slice %262 {offsets = [0, 32], sizes = [8, 32], strides = [1, 1]} : vector<8x64xf32> to vector<8x32xf32>
    %270 = math.tanh %269 : vector<8x32xf32>
    %271 = arith.subf %270, %254 : vector<8x32xf32>
    %272 = arith.mulf %268, %271 : vector<8x32xf32>
    %273 = arith.addf %254, %272 : vector<8x32xf32>
    %c0_97 = arith.constant 0 : index
    %c0_98 = arith.constant 0 : index
    %c0_99 = arith.constant 0 : index
    %274 = vector.load %arg5[%c0_97, %c0_98, %c0_99] : memref<4x32x64xf32, #tpu.memory_space<vmem>>, vector<1x32x64xf32>
    %275 = vector.shape_cast %274 : vector<1x32x64xf32> to vector<32x64xf32>
    %cst_100 = arith.constant dense<0.000000e+00> : vector<8x64xf32>
    %276 = tpu.matmul %273, %275, %cst_100 {dimension_numbers = #tpu.dot_dimension_numbers<[1], [0], [0], [1], [0, 0, 1, 1], [], []>} : vector<8x32xf32>, vector<32x64xf32>, vector<8x64xf32> -> vector<8x64xf32>
    %277 = vector.extract_strided_slice %276 {offsets = [0, 0], sizes = [8, 32], strides = [1, 1]} : vector<8x64xf32> to vector<8x32xf32>
    %278 = arith.negf %277 : vector<8x32xf32>
    %279 = math.exp %278 : vector<8x32xf32>
    %cst_101 = arith.constant 1.000000e+00 : f32
    %280 = vector.broadcast %cst_101 : f32 to vector<8x32xf32>
    %281 = arith.addf %280, %279 : vector<8x32xf32>
    %282 = arith.divf %280, %281 : vector<8x32xf32>
    %283 = vector.extract_strided_slice %276 {offsets = [0, 32], sizes = [8, 32], strides = [1, 1]} : vector<8x64xf32> to vector<8x32xf32>
    %284 = math.tanh %283 : vector<8x32xf32>
    %285 = arith.subf %284, %273 : vector<8x32xf32>
    %286 = arith.mulf %282, %285 : vector<8x32xf32>
    %287 = arith.addf %273, %286 : vector<8x32xf32>
    %c1_102 = arith.constant 1 : index
    %c0_103 = arith.constant 0 : index
    %c0_104 = arith.constant 0 : index
    %288 = vector.load %arg5[%c1_102, %c0_103, %c0_104] : memref<4x32x64xf32, #tpu.memory_space<vmem>>, vector<1x32x64xf32>
    %289 = vector.shape_cast %288 : vector<1x32x64xf32> to vector<32x64xf32>
    %cst_105 = arith.constant dense<0.000000e+00> : vector<8x64xf32>
    %290 = tpu.matmul %287, %289, %cst_105 {dimension_numbers = #tpu.dot_dimension_numbers<[1], [0], [0], [1], [0, 0, 1, 1], [], []>} : vector<8x32xf32>, vector<32x64xf32>, vector<8x64xf32> -> vector<8x64xf32>
    %291 = vector.extract_strided_slice %290 {offsets = [0, 0], sizes = [8, 32], strides = [1, 1]} : vector<8x64xf32> to vector<8x32xf32>
    %292 = arith.negf %291 : vector<8x32xf32>
    %293 = math.exp %292 : vector<8x32xf32>
    %cst_106 = arith.constant 1.000000e+00 : f32
    %294 = vector.broadcast %cst_106 : f32 to vector<8x32xf32>
    %295 = arith.addf %294, %293 : vector<8x32xf32>
    %296 = arith.divf %294, %295 : vector<8x32xf32>
    %297 = vector.extract_strided_slice %290 {offsets = [0, 32], sizes = [8, 32], strides = [1, 1]} : vector<8x64xf32> to vector<8x32xf32>
    %cst_107 = arith.constant 0.000000e+00 : f32
    %298 = vector.broadcast %cst_107 : f32 to vector<8x32xf32>
    %299 = arith.maximumf %297, %298 : vector<8x32xf32>
    %300 = arith.subf %299, %287 : vector<8x32xf32>
    %301 = arith.mulf %296, %300 : vector<8x32xf32>
    %302 = arith.addf %287, %301 : vector<8x32xf32>
    %c2_108 = arith.constant 2 : index
    %c0_109 = arith.constant 0 : index
    %c0_110 = arith.constant 0 : index
    %303 = vector.load %arg5[%c2_108, %c0_109, %c0_110] : memref<4x32x64xf32, #tpu.memory_space<vmem>>, vector<1x32x64xf32>
    %304 = vector.shape_cast %303 : vector<1x32x64xf32> to vector<32x64xf32>
    %cst_111 = arith.constant dense<0.000000e+00> : vector<8x64xf32>
    %305 = tpu.matmul %287, %304, %cst_111 {dimension_numbers = #tpu.dot_dimension_numbers<[1], [0], [0], [1], [0, 0, 1, 1], [], []>} : vector<8x32xf32>, vector<32x64xf32>, vector<8x64xf32> -> vector<8x64xf32>
    %306 = vector.extract_strided_slice %305 {offsets = [0, 0], sizes = [8, 32], strides = [1, 1]} : vector<8x64xf32> to vector<8x32xf32>
    %307 = arith.negf %306 : vector<8x32xf32>
    %308 = math.exp %307 : vector<8x32xf32>
    %cst_112 = arith.constant 1.000000e+00 : f32
    %309 = vector.broadcast %cst_112 : f32 to vector<8x32xf32>
    %310 = arith.addf %309, %308 : vector<8x32xf32>
    %311 = arith.divf %309, %310 : vector<8x32xf32>
    %312 = vector.extract_strided_slice %305 {offsets = [0, 32], sizes = [8, 32], strides = [1, 1]} : vector<8x64xf32> to vector<8x32xf32>
    %313 = arith.negf %312 : vector<8x32xf32>
    %314 = math.exp %313 : vector<8x32xf32>
    %cst_113 = arith.constant 1.000000e+00 : f32
    %315 = vector.broadcast %cst_113 : f32 to vector<8x32xf32>
    %316 = arith.addf %315, %314 : vector<8x32xf32>
    %317 = arith.divf %315, %316 : vector<8x32xf32>
    %318 = arith.subf %317, %287 : vector<8x32xf32>
    %319 = arith.mulf %311, %318 : vector<8x32xf32>
    %320 = arith.addf %287, %319 : vector<8x32xf32>
    %c3_114 = arith.constant 3 : index
    %c0_115 = arith.constant 0 : index
    %c0_116 = arith.constant 0 : index
    %321 = vector.load %arg5[%c3_114, %c0_115, %c0_116] : memref<4x32x64xf32, #tpu.memory_space<vmem>>, vector<1x32x64xf32>
    %322 = vector.shape_cast %321 : vector<1x32x64xf32> to vector<32x64xf32>
    %cst_117 = arith.constant dense<0.000000e+00> : vector<8x64xf32>
    %323 = tpu.matmul %302, %322, %cst_117 {dimension_numbers = #tpu.dot_dimension_numbers<[1], [0], [0], [1], [0, 0, 1, 1], [], []>} : vector<8x32xf32>, vector<32x64xf32>, vector<8x64xf32> -> vector<8x64xf32>
    %324 = vector.extract_strided_slice %323 {offsets = [0, 0], sizes = [8, 32], strides = [1, 1]} : vector<8x64xf32> to vector<8x32xf32>
    %325 = arith.negf %324 : vector<8x32xf32>
    %326 = math.exp %325 : vector<8x32xf32>
    %cst_118 = arith.constant 1.000000e+00 : f32
    %327 = vector.broadcast %cst_118 : f32 to vector<8x32xf32>
    %328 = arith.addf %327, %326 : vector<8x32xf32>
    %329 = arith.divf %327, %328 : vector<8x32xf32>
    %330 = vector.extract_strided_slice %323 {offsets = [0, 32], sizes = [8, 32], strides = [1, 1]} : vector<8x64xf32> to vector<8x32xf32>
    %331 = arith.subf %330, %302 : vector<8x32xf32>
    %332 = arith.mulf %329, %331 : vector<8x32xf32>
    %333 = arith.addf %302, %332 : vector<8x32xf32>
    %334 = arith.addf %287, %302 : vector<8x32xf32>
    %335 = arith.addf %334, %320 : vector<8x32xf32>
    %336 = arith.addf %335, %333 : vector<8x32xf32>
    %cst_119 = arith.constant 2.500000e-01 : f32
    %337 = vector.broadcast %cst_119 : f32 to vector<8x32xf32>
    %338 = arith.mulf %336, %337 : vector<8x32xf32>
    %c3_120 = arith.constant 3 : index
    %c0_121 = arith.constant 0 : index
    %c0_122 = arith.constant 0 : index
    %339 = vector.load %arg6[%c3_120, %c0_121, %c0_122] : memref<8x8x32xf32, #tpu.memory_space<vmem>>, vector<1x8x32xf32>
    %340 = vector.shape_cast %339 : vector<1x8x32xf32> to vector<8x32xf32>
    %341 = vector.shape_cast %338 : vector<8x32xf32> to vector<1x8x32xf32>
    tpu.vector_store %arg6[%c3_120, %c0_121, %c0_122], %341 {strides = array<i32>} : memref<8x8x32xf32, #tpu.memory_space<vmem>>, vector<1x8x32xf32>,
    %342 = vector.extract_strided_slice %4 {offsets = [4, 0, 0], sizes = [1, 8, 64], strides = [1, 1, 1]} : vector<8x8x64xf32> to vector<1x8x64xf32>
    %343 = vector.shape_cast %342 : vector<1x8x64xf32> to vector<8x64xf32>
    %c0_123 = arith.constant 0 : index
    %c0_124 = arith.constant 0 : index
    %344 = vector.load %arg4[%c0_123, %c0_124] : memref<32x64xf32, #tpu.memory_space<vmem>>, vector<32x64xf32>
    %cst_125 = arith.constant dense<0.000000e+00> : vector<8x64xf32>
    %345 = tpu.matmul %338, %344, %cst_125 {dimension_numbers = #tpu.dot_dimension_numbers<[1], [0], [0], [1], [0, 0, 1, 1], [], []>} : vector<8x32xf32>, vector<32x64xf32>, vector<8x64xf32> -> vector<8x64xf32>
    %346 = arith.addf %343, %345 : vector<8x64xf32>
    %347 = vector.extract_strided_slice %346 {offsets = [0, 0], sizes = [8, 32], strides = [1, 1]} : vector<8x64xf32> to vector<8x32xf32>
    %348 = arith.negf %347 : vector<8x32xf32>
    %349 = math.exp %348 : vector<8x32xf32>
    %cst_126 = arith.constant 1.000000e+00 : f32
    %350 = vector.broadcast %cst_126 : f32 to vector<8x32xf32>
    %351 = arith.addf %350, %349 : vector<8x32xf32>
    %352 = arith.divf %350, %351 : vector<8x32xf32>
    %353 = vector.extract_strided_slice %346 {offsets = [0, 32], sizes = [8, 32], strides = [1, 1]} : vector<8x64xf32> to vector<8x32xf32>
    %354 = math.tanh %353 : vector<8x32xf32>
    %355 = arith.subf %354, %338 : vector<8x32xf32>
    %356 = arith.mulf %352, %355 : vector<8x32xf32>
    %357 = arith.addf %338, %356 : vector<8x32xf32>
    %c0_127 = arith.constant 0 : index
    %c0_128 = arith.constant 0 : index
    %c0_129 = arith.constant 0 : index
    %358 = vector.load %arg5[%c0_127, %c0_128, %c0_129] : memref<4x32x64xf32, #tpu.memory_space<vmem>>, vector<1x32x64xf32>
    %359 = vector.shape_cast %358 : vector<1x32x64xf32> to vector<32x64xf32>
    %cst_130 = arith.constant dense<0.000000e+00> : vector<8x64xf32>
    %360 = tpu.matmul %357, %359, %cst_130 {dimension_numbers = #tpu.dot_dimension_numbers<[1], [0], [0], [1], [0, 0, 1, 1], [], []>} : vector<8x32xf32>, vector<32x64xf32>, vector<8x64xf32> -> vector<8x64xf32>
    %361 = vector.extract_strided_slice %360 {offsets = [0, 0], sizes = [8, 32], strides = [1, 1]} : vector<8x64xf32> to vector<8x32xf32>
    %362 = arith.negf %361 : vector<8x32xf32>
    %363 = math.exp %362 : vector<8x32xf32>
    %cst_131 = arith.constant 1.000000e+00 : f32
    %364 = vector.broadcast %cst_131 : f32 to vector<8x32xf32>
    %365 = arith.addf %364, %363 : vector<8x32xf32>
    %366 = arith.divf %364, %365 : vector<8x32xf32>
    %367 = vector.extract_strided_slice %360 {offsets = [0, 32], sizes = [8, 32], strides = [1, 1]} : vector<8x64xf32> to vector<8x32xf32>
    %368 = math.tanh %367 : vector<8x32xf32>
    %369 = arith.subf %368, %357 : vector<8x32xf32>
    %370 = arith.mulf %366, %369 : vector<8x32xf32>
    %371 = arith.addf %357, %370 : vector<8x32xf32>
    %c1_132 = arith.constant 1 : index
    %c0_133 = arith.constant 0 : index
    %c0_134 = arith.constant 0 : index
    %372 = vector.load %arg5[%c1_132, %c0_133, %c0_134] : memref<4x32x64xf32, #tpu.memory_space<vmem>>, vector<1x32x64xf32>
    %373 = vector.shape_cast %372 : vector<1x32x64xf32> to vector<32x64xf32>
    %cst_135 = arith.constant dense<0.000000e+00> : vector<8x64xf32>
    %374 = tpu.matmul %371, %373, %cst_135 {dimension_numbers = #tpu.dot_dimension_numbers<[1], [0], [0], [1], [0, 0, 1, 1], [], []>} : vector<8x32xf32>, vector<32x64xf32>, vector<8x64xf32> -> vector<8x64xf32>
    %375 = vector.extract_strided_slice %374 {offsets = [0, 0], sizes = [8, 32], strides = [1, 1]} : vector<8x64xf32> to vector<8x32xf32>
    %376 = arith.negf %375 : vector<8x32xf32>
    %377 = math.exp %376 : vector<8x32xf32>
    %cst_136 = arith.constant 1.000000e+00 : f32
    %378 = vector.broadcast %cst_136 : f32 to vector<8x32xf32>
    %379 = arith.addf %378, %377 : vector<8x32xf32>
    %380 = arith.divf %378, %379 : vector<8x32xf32>
    %381 = vector.extract_strided_slice %374 {offsets = [0, 32], sizes = [8, 32], strides = [1, 1]} : vector<8x64xf32> to vector<8x32xf32>
    %cst_137 = arith.constant 0.000000e+00 : f32
    %382 = vector.broadcast %cst_137 : f32 to vector<8x32xf32>
    %383 = arith.maximumf %381, %382 : vector<8x32xf32>
    %384 = arith.subf %383, %371 : vector<8x32xf32>
    %385 = arith.mulf %380, %384 : vector<8x32xf32>
    %386 = arith.addf %371, %385 : vector<8x32xf32>
    %c2_138 = arith.constant 2 : index
    %c0_139 = arith.constant 0 : index
    %c0_140 = arith.constant 0 : index
    %387 = vector.load %arg5[%c2_138, %c0_139, %c0_140] : memref<4x32x64xf32, #tpu.memory_space<vmem>>, vector<1x32x64xf32>
    %388 = vector.shape_cast %387 : vector<1x32x64xf32> to vector<32x64xf32>
    %cst_141 = arith.constant dense<0.000000e+00> : vector<8x64xf32>
    %389 = tpu.matmul %371, %388, %cst_141 {dimension_numbers = #tpu.dot_dimension_numbers<[1], [0], [0], [1], [0, 0, 1, 1], [], []>} : vector<8x32xf32>, vector<32x64xf32>, vector<8x64xf32> -> vector<8x64xf32>
    %390 = vector.extract_strided_slice %389 {offsets = [0, 0], sizes = [8, 32], strides = [1, 1]} : vector<8x64xf32> to vector<8x32xf32>
    %391 = arith.negf %390 : vector<8x32xf32>
    %392 = math.exp %391 : vector<8x32xf32>
    %cst_142 = arith.constant 1.000000e+00 : f32
    %393 = vector.broadcast %cst_142 : f32 to vector<8x32xf32>
    %394 = arith.addf %393, %392 : vector<8x32xf32>
    %395 = arith.divf %393, %394 : vector<8x32xf32>
    %396 = vector.extract_strided_slice %389 {offsets = [0, 32], sizes = [8, 32], strides = [1, 1]} : vector<8x64xf32> to vector<8x32xf32>
    %397 = arith.negf %396 : vector<8x32xf32>
    %398 = math.exp %397 : vector<8x32xf32>
    %cst_143 = arith.constant 1.000000e+00 : f32
    %399 = vector.broadcast %cst_143 : f32 to vector<8x32xf32>
    %400 = arith.addf %399, %398 : vector<8x32xf32>
    %401 = arith.divf %399, %400 : vector<8x32xf32>
    %402 = arith.subf %401, %371 : vector<8x32xf32>
    %403 = arith.mulf %395, %402 : vector<8x32xf32>
    %404 = arith.addf %371, %403 : vector<8x32xf32>
    %c3_144 = arith.constant 3 : index
    %c0_145 = arith.constant 0 : index
    %c0_146 = arith.constant 0 : index
    %405 = vector.load %arg5[%c3_144, %c0_145, %c0_146] : memref<4x32x64xf32, #tpu.memory_space<vmem>>, vector<1x32x64xf32>
    %406 = vector.shape_cast %405 : vector<1x32x64xf32> to vector<32x64xf32>
    %cst_147 = arith.constant dense<0.000000e+00> : vector<8x64xf32>
    %407 = tpu.matmul %386, %406, %cst_147 {dimension_numbers = #tpu.dot_dimension_numbers<[1], [0], [0], [1], [0, 0, 1, 1], [], []>} : vector<8x32xf32>, vector<32x64xf32>, vector<8x64xf32> -> vector<8x64xf32>
    %408 = vector.extract_strided_slice %407 {offsets = [0, 0], sizes = [8, 32], strides = [1, 1]} : vector<8x64xf32> to vector<8x32xf32>
    %409 = arith.negf %408 : vector<8x32xf32>
    %410 = math.exp %409 : vector<8x32xf32>
    %cst_148 = arith.constant 1.000000e+00 : f32
    %411 = vector.broadcast %cst_148 : f32 to vector<8x32xf32>
    %412 = arith.addf %411, %410 : vector<8x32xf32>
    %413 = arith.divf %411, %412 : vector<8x32xf32>
    %414 = vector.extract_strided_slice %407 {offsets = [0, 32], sizes = [8, 32], strides = [1, 1]} : vector<8x64xf32> to vector<8x32xf32>
    %415 = arith.subf %414, %386 : vector<8x32xf32>
    %416 = arith.mulf %413, %415 : vector<8x32xf32>
    %417 = arith.addf %386, %416 : vector<8x32xf32>
    %418 = arith.addf %371, %386 : vector<8x32xf32>
    %419 = arith.addf %418, %404 : vector<8x32xf32>
    %420 = arith.addf %419, %417 : vector<8x32xf32>
    %cst_149 = arith.constant 2.500000e-01 : f32
    %421 = vector.broadcast %cst_149 : f32 to vector<8x32xf32>
    %422 = arith.mulf %420, %421 : vector<8x32xf32>
    %c4 = arith.constant 4 : index
    %c0_150 = arith.constant 0 : index
    %c0_151 = arith.constant 0 : index
    %423 = vector.load %arg6[%c4, %c0_150, %c0_151] : memref<8x8x32xf32, #tpu.memory_space<vmem>>, vector<1x8x32xf32>
    %424 = vector.shape_cast %423 : vector<1x8x32xf32> to vector<8x32xf32>
    %425 = vector.shape_cast %422 : vector<8x32xf32> to vector<1x8x32xf32>
    tpu.vector_store %arg6[%c4, %c0_150, %c0_151], %425 {strides = array<i32>} : memref<8x8x32xf32, #tpu.memory_space<vmem>>, vector<1x8x32xf32>,
    %426 = vector.extract_strided_slice %4 {offsets = [5, 0, 0], sizes = [1, 8, 64], strides = [1, 1, 1]} : vector<8x8x64xf32> to vector<1x8x64xf32>
    %427 = vector.shape_cast %426 : vector<1x8x64xf32> to vector<8x64xf32>
    %c0_152 = arith.constant 0 : index
    %c0_153 = arith.constant 0 : index
    %428 = vector.load %arg4[%c0_152, %c0_153] : memref<32x64xf32, #tpu.memory_space<vmem>>, vector<32x64xf32>
    %cst_154 = arith.constant dense<0.000000e+00> : vector<8x64xf32>
    %429 = tpu.matmul %422, %428, %cst_154 {dimension_numbers = #tpu.dot_dimension_numbers<[1], [0], [0], [1], [0, 0, 1, 1], [], []>} : vector<8x32xf32>, vector<32x64xf32>, vector<8x64xf32> -> vector<8x64xf32>
    %430 = arith.addf %427, %429 : vector<8x64xf32>
    %431 = vector.extract_strided_slice %430 {offsets = [0, 0], sizes = [8, 32], strides = [1, 1]} : vector<8x64xf32> to vector<8x32xf32>
    %432 = arith.negf %431 : vector<8x32xf32>
    %433 = math.exp %432 : vector<8x32xf32>
    %cst_155 = arith.constant 1.000000e+00 : f32
    %434 = vector.broadcast %cst_155 : f32 to vector<8x32xf32>
    %435 = arith.addf %434, %433 : vector<8x32xf32>
    %436 = arith.divf %434, %435 : vector<8x32xf32>
    %437 = vector.extract_strided_slice %430 {offsets = [0, 32], sizes = [8, 32], strides = [1, 1]} : vector<8x64xf32> to vector<8x32xf32>
    %438 = math.tanh %437 : vector<8x32xf32>
    %439 = arith.subf %438, %422 : vector<8x32xf32>
    %440 = arith.mulf %436, %439 : vector<8x32xf32>
    %441 = arith.addf %422, %440 : vector<8x32xf32>
    %c0_156 = arith.constant 0 : index
    %c0_157 = arith.constant 0 : index
    %c0_158 = arith.constant 0 : index
    %442 = vector.load %arg5[%c0_156, %c0_157, %c0_158] : memref<4x32x64xf32, #tpu.memory_space<vmem>>, vector<1x32x64xf32>
    %443 = vector.shape_cast %442 : vector<1x32x64xf32> to vector<32x64xf32>
    %cst_159 = arith.constant dense<0.000000e+00> : vector<8x64xf32>
    %444 = tpu.matmul %441, %443, %cst_159 {dimension_numbers = #tpu.dot_dimension_numbers<[1], [0], [0], [1], [0, 0, 1, 1], [], []>} : vector<8x32xf32>, vector<32x64xf32>, vector<8x64xf32> -> vector<8x64xf32>
    %445 = vector.extract_strided_slice %444 {offsets = [0, 0], sizes = [8, 32], strides = [1, 1]} : vector<8x64xf32> to vector<8x32xf32>
    %446 = arith.negf %445 : vector<8x32xf32>
    %447 = math.exp %446 : vector<8x32xf32>
    %cst_160 = arith.constant 1.000000e+00 : f32
    %448 = vector.broadcast %cst_160 : f32 to vector<8x32xf32>
    %449 = arith.addf %448, %447 : vector<8x32xf32>
    %450 = arith.divf %448, %449 : vector<8x32xf32>
    %451 = vector.extract_strided_slice %444 {offsets = [0, 32], sizes = [8, 32], strides = [1, 1]} : vector<8x64xf32> to vector<8x32xf32>
    %452 = math.tanh %451 : vector<8x32xf32>
    %453 = arith.subf %452, %441 : vector<8x32xf32>
    %454 = arith.mulf %450, %453 : vector<8x32xf32>
    %455 = arith.addf %441, %454 : vector<8x32xf32>
    %c1_161 = arith.constant 1 : index
    %c0_162 = arith.constant 0 : index
    %c0_163 = arith.constant 0 : index
    %456 = vector.load %arg5[%c1_161, %c0_162, %c0_163] : memref<4x32x64xf32, #tpu.memory_space<vmem>>, vector<1x32x64xf32>
    %457 = vector.shape_cast %456 : vector<1x32x64xf32> to vector<32x64xf32>
    %cst_164 = arith.constant dense<0.000000e+00> : vector<8x64xf32>
    %458 = tpu.matmul %455, %457, %cst_164 {dimension_numbers = #tpu.dot_dimension_numbers<[1], [0], [0], [1], [0, 0, 1, 1], [], []>} : vector<8x32xf32>, vector<32x64xf32>, vector<8x64xf32> -> vector<8x64xf32>
    %459 = vector.extract_strided_slice %458 {offsets = [0, 0], sizes = [8, 32], strides = [1, 1]} : vector<8x64xf32> to vector<8x32xf32>
    %460 = arith.negf %459 : vector<8x32xf32>
    %461 = math.exp %460 : vector<8x32xf32>
    %cst_165 = arith.constant 1.000000e+00 : f32
    %462 = vector.broadcast %cst_165 : f32 to vector<8x32xf32>
    %463 = arith.addf %462, %461 : vector<8x32xf32>
    %464 = arith.divf %462, %463 : vector<8x32xf32>
    %465 = vector.extract_strided_slice %458 {offsets = [0, 32], sizes = [8, 32], strides = [1, 1]} : vector<8x64xf32> to vector<8x32xf32>
    %cst_166 = arith.constant 0.000000e+00 : f32
    %466 = vector.broadcast %cst_166 : f32 to vector<8x32xf32>
    %467 = arith.maximumf %465, %466 : vector<8x32xf32>
    %468 = arith.subf %467, %455 : vector<8x32xf32>
    %469 = arith.mulf %464, %468 : vector<8x32xf32>
    %470 = arith.addf %455, %469 : vector<8x32xf32>
    %c2_167 = arith.constant 2 : index
    %c0_168 = arith.constant 0 : index
    %c0_169 = arith.constant 0 : index
    %471 = vector.load %arg5[%c2_167, %c0_168, %c0_169] : memref<4x32x64xf32, #tpu.memory_space<vmem>>, vector<1x32x64xf32>
    %472 = vector.shape_cast %471 : vector<1x32x64xf32> to vector<32x64xf32>
    %cst_170 = arith.constant dense<0.000000e+00> : vector<8x64xf32>
    %473 = tpu.matmul %455, %472, %cst_170 {dimension_numbers = #tpu.dot_dimension_numbers<[1], [0], [0], [1], [0, 0, 1, 1], [], []>} : vector<8x32xf32>, vector<32x64xf32>, vector<8x64xf32> -> vector<8x64xf32>
    %474 = vector.extract_strided_slice %473 {offsets = [0, 0], sizes = [8, 32], strides = [1, 1]} : vector<8x64xf32> to vector<8x32xf32>
    %475 = arith.negf %474 : vector<8x32xf32>
    %476 = math.exp %475 : vector<8x32xf32>
    %cst_171 = arith.constant 1.000000e+00 : f32
    %477 = vector.broadcast %cst_171 : f32 to vector<8x32xf32>
    %478 = arith.addf %477, %476 : vector<8x32xf32>
    %479 = arith.divf %477, %478 : vector<8x32xf32>
    %480 = vector.extract_strided_slice %473 {offsets = [0, 32], sizes = [8, 32], strides = [1, 1]} : vector<8x64xf32> to vector<8x32xf32>
    %481 = arith.negf %480 : vector<8x32xf32>
    %482 = math.exp %481 : vector<8x32xf32>
    %cst_172 = arith.constant 1.000000e+00 : f32
    %483 = vector.broadcast %cst_172 : f32 to vector<8x32xf32>
    %484 = arith.addf %483, %482 : vector<8x32xf32>
    %485 = arith.divf %483, %484 : vector<8x32xf32>
    %486 = arith.subf %485, %455 : vector<8x32xf32>
    %487 = arith.mulf %479, %486 : vector<8x32xf32>
    %488 = arith.addf %455, %487 : vector<8x32xf32>
    %c3_173 = arith.constant 3 : index
    %c0_174 = arith.constant 0 : index
    %c0_175 = arith.constant 0 : index
    %489 = vector.load %arg5[%c3_173, %c0_174, %c0_175] : memref<4x32x64xf32, #tpu.memory_space<vmem>>, vector<1x32x64xf32>
    %490 = vector.shape_cast %489 : vector<1x32x64xf32> to vector<32x64xf32>
    %cst_176 = arith.constant dense<0.000000e+00> : vector<8x64xf32>
    %491 = tpu.matmul %470, %490, %cst_176 {dimension_numbers = #tpu.dot_dimension_numbers<[1], [0], [0], [1], [0, 0, 1, 1], [], []>} : vector<8x32xf32>, vector<32x64xf32>, vector<8x64xf32> -> vector<8x64xf32>
    %492 = vector.extract_strided_slice %491 {offsets = [0, 0], sizes = [8, 32], strides = [1, 1]} : vector<8x64xf32> to vector<8x32xf32>
    %493 = arith.negf %492 : vector<8x32xf32>
    %494 = math.exp %493 : vector<8x32xf32>
    %cst_177 = arith.constant 1.000000e+00 : f32
    %495 = vector.broadcast %cst_177 : f32 to vector<8x32xf32>
    %496 = arith.addf %495, %494 : vector<8x32xf32>
    %497 = arith.divf %495, %496 : vector<8x32xf32>
    %498 = vector.extract_strided_slice %491 {offsets = [0, 32], sizes = [8, 32], strides = [1, 1]} : vector<8x64xf32> to vector<8x32xf32>
    %499 = arith.subf %498, %470 : vector<8x32xf32>
    %500 = arith.mulf %497, %499 : vector<8x32xf32>
    %501 = arith.addf %470, %500 : vector<8x32xf32>
    %502 = arith.addf %455, %470 : vector<8x32xf32>
    %503 = arith.addf %502, %488 : vector<8x32xf32>
    %504 = arith.addf %503, %501 : vector<8x32xf32>
    %cst_178 = arith.constant 2.500000e-01 : f32
    %505 = vector.broadcast %cst_178 : f32 to vector<8x32xf32>
    %506 = arith.mulf %504, %505 : vector<8x32xf32>
    %c5 = arith.constant 5 : index
    %c0_179 = arith.constant 0 : index
    %c0_180 = arith.constant 0 : index
    %507 = vector.load %arg6[%c5, %c0_179, %c0_180] : memref<8x8x32xf32, #tpu.memory_space<vmem>>, vector<1x8x32xf32>
    %508 = vector.shape_cast %507 : vector<1x8x32xf32> to vector<8x32xf32>
    %509 = vector.shape_cast %506 : vector<8x32xf32> to vector<1x8x32xf32>
    tpu.vector_store %arg6[%c5, %c0_179, %c0_180], %509 {strides = array<i32>} : memref<8x8x32xf32, #tpu.memory_space<vmem>>, vector<1x8x32xf32>,
    %510 = vector.extract_strided_slice %4 {offsets = [6, 0, 0], sizes = [1, 8, 64], strides = [1, 1, 1]} : vector<8x8x64xf32> to vector<1x8x64xf32>
    %511 = vector.shape_cast %510 : vector<1x8x64xf32> to vector<8x64xf32>
    %c0_181 = arith.constant 0 : index
    %c0_182 = arith.constant 0 : index
    %512 = vector.load %arg4[%c0_181, %c0_182] : memref<32x64xf32, #tpu.memory_space<vmem>>, vector<32x64xf32>
    %cst_183 = arith.constant dense<0.000000e+00> : vector<8x64xf32>
    %513 = tpu.matmul %506, %512, %cst_183 {dimension_numbers = #tpu.dot_dimension_numbers<[1], [0], [0], [1], [0, 0, 1, 1], [], []>} : vector<8x32xf32>, vector<32x64xf32>, vector<8x64xf32> -> vector<8x64xf32>
    %514 = arith.addf %511, %513 : vector<8x64xf32>
    %515 = vector.extract_strided_slice %514 {offsets = [0, 0], sizes = [8, 32], strides = [1, 1]} : vector<8x64xf32> to vector<8x32xf32>
    %516 = arith.negf %515 : vector<8x32xf32>
    %517 = math.exp %516 : vector<8x32xf32>
    %cst_184 = arith.constant 1.000000e+00 : f32
    %518 = vector.broadcast %cst_184 : f32 to vector<8x32xf32>
    %519 = arith.addf %518, %517 : vector<8x32xf32>
    %520 = arith.divf %518, %519 : vector<8x32xf32>
    %521 = vector.extract_strided_slice %514 {offsets = [0, 32], sizes = [8, 32], strides = [1, 1]} : vector<8x64xf32> to vector<8x32xf32>
    %522 = math.tanh %521 : vector<8x32xf32>
    %523 = arith.subf %522, %506 : vector<8x32xf32>
    %524 = arith.mulf %520, %523 : vector<8x32xf32>
    %525 = arith.addf %506, %524 : vector<8x32xf32>
    %c0_185 = arith.constant 0 : index
    %c0_186 = arith.constant 0 : index
    %c0_187 = arith.constant 0 : index
    %526 = vector.load %arg5[%c0_185, %c0_186, %c0_187] : memref<4x32x64xf32, #tpu.memory_space<vmem>>, vector<1x32x64xf32>
    %527 = vector.shape_cast %526 : vector<1x32x64xf32> to vector<32x64xf32>
    %cst_188 = arith.constant dense<0.000000e+00> : vector<8x64xf32>
    %528 = tpu.matmul %525, %527, %cst_188 {dimension_numbers = #tpu.dot_dimension_numbers<[1], [0], [0], [1], [0, 0, 1, 1], [], []>} : vector<8x32xf32>, vector<32x64xf32>, vector<8x64xf32> -> vector<8x64xf32>
    %529 = vector.extract_strided_slice %528 {offsets = [0, 0], sizes = [8, 32], strides = [1, 1]} : vector<8x64xf32> to vector<8x32xf32>
    %530 = arith.negf %529 : vector<8x32xf32>
    %531 = math.exp %530 : vector<8x32xf32>
    %cst_189 = arith.constant 1.000000e+00 : f32
    %532 = vector.broadcast %cst_189 : f32 to vector<8x32xf32>
    %533 = arith.addf %532, %531 : vector<8x32xf32>
    %534 = arith.divf %532, %533 : vector<8x32xf32>
    %535 = vector.extract_strided_slice %528 {offsets = [0, 32], sizes = [8, 32], strides = [1, 1]} : vector<8x64xf32> to vector<8x32xf32>
    %536 = math.tanh %535 : vector<8x32xf32>
    %537 = arith.subf %536, %525 : vector<8x32xf32>
    %538 = arith.mulf %534, %537 : vector<8x32xf32>
    %539 = arith.addf %525, %538 : vector<8x32xf32>
    %c1_190 = arith.constant 1 : index
    %c0_191 = arith.constant 0 : index
    %c0_192 = arith.constant 0 : index
    %540 = vector.load %arg5[%c1_190, %c0_191, %c0_192] : memref<4x32x64xf32, #tpu.memory_space<vmem>>, vector<1x32x64xf32>
    %541 = vector.shape_cast %540 : vector<1x32x64xf32> to vector<32x64xf32>
    %cst_193 = arith.constant dense<0.000000e+00> : vector<8x64xf32>
    %542 = tpu.matmul %539, %541, %cst_193 {dimension_numbers = #tpu.dot_dimension_numbers<[1], [0], [0], [1], [0, 0, 1, 1], [], []>} : vector<8x32xf32>, vector<32x64xf32>, vector<8x64xf32> -> vector<8x64xf32>
    %543 = vector.extract_strided_slice %542 {offsets = [0, 0], sizes = [8, 32], strides = [1, 1]} : vector<8x64xf32> to vector<8x32xf32>
    %544 = arith.negf %543 : vector<8x32xf32>
    %545 = math.exp %544 : vector<8x32xf32>
    %cst_194 = arith.constant 1.000000e+00 : f32
    %546 = vector.broadcast %cst_194 : f32 to vector<8x32xf32>
    %547 = arith.addf %546, %545 : vector<8x32xf32>
    %548 = arith.divf %546, %547 : vector<8x32xf32>
    %549 = vector.extract_strided_slice %542 {offsets = [0, 32], sizes = [8, 32], strides = [1, 1]} : vector<8x64xf32> to vector<8x32xf32>
    %cst_195 = arith.constant 0.000000e+00 : f32
    %550 = vector.broadcast %cst_195 : f32 to vector<8x32xf32>
    %551 = arith.maximumf %549, %550 : vector<8x32xf32>
    %552 = arith.subf %551, %539 : vector<8x32xf32>
    %553 = arith.mulf %548, %552 : vector<8x32xf32>
    %554 = arith.addf %539, %553 : vector<8x32xf32>
    %c2_196 = arith.constant 2 : index
    %c0_197 = arith.constant 0 : index
    %c0_198 = arith.constant 0 : index
    %555 = vector.load %arg5[%c2_196, %c0_197, %c0_198] : memref<4x32x64xf32, #tpu.memory_space<vmem>>, vector<1x32x64xf32>
    %556 = vector.shape_cast %555 : vector<1x32x64xf32> to vector<32x64xf32>
    %cst_199 = arith.constant dense<0.000000e+00> : vector<8x64xf32>
    %557 = tpu.matmul %539, %556, %cst_199 {dimension_numbers = #tpu.dot_dimension_numbers<[1], [0], [0], [1], [0, 0, 1, 1], [], []>} : vector<8x32xf32>, vector<32x64xf32>, vector<8x64xf32> -> vector<8x64xf32>
    %558 = vector.extract_strided_slice %557 {offsets = [0, 0], sizes = [8, 32], strides = [1, 1]} : vector<8x64xf32> to vector<8x32xf32>
    %559 = arith.negf %558 : vector<8x32xf32>
    %560 = math.exp %559 : vector<8x32xf32>
    %cst_200 = arith.constant 1.000000e+00 : f32
    %561 = vector.broadcast %cst_200 : f32 to vector<8x32xf32>
    %562 = arith.addf %561, %560 : vector<8x32xf32>
    %563 = arith.divf %561, %562 : vector<8x32xf32>
    %564 = vector.extract_strided_slice %557 {offsets = [0, 32], sizes = [8, 32], strides = [1, 1]} : vector<8x64xf32> to vector<8x32xf32>
    %565 = arith.negf %564 : vector<8x32xf32>
    %566 = math.exp %565 : vector<8x32xf32>
    %cst_201 = arith.constant 1.000000e+00 : f32
    %567 = vector.broadcast %cst_201 : f32 to vector<8x32xf32>
    %568 = arith.addf %567, %566 : vector<8x32xf32>
    %569 = arith.divf %567, %568 : vector<8x32xf32>
    %570 = arith.subf %569, %539 : vector<8x32xf32>
    %571 = arith.mulf %563, %570 : vector<8x32xf32>
    %572 = arith.addf %539, %571 : vector<8x32xf32>
    %c3_202 = arith.constant 3 : index
    %c0_203 = arith.constant 0 : index
    %c0_204 = arith.constant 0 : index
    %573 = vector.load %arg5[%c3_202, %c0_203, %c0_204] : memref<4x32x64xf32, #tpu.memory_space<vmem>>, vector<1x32x64xf32>
    %574 = vector.shape_cast %573 : vector<1x32x64xf32> to vector<32x64xf32>
    %cst_205 = arith.constant dense<0.000000e+00> : vector<8x64xf32>
    %575 = tpu.matmul %554, %574, %cst_205 {dimension_numbers = #tpu.dot_dimension_numbers<[1], [0], [0], [1], [0, 0, 1, 1], [], []>} : vector<8x32xf32>, vector<32x64xf32>, vector<8x64xf32> -> vector<8x64xf32>
    %576 = vector.extract_strided_slice %575 {offsets = [0, 0], sizes = [8, 32], strides = [1, 1]} : vector<8x64xf32> to vector<8x32xf32>
    %577 = arith.negf %576 : vector<8x32xf32>
    %578 = math.exp %577 : vector<8x32xf32>
    %cst_206 = arith.constant 1.000000e+00 : f32
    %579 = vector.broadcast %cst_206 : f32 to vector<8x32xf32>
    %580 = arith.addf %579, %578 : vector<8x32xf32>
    %581 = arith.divf %579, %580 : vector<8x32xf32>
    %582 = vector.extract_strided_slice %575 {offsets = [0, 32], sizes = [8, 32], strides = [1, 1]} : vector<8x64xf32> to vector<8x32xf32>
    %583 = arith.subf %582, %554 : vector<8x32xf32>
    %584 = arith.mulf %581, %583 : vector<8x32xf32>
    %585 = arith.addf %554, %584 : vector<8x32xf32>
    %586 = arith.addf %539, %554 : vector<8x32xf32>
    %587 = arith.addf %586, %572 : vector<8x32xf32>
    %588 = arith.addf %587, %585 : vector<8x32xf32>
    %cst_207 = arith.constant 2.500000e-01 : f32
    %589 = vector.broadcast %cst_207 : f32 to vector<8x32xf32>
    %590 = arith.mulf %588, %589 : vector<8x32xf32>
    %c6 = arith.constant 6 : index
    %c0_208 = arith.constant 0 : index
    %c0_209 = arith.constant 0 : index
    %591 = vector.load %arg6[%c6, %c0_208, %c0_209] : memref<8x8x32xf32, #tpu.memory_space<vmem>>, vector<1x8x32xf32>
    %592 = vector.shape_cast %591 : vector<1x8x32xf32> to vector<8x32xf32>
    %593 = vector.shape_cast %590 : vector<8x32xf32> to vector<1x8x32xf32>
    tpu.vector_store %arg6[%c6, %c0_208, %c0_209], %593 {strides = array<i32>} : memref<8x8x32xf32, #tpu.memory_space<vmem>>, vector<1x8x32xf32>,
    %594 = vector.extract_strided_slice %4 {offsets = [7, 0, 0], sizes = [1, 8, 64], strides = [1, 1, 1]} : vector<8x8x64xf32> to vector<1x8x64xf32>
    %595 = vector.shape_cast %594 : vector<1x8x64xf32> to vector<8x64xf32>
    %c0_210 = arith.constant 0 : index
    %c0_211 = arith.constant 0 : index
    %596 = vector.load %arg4[%c0_210, %c0_211] : memref<32x64xf32, #tpu.memory_space<vmem>>, vector<32x64xf32>
    %cst_212 = arith.constant dense<0.000000e+00> : vector<8x64xf32>
    %597 = tpu.matmul %590, %596, %cst_212 {dimension_numbers = #tpu.dot_dimension_numbers<[1], [0], [0], [1], [0, 0, 1, 1], [], []>} : vector<8x32xf32>, vector<32x64xf32>, vector<8x64xf32> -> vector<8x64xf32>
    %598 = arith.addf %595, %597 : vector<8x64xf32>
    %599 = vector.extract_strided_slice %598 {offsets = [0, 0], sizes = [8, 32], strides = [1, 1]} : vector<8x64xf32> to vector<8x32xf32>
    %600 = arith.negf %599 : vector<8x32xf32>
    %601 = math.exp %600 : vector<8x32xf32>
    %cst_213 = arith.constant 1.000000e+00 : f32
    %602 = vector.broadcast %cst_213 : f32 to vector<8x32xf32>
    %603 = arith.addf %602, %601 : vector<8x32xf32>
    %604 = arith.divf %602, %603 : vector<8x32xf32>
    %605 = vector.extract_strided_slice %598 {offsets = [0, 32], sizes = [8, 32], strides = [1, 1]} : vector<8x64xf32> to vector<8x32xf32>
    %606 = math.tanh %605 : vector<8x32xf32>
    %607 = arith.subf %606, %590 : vector<8x32xf32>
    %608 = arith.mulf %604, %607 : vector<8x32xf32>
    %609 = arith.addf %590, %608 : vector<8x32xf32>
    %c0_214 = arith.constant 0 : index
    %c0_215 = arith.constant 0 : index
    %c0_216 = arith.constant 0 : index
    %610 = vector.load %arg5[%c0_214, %c0_215, %c0_216] : memref<4x32x64xf32, #tpu.memory_space<vmem>>, vector<1x32x64xf32>
    %611 = vector.shape_cast %610 : vector<1x32x64xf32> to vector<32x64xf32>
    %cst_217 = arith.constant dense<0.000000e+00> : vector<8x64xf32>
    %612 = tpu.matmul %609, %611, %cst_217 {dimension_numbers = #tpu.dot_dimension_numbers<[1], [0], [0], [1], [0, 0, 1, 1], [], []>} : vector<8x32xf32>, vector<32x64xf32>, vector<8x64xf32> -> vector<8x64xf32>
    %613 = vector.extract_strided_slice %612 {offsets = [0, 0], sizes = [8, 32], strides = [1, 1]} : vector<8x64xf32> to vector<8x32xf32>
    %614 = arith.negf %613 : vector<8x32xf32>
    %615 = math.exp %614 : vector<8x32xf32>
    %cst_218 = arith.constant 1.000000e+00 : f32
    %616 = vector.broadcast %cst_218 : f32 to vector<8x32xf32>
    %617 = arith.addf %616, %615 : vector<8x32xf32>
    %618 = arith.divf %616, %617 : vector<8x32xf32>
    %619 = vector.extract_strided_slice %612 {offsets = [0, 32], sizes = [8, 32], strides = [1, 1]} : vector<8x64xf32> to vector<8x32xf32>
    %620 = math.tanh %619 : vector<8x32xf32>
    %621 = arith.subf %620, %609 : vector<8x32xf32>
    %622 = arith.mulf %618, %621 : vector<8x32xf32>
    %623 = arith.addf %609, %622 : vector<8x32xf32>
    %c1_219 = arith.constant 1 : index
    %c0_220 = arith.constant 0 : index
    %c0_221 = arith.constant 0 : index
    %624 = vector.load %arg5[%c1_219, %c0_220, %c0_221] : memref<4x32x64xf32, #tpu.memory_space<vmem>>, vector<1x32x64xf32>
    %625 = vector.shape_cast %624 : vector<1x32x64xf32> to vector<32x64xf32>
    %cst_222 = arith.constant dense<0.000000e+00> : vector<8x64xf32>
    %626 = tpu.matmul %623, %625, %cst_222 {dimension_numbers = #tpu.dot_dimension_numbers<[1], [0], [0], [1], [0, 0, 1, 1], [], []>} : vector<8x32xf32>, vector<32x64xf32>, vector<8x64xf32> -> vector<8x64xf32>
    %627 = vector.extract_strided_slice %626 {offsets = [0, 0], sizes = [8, 32], strides = [1, 1]} : vector<8x64xf32> to vector<8x32xf32>
    %628 = arith.negf %627 : vector<8x32xf32>
    %629 = math.exp %628 : vector<8x32xf32>
    %cst_223 = arith.constant 1.000000e+00 : f32
    %630 = vector.broadcast %cst_223 : f32 to vector<8x32xf32>
    %631 = arith.addf %630, %629 : vector<8x32xf32>
    %632 = arith.divf %630, %631 : vector<8x32xf32>
    %633 = vector.extract_strided_slice %626 {offsets = [0, 32], sizes = [8, 32], strides = [1, 1]} : vector<8x64xf32> to vector<8x32xf32>
    %cst_224 = arith.constant 0.000000e+00 : f32
    %634 = vector.broadcast %cst_224 : f32 to vector<8x32xf32>
    %635 = arith.maximumf %633, %634 : vector<8x32xf32>
    %636 = arith.subf %635, %623 : vector<8x32xf32>
    %637 = arith.mulf %632, %636 : vector<8x32xf32>
    %638 = arith.addf %623, %637 : vector<8x32xf32>
    %c2_225 = arith.constant 2 : index
    %c0_226 = arith.constant 0 : index
    %c0_227 = arith.constant 0 : index
    %639 = vector.load %arg5[%c2_225, %c0_226, %c0_227] : memref<4x32x64xf32, #tpu.memory_space<vmem>>, vector<1x32x64xf32>
    %640 = vector.shape_cast %639 : vector<1x32x64xf32> to vector<32x64xf32>
    %cst_228 = arith.constant dense<0.000000e+00> : vector<8x64xf32>
    %641 = tpu.matmul %623, %640, %cst_228 {dimension_numbers = #tpu.dot_dimension_numbers<[1], [0], [0], [1], [0, 0, 1, 1], [], []>} : vector<8x32xf32>, vector<32x64xf32>, vector<8x64xf32> -> vector<8x64xf32>
    %642 = vector.extract_strided_slice %641 {offsets = [0, 0], sizes = [8, 32], strides = [1, 1]} : vector<8x64xf32> to vector<8x32xf32>
    %643 = arith.negf %642 : vector<8x32xf32>
    %644 = math.exp %643 : vector<8x32xf32>
    %cst_229 = arith.constant 1.000000e+00 : f32
    %645 = vector.broadcast %cst_229 : f32 to vector<8x32xf32>
    %646 = arith.addf %645, %644 : vector<8x32xf32>
    %647 = arith.divf %645, %646 : vector<8x32xf32>
    %648 = vector.extract_strided_slice %641 {offsets = [0, 32], sizes = [8, 32], strides = [1, 1]} : vector<8x64xf32> to vector<8x32xf32>
    %649 = arith.negf %648 : vector<8x32xf32>
    %650 = math.exp %649 : vector<8x32xf32>
    %cst_230 = arith.constant 1.000000e+00 : f32
    %651 = vector.broadcast %cst_230 : f32 to vector<8x32xf32>
    %652 = arith.addf %651, %650 : vector<8x32xf32>
    %653 = arith.divf %651, %652 : vector<8x32xf32>
    %654 = arith.subf %653, %623 : vector<8x32xf32>
    %655 = arith.mulf %647, %654 : vector<8x32xf32>
    %656 = arith.addf %623, %655 : vector<8x32xf32>
    %c3_231 = arith.constant 3 : index
    %c0_232 = arith.constant 0 : index
    %c0_233 = arith.constant 0 : index
    %657 = vector.load %arg5[%c3_231, %c0_232, %c0_233] : memref<4x32x64xf32, #tpu.memory_space<vmem>>, vector<1x32x64xf32>
    %658 = vector.shape_cast %657 : vector<1x32x64xf32> to vector<32x64xf32>
    %cst_234 = arith.constant dense<0.000000e+00> : vector<8x64xf32>
    %659 = tpu.matmul %638, %658, %cst_234 {dimension_numbers = #tpu.dot_dimension_numbers<[1], [0], [0], [1], [0, 0, 1, 1], [], []>} : vector<8x32xf32>, vector<32x64xf32>, vector<8x64xf32> -> vector<8x64xf32>
    %660 = vector.extract_strided_slice %659 {offsets = [0, 0], sizes = [8, 32], strides = [1, 1]} : vector<8x64xf32> to vector<8x32xf32>
    %661 = arith.negf %660 : vector<8x32xf32>
    %662 = math.exp %661 : vector<8x32xf32>
    %cst_235 = arith.constant 1.000000e+00 : f32
    %663 = vector.broadcast %cst_235 : f32 to vector<8x32xf32>
    %664 = arith.addf %663, %662 : vector<8x32xf32>
    %665 = arith.divf %663, %664 : vector<8x32xf32>
    %666 = vector.extract_strided_slice %659 {offsets = [0, 32], sizes = [8, 32], strides = [1, 1]} : vector<8x64xf32> to vector<8x32xf32>
    %667 = arith.subf %666, %638 : vector<8x32xf32>
    %668 = arith.mulf %665, %667 : vector<8x32xf32>
    %669 = arith.addf %638, %668 : vector<8x32xf32>
    %670 = arith.addf %623, %638 : vector<8x32xf32>
    %671 = arith.addf %670, %656 : vector<8x32xf32>
    %672 = arith.addf %671, %669 : vector<8x32xf32>
    %cst_236 = arith.constant 2.500000e-01 : f32
    %673 = vector.broadcast %cst_236 : f32 to vector<8x32xf32>
    %674 = arith.mulf %672, %673 : vector<8x32xf32>
    %c7 = arith.constant 7 : index
    %c0_237 = arith.constant 0 : index
    %c0_238 = arith.constant 0 : index
    %675 = vector.load %arg6[%c7, %c0_237, %c0_238] : memref<8x8x32xf32, #tpu.memory_space<vmem>>, vector<1x8x32xf32>
    %676 = vector.shape_cast %675 : vector<1x8x32xf32> to vector<8x32xf32>
    %677 = vector.shape_cast %674 : vector<8x32xf32> to vector<1x8x32xf32>
    tpu.vector_store %arg6[%c7, %c0_237, %c0_238], %677 {strides = array<i32>} : memref<8x8x32xf32, #tpu.memory_space<vmem>>, vector<1x8x32xf32>,
    return
  }
  func.func @transform_0(%arg0: i32) -> (i32, i32, i32) {
    %c0_i32 = arith.constant 0 : i32
    %c0_i32_0 = arith.constant 0 : i32
    %c0_i32_1 = arith.constant 0 : i32
    %c0_i32_2 = arith.constant 0 : i32
    return %c0_i32, %c0_i32_0, %c0_i32_1 : i32, i32, i32
  }
  func.func @transform_1(%arg0: i32) -> (i32, i32) {
    %c0_i32 = arith.constant 0 : i32
    %c0_i32_0 = arith.constant 0 : i32
    %c0_i32_1 = arith.constant 0 : i32
    return %c0_i32, %c0_i32_0 : i32, i32
  }
  func.func @transform_2(%arg0: i32) -> (i32, i32) {
    %c0_i32 = arith.constant 0 : i32
    %c0_i32_0 = arith.constant 0 : i32
    %c0_i32_1 = arith.constant 0 : i32
    return %c0_i32, %c0_i32_0 : i32, i32
  }
  func.func @transform_3(%arg0: i32) -> (i32, i32) {
    %c0_i32 = arith.constant 0 : i32
    %c0_i32_0 = arith.constant 0 : i32
    %c0_i32_1 = arith.constant 0 : i32
    return %c0_i32, %c0_i32_0 : i32, i32
  }
  func.func @transform_4(%arg0: i32) -> (i32, i32, i32) {
    %c0_i32 = arith.constant 0 : i32
    %c0_i32_0 = arith.constant 0 : i32
    %c0_i32_1 = arith.constant 0 : i32
    %c0_i32_2 = arith.constant 0 : i32
    return %c0_i32, %c0_i32_0, %c0_i32_1 : i32, i32, i32
  }
  func.func @transform_5(%arg0: i32) -> (i32, i32, i32) {
    %c0_i32 = arith.constant 0 : i32
    %c0_i32_0 = arith.constant 0 : i32
    %c0_i32_1 = arith.constant 0 : i32
    %c0_i32_2 = arith.constant 0 : i32
    return %c0_i32, %c0_i32_0, %c0_i32_1 : i32, i32, i32
  }
}

</mosaic_0001>

<bundles_post_ra>
// kernel: tpu_custom_call.1
= control target key start
LH: loop header
LB: loop body
LE: loop exit
PB: predicated region body
PF: predicated region fallthrough
CT: control target
= control target key end

     0   :  { %10 = vsyncpa [#allocation3], 0  ;;  %s5855_s0 = inlined_call_operand.hbm [shape: f32[8,8,32], index: 0, kind: input, shape index: {}]   ;;  %s5856_s1 = inlined_call_operand.hbm [shape: f32[8,32], index: 1, kind: input, shape index: {}]   ;;  %s5857_s2 = inlined_call_operand.hbm [shape: f32[32,64], index: 2, kind: input, shape index: {}]   ;;  %s5858_s3 = inlined_call_operand.hbm [shape: f32[32,64], index: 3, kind: input, shape index: {}]   ;;  %s5859_s4 = inlined_call_operand.hbm [shape: f32[4,32,64], index: 4, kind: input, shape index: {}]   ;;  %s5860_s5 = inlined_call_operand.hbm [shape: f32[8,8,32], index: 5, kind: output, shape index: {}]  }
   0x1   :  { %11 = vsyncpa [#allocation6], 0 }
   0x2   :  { %12 = vsyncpa [#allocation9], 0 }
   0x3   :  { %13 = vsyncpa [#allocation4], 0  ;;  %s5095_s18 = smov [#allocation5]  }
   0x4   :  { %s32_s19 = sshll.u32 %s5095_s18, 4  ;;  %s33_s19 = int_to_ptr.vmem [resolvable:$true] %s32_s19 }
   0x5   :  { %s4975_s20 = scalar_lea.vmem %s33_s19, 128  ;;  %p4980_p1 = scmp.lt.s32.totalorder %s33_s19, %s33_s19 }
   0x6   :  { %p4976_p0 = scmp.ne.s32.totalorder %s33_s19, %s4975_s20  ;;  %p4981_p2 = scmp.lt.s32.totalorder %s4975_s20, %s4975_s20 }
   0x8   :  { %p4982_p3 = por %p4981_p2, %p4980_p1 }
   0xa   :  { %p4983_p4 = pnand %p4982_p3, %p4976_p0 }
   0xc   :  { %4986 = shalt.err (!%p4983_p4)
}
   0xd   :  { %35 = dma.hbm_to_vmem [thread:$0]  %s5856_s1, 128, %s33_s19, [#allocation6]  }
   0xe   :  { %s5096_s23 = smov [#allocation8]   ;;  %s5097_s25 = smov [#allocation2]  }
   0xf   :  { %s53_s24 = sshll.u32 %s5096_s23, 4  ;;  %s19_s26 = sshll.u32 %s5097_s25, 4  ;;  %s54_s24 = int_to_ptr.vmem [resolvable:$true] %s53_s24  ;;  %s20_s26 = int_to_ptr.vmem [resolvable:$true] %s19_s26 }
  0x10   :  { %s4995_s27 = scalar_lea.vmem %s54_s24, 512  ;;  %p5000_p6 = scmp.lt.s32.totalorder %s54_s24, %s54_s24 }
  0x11   :  { %p4996_p5 = scmp.ne.s32.totalorder %s54_s24, %s4995_s27  ;;  %p5001_p7 = scmp.lt.s32.totalorder %s4995_s27, %s4995_s27 }
  0x13   :  { %p5002_p8 = por %p5001_p7, %p5000_p6 }
  0x15   :  { %p5003_p9 = pnand %p5002_p8, %p4996_p5 }
  0x17   :  { %5006 = shalt.err (!%p5003_p9)
}
  0x18   :  { %s5098_s28 = smov 128   ;;  %s5099_s29 = smov 8  }
  0x19   :  { %59 = dma.hbm_to_vmem [thread:$0]  %s5858_s3, 512, %s54_s24, [#allocation9], %s5098_s28, %s5098_s28, %s5099_s29  }
  0x1a   :  { %s5015_s1 = scalar_lea.vmem %s20_s26, 1024  ;;  %p5020_p11 = scmp.lt.s32.totalorder %s20_s26, %s20_s26 }
  0x1b   :  { %p5016_p10 = scmp.ne.s32.totalorder %s20_s26, %s5015_s1  ;;  %p5021_p12 = scmp.lt.s32.totalorder %s5015_s1, %s5015_s1 }
  0x1d   :  { %p5022_p13 = por %p5021_p12, %p5020_p11 }
  0x1f   :  { %p5023_p0 = pnand %p5022_p13, %p5016_p10 }
  0x21   :  { %5026 = shalt.err (!%p5023_p0)
}
  0x22   :  { %25 = dma.hbm_to_vmem [thread:$0]  %s5855_s0, 1024, %s20_s26, [#allocation3], %s5098_s28, %s5098_s28, %s5099_s29  }
  0x23   :  { %s5100_s9 = smov [#allocation7]   ;;  %s5101_s11 = smov [#allocation10]  }
  0x24   :  { %s41_s10 = sshll.u32 %s5100_s9, 4  ;;  %s65_s3 = sshll.u32 %s5101_s11, 4  ;;  %s42_s10 = int_to_ptr.vmem [resolvable:$true] %s41_s10  ;;  %s66_s3 = int_to_ptr.vmem [resolvable:$true] %s65_s3 }
  0x25   :  { %s5035_s12 = scalar_lea.vmem %s42_s10, 512  ;;  %p5040_p2 = scmp.lt.s32.totalorder %s42_s10, %s42_s10 }
  0x26   :  { %p5036_p1 = scmp.ne.s32.totalorder %s42_s10, %s5035_s12  ;;  %p5041_p3 = scmp.lt.s32.totalorder %s5035_s12, %s5035_s12 }
  0x28   :  { %p5042_p4 = por %p5041_p3, %p5040_p2 }
  0x2a   :  { %p5043_p5 = pnand %p5042_p4, %p5036_p1 }
  0x2c   :  { %5046 = shalt.err (!%p5043_p5)
}
  0x2d   :  { %47 = dma.hbm_to_vmem [thread:$0]  %s5857_s2, 512, %s42_s10, [#allocation6], %s5098_s28, %s5098_s28, %s5099_s29  }
  0x2e   :  { %s5055_s0 = scalar_lea.vmem %s66_s3, 2048  ;;  %p5060_p7 = scmp.lt.s32.totalorder %s66_s3, %s66_s3 }
  0x2f   :  { %p5056_p6 = scmp.ne.s32.totalorder %s66_s3, %s5055_s0  ;;  %p5061_p8 = scmp.lt.s32.totalorder %s5055_s0, %s5055_s0 }
  0x31   :  { %p5062_p9 = por %p5061_p8, %p5060_p7 }
  0x33   :  { %p5063_p10 = pnand %p5062_p9, %p5056_p6 }
  0x35   :  { %5066 = shalt.err (!%p5063_p10)
}
  0x36   :  { %71 = dma.hbm_to_vmem [thread:$0]  %s5859_s4, 2048, %s66_s3, [#allocation9], %s5098_s28, %s5098_s28, %s5099_s29  }
  0x37   :  { %5087 = dma.done.wait [#allocation3], 1024  }
  0x38   :  { %5088 = vsyncadd [#allocation3], 4294966272 }
  0x39   :  { %5089 = dma.done.wait [#allocation6], 640  }
  0x3a   :  { %5090 = vsyncadd [#allocation6], 4294966656 }
  0x3b   :  { %5091 = dma.done.wait [#allocation9], 2560  }
  0x3c   :  { %5092 = vsyncadd [#allocation9], 4294964736  ;;  %v5102_v0 = vmov 0.0   ;;  %vm5103_vm0 = vmmov 0   ;;  %v98_v1 = vld [vmem:[#allocation7 + $0x18] sm:$0xff]  ;;  %v97_v3 = vld [vmem:[#allocation7 + $0x10] sm:$0xff] }
  0x3d   :  { %4323 = vmatprep.subr.mxu1 %v5102_v0  ;;  %4331 = vmatprep.mubr.msk.f32.mxu1 %vm5103_vm0, %v5102_v0  ;;  %v5167_v2 = vld [vmem:[#allocation8 + $0x18] sm:$0xff]  ;;  %v5170_v4 = vld [vmem:[#allocation8 + $0x10] sm:$0xff]  ;;  %v96_v5 = vld [vmem:[#allocation7 + $0x8] sm:$0xff]  ;;  %vm99_vm1 = vcmask 261120   ;;  %s5104_s2 = smov 32   ;;  %s5105_s4 = smov 96  }
  0x3e   :  { %4303 = vmatprep.subr.mxu0 %v98_v1  ;;  %4324 = vmatpush3.msra.mxu1 %v5167_v2  ;;  %v5173_v6 = vld [vmem:[#allocation8 + $0x8] sm:$0xff]  ;;  %v95_v7 = vld [vmem:[#allocation7] sm:$0xff]  ;;  %v87_v8 = vld [vmem:[#allocation2] sm:$0xff]  ;;  %s5106_s17 = smov [#allocation11]  }
  0x3f   :  { %4304 = vmatpush3.msra.mxu0 %v98_v1  ;;  %4325 = vmatprep.subr.mxu1 %v5102_v0  ;;  %v5178_v9 = vld [vmem:[#allocation8] sm:$0xff]  ;;  %v229_v11 = vld [vmem:[#allocation5] sm:$0xff]  ;;  %v5192_v13 = vld [vmem:[#allocation10 + $0x10] sm:$0xff]  ;;  %s3989_s18 = sshll.u32 %s5106_s17, 4  ;;  %s3990_s18 = int_to_ptr.vmem [resolvable:$true] %s3989_s18 }
  0x40   :  { %4305 = vmatprep.subr.mxu0 %v97_v3  ;;  %4326 = vmatpush3.msra.mxu1 %v5170_v4  ;;  %v88_v10 = vld [vmem:[#allocation2 + $0x8] sm:$0xff]  ;;  %v5190_v12 = vld [vmem:[#allocation10 + $0x18] sm:$0xff]  ;;  %v5200_v19 = vld [vmem:[#allocation10 + $0x8] sm:$0xff]  ;;  %s5067_s19 = scalar_lea.vmem %s3990_s18, 1024  ;;  %p5072_p12 = scmp.lt.s32.totalorder %s3990_s18, %s3990_s18 }
  0x41   :  { %4306 = vmatpush3.msra.mxu0 %v97_v3  ;;  %4327 = vmatprep.subr.mxu1 %v5102_v0  ;;  %v5204_v20 = vld [vmem:[#allocation10] sm:$0xff]  ;;  %v5213_v31 = vld [vmem:[#allocation10 + $0x38] sm:$0xff]  ;;  %v89_v32 = vld [vmem:[#allocation2 + $0x10] sm:$0xff]  ;;  %p5068_p11 = scmp.ne.s32.totalorder %s3990_s18, %s5067_s19  ;;  %p5073_p13 = scmp.lt.s32.totalorder %s5067_s19, %s5067_s19 }
  0x42   :  { %4307 = vmatprep.subr.mxu0 %v96_v5  ;;  %4328 = vmatpush3.msra.mxu1 %v5173_v6  ;;  %v90_v33 = vld [vmem:[#allocation2 + $0x18] sm:$0xff]  ;;  %v91_v35 = vld [vmem:[#allocation2 + $0x20] sm:$0xff]  ;;  %v5221_v36 = vld [vmem:[#allocation10 + $0x28] sm:$0xff] }
  0x43   :  { %4308 = vmatpush3.msra.mxu0 %v96_v5  ;;  %4329 = vmatprep.subr.mxu1 %v5102_v0  ;;  %v5217_v34 = vld [vmem:[#allocation10 + $0x30] sm:$0xff]  ;;  %v5223_v37 = vld [vmem:[#allocation10 + $0x58] sm:$0xff]  ;;  %v92_v38 = vld [vmem:[#allocation2 + $0x28] sm:$0xff]  ;;  %p5074_p0 = por %p5073_p13, %p5072_p12 }
  0x44   :  { %4309 = vmatprep.subr.mxu0 %v95_v7  ;;  %4311 = vmatprep.mubr.msk.f32.mxu0 %vm99_vm1, %v87_v8  ;;  %v93_v39 = vld [vmem:[#allocation2 + $0x30] sm:$0xff]  ;;  %v5229_v40 = vld [vmem:[#allocation10 + $0x50] sm:$0xff]  ;;  %v5244_v45 = vld [vmem:[#allocation10 + $0x20] sm:$0xff] }
  0x45   :  { %4310 = vmatpush3.msra.mxu0 %v95_v7  ;;  %4330 = vmatpush3.msra.mxu1 %v5178_v9  ;;  %v94_v41 = vld [vmem:[#allocation2 + $0x38] sm:$0xff]  ;;  %v5241_v44 = vld [vmem:[#allocation10 + $0x48] sm:$0xff]  ;;  %v5247_v46 = vld [vmem:[#allocation10 + $0x40] sm:$0xff]  ;;  %p5075_p1 = pnand %p5074_p0, %p5068_p11 }
  0x46   :  { %4312 = vmatmul.mubr.msk.f32.vlgmr.msra.gmra.mxu0 %vm99_vm1, %v88_v10  ;;  %4332 = vmatmul.mubr.msk.f32.vlgmr.msra.gmra.mxu1 %vm99_vm1, %v229_v11  ;;  %v5274_v57 = vld [vmem:[#allocation10 + $0x78] sm:$0xff]  ;;  %v5276_v58 = vld [vmem:[#allocation10 + $0x70] sm:$0xff]  ;;  %v5290_v63 = vld [vmem:[#allocation10 + $0x68] sm:$0xff] }
  0x47   :  { %315 = vrot.lane.b32.xlu0 %v229_v11, %s5104_s2  ;;  %4334 = vmatprep.subr.mxu1 %v5102_v0  ;;  %v5295_v3 = vld [vmem:[#allocation10 + $0x60] sm:$0xff] }
  0x48   :  { %4342 = vmatprep.mubr.msk.f32.mxu1 %vm5103_vm0, %v5102_v0  ;;  %4345 = vmatprep.subr.mxu0 %v5102_v0 }
  0x49   :  { %4335 = vmatpush3.msra.mxu1 %v5190_v12  ;;  %4346 = vmatpush3.msra.mxu0 %v5213_v31 }
  0x4a   :  { %4336 = vmatprep.subr.mxu1 %v5102_v0  ;;  %4314 = vmatprep.mubr.msk.f32.mxu0 %vm99_vm1, %v89_v32 }
  0x4b   :  { %4337 = vmatpush3.msra.mxu1 %v5192_v13  ;;  %4315 = vmatmul.mubr.msk.f32.gmra.mxu0 %vm99_vm1, %v90_v33 }
  0x4c   :  { %4338 = vmatprep.subr.mxu1 %v5102_v0  ;;  %4347 = vmatprep.subr.mxu0 %v5102_v0 }
  0x4d   :  { %4339 = vmatpush3.msra.mxu1 %v5200_v19  ;;  %4348 = vmatpush3.msra.mxu0 %v5217_v34 }
  0x4e   :  { %4340 = vmatprep.subr.mxu1 %v5102_v0  ;;  %4317 = vmatprep.mubr.msk.f32.mxu0 %vm99_vm1, %v91_v35 }
  0x4f   :  { %4341 = vmatpush3.msra.mxu1 %v5204_v20  ;;  %4349 = vmatprep.subr.mxu0 %v5102_v0 }
  0x50   :  { %4356 = vmatprep.subr.mxu1 %v5102_v0  ;;  %4350 = vmatpush3.msra.mxu0 %v5221_v36 }
  0x51   :  { %4318 = vmatmul.mubr.msk.f32.gmra.mxu0 %vm99_vm1, %v92_v38  ;;  %4351 = vmatprep.subr.mxu0 %v5102_v0 }
  0x52   :  { %4320 = vmatprep.mubr.msk.f32.mxu0 %vm99_vm1, %v93_v39  ;;  %4352 = vmatpush3.msra.mxu0 %v5244_v45 }
  0x53   :  { %4367 = vmatprep.subr.mxu0 %v5102_v0 }
  0x55   :  { %4321 = vmatmul.mubr.msk.f32.gmra.mxu0 %vm99_vm1, %v94_v41 }
  0x56   :  { %4353 = vmatprep.mubr.msk.f32.mxu0 %vm5103_vm0, %v5102_v0 }
  0xb9   :  { %v316_v21 = vpop.permute.xlu0 %315 }
 0x106   :  { %v5198_v14 = vpop.f32.mrf.mxu0  ;;  %v303_v15 = vpop.f32.mrf.mxu1 }
 0x108   :  { %v190_v16 = vpop.f32.mrf.mxu0  ;;  %v4333_v17 = vpop.f32.mrf.mxu1 }
 0x109   :  { %v307_v18 = vadd.f32 %v303_v15, %v190_v16 }
 0x10b   :  { %4775 = vtanh.f32 %v307_v18  ;;  %v4012_v24 = vmul.f32 -1.442695, %v307_v18  ;;  %v5282_v59 = vpop.f32.mrf.mxu0 }
 0x10d   :  { %4777 = vpow2.f32 %v4012_v24  ;;  %v5284_v60 = vpop.f32.mrf.mxu0 }
 0x111   :  { %v5286_v61 = vpop.f32.mrf.mxu0 }
 0x113   :  { %v5288_v62 = vpop.f32.mrf.mxu0 }
 0x115   :  { %v5292_v1 = vpop.f32.mrf.mxu0 }
 0x117   :  { %v5300_v5 = vpop.f32.mrf.mxu0 }
 0x118   :  { %v4776_v22 = vpop.eup %4775 }
 0x119   :  { %v318_v23 = vsub.f32 %v4776_v22, %v316_v21 }
 0x11a   :  { %v4778_v25 = vpop.eup %4777 }
 0x11b   :  { %320 = vrot.lane.b32.xlu0 %v318_v23, %s5105_s4  ;;  %v311_v26 = vadd.f32 1.0, %v4778_v25 }
 0x11d   :  { %4779 = vrcp.f32 %v311_v26 }
 0x12a   :  { %v4780_v27 = vpop.eup %4779 }
 0x18d   :  { %v321_v28 = vpop.permute.xlu0 %320 }
 0x18e   :  { %v323_v29 = vmul.f32 %v4780_v27, %v321_v28 }
 0x190   :  { %v324_v30 = vadd.f32 %v323_v29, %v229_v11 }
 0x192   :  { %409 = vrot.lane.b32.xlu1 %v324_v30, %s5104_s2  ;;  %4343 = vmatmul.mubr.msk.f32.vlgmr.msra.gmra.mxu1 %vm99_vm1, %v324_v30 }
 0x193   :  { %4364 = vmatprep.mubr.msk.f32.mxu1 %vm5103_vm0, %v5102_v0  ;;  %4357 = vmatpush3.msra.mxu1 %v5223_v37 }
 0x194   :  { %4358 = vmatprep.subr.mxu1 %v5102_v0 }
 0x195   :  { %4359 = vmatpush3.msra.mxu1 %v5229_v40 }
 0x196   :  { %4360 = vmatprep.subr.mxu1 %v5102_v0 }
 0x197   :  { %4361 = vmatpush3.msra.mxu1 %v5241_v44 }
 0x198   :  { %4362 = vmatprep.subr.mxu1 %v5102_v0 }
 0x199   :  { %4363 = vmatpush3.msra.mxu1 %v5247_v46 }
 0x19a   :  { %4378 = vmatprep.subr.mxu1 %v5102_v0 }
 0x204   :  { %v410_v48 = vpop.permute.xlu1 %409 }
 0x252   :  { %v398_v42 = vpop.f32.mrf.mxu1 }
 0x253   :  { %4781 = vtanh.f32 %v398_v42  ;;  %v4014_v50 = vmul.f32 -1.442695, %v398_v42 }
 0x254   :  { %v4344_v43 = vpop.f32.mrf.mxu1 }
 0x255   :  { %4783 = vpow2.f32 %v4014_v50 }
 0x260   :  { %v4782_v47 = vpop.eup %4781 }
 0x261   :  { %v412_v49 = vsub.f32 %v4782_v47, %v410_v48 }
 0x262   :  { %v4784_v51 = vpop.eup %4783 }
 0x263   :  { %414 = vrot.lane.b32.xlu1 %v412_v49, %s5105_s4  ;;  %v405_v52 = vadd.f32 1.0, %v4784_v51 }
 0x265   :  { %4785 = vrcp.f32 %v405_v52 }
 0x272   :  { %v4786_v53 = vpop.eup %4785 }
 0x2d5   :  { %v415_v54 = vpop.permute.xlu1 %414 }
 0x2d6   :  { %v417_v55 = vmul.f32 %v4786_v53, %v415_v54 }
 0x2d8   :  { %v5254_v56 = vadd.f32 %v417_v55, %v324_v30 }
 0x2da   :  { %504 = vrot.lane.b32.xlu0 %v5254_v56, %s5104_s2  ;;  %4354 = vmatmul.mubr.msk.f32.vlgmr.msra.gmra.mxu0 %vm99_vm1, %v5254_v56 }
 0x2db   :  { %4365 = vmatmul.mubr.msk.f32.vlgmr.msra.gmra.mxu1 %vm99_vm1, %v5254_v56  ;;  %4375 = vmatprep.mubr.msk.f32.mxu0 %vm5103_vm0, %v5102_v0 }
 0x2dc   :  { %4379 = vmatpush3.msra.mxu1 %v5167_v2  ;;  %4386 = vmatprep.mubr.msk.f32.mxu1 %vm5103_vm0, %v5102_v0 }
 0x2dd   :  { %4380 = vmatprep.subr.mxu1 %v5102_v0  ;;  %4368 = vmatpush3.msra.mxu0 %v5274_v57 }
 0x2de   :  { %4381 = vmatpush3.msra.mxu1 %v5170_v4  ;;  %4369 = vmatprep.subr.mxu0 %v5102_v0 }
 0x2df   :  { %4382 = vmatprep.subr.mxu1 %v5102_v0  ;;  %4370 = vmatpush3.msra.mxu0 %v5276_v58 }
 0x2e0   :  { %4383 = vmatpush3.msra.mxu1 %v5173_v6  ;;  %4371 = vmatprep.subr.mxu0 %v5102_v0 }
 0x2e1   :  { %4384 = vmatprep.subr.mxu1 %v5102_v0  ;;  %4372 = vmatpush3.msra.mxu0 %v5290_v63 }
 0x2e2   :  { %4385 = vmatpush3.msra.mxu1 %v5178_v9  ;;  %4373 = vmatprep.subr.mxu0 %v5102_v0 }
 0x2e3   :  { %4400 = vmatprep.subr.mxu1 %v5102_v0  ;;  %4374 = vmatpush3.msra.mxu0 %v5295_v3 }
 0x2e4   :  { %4389 = vmatprep.subr.mxu0 %v5102_v0 }
 0x34c   :  { %v505_v11 = vpop.permute.xlu0 %504 }
 0x39a   :  { %v493_v7 = vpop.f32.mrf.mxu0 }
 0x39b   :  { %v503_v8 = vmax.f32 %v493_v7, 0.0  ;;  %v585_v10 = vpop.f32.mrf.mxu1  ;;  %v4016_v25 = vmul.f32 -1.442695, %v493_v7 }
 0x39c   :  { %v4018_v15 = vmul.f32 -1.442695, %v585_v10  ;;  %v4355_v16 = vpop.f32.mrf.mxu0 }
 0x39d   :  { %v507_v17 = vsub.f32 %v503_v8, %v505_v11  ;;  %v4366_v18 = vpop.f32.mrf.mxu1 }
 0x39e   :  { %4787 = vpow2.f32 %v4018_v15 }
 0x39f   :  { %509 = vrot.lane.b32.xlu1 %v507_v17, %s5105_s4 }
 0x3ab   :  { %v4788_v21 = vpop.eup %4787 }
 0x3ac   :  { %v592_v22 = vadd.f32 1.0, %v4788_v21 }
 0x3ae   :  { %4789 = vrcp.f32 %v592_v22 }
 0x3af   :  { %4791 = vpow2.f32 %v4016_v25 }
 0x3bb   :  { %v4790_v23 = vpop.eup %4789 }
 0x3bc   :  { %v595_v24 = vsub.f32 %v4790_v23, %v505_v11  ;;  %v4792_v26 = vpop.eup %4791 }
 0x3bd   :  { %v500_v27 = vadd.f32 1.0, %v4792_v26 }
 0x3be   :  { %597 = vrot.lane.b32.xlu1 %v595_v24, %s5105_s4 }
 0x3bf   :  { %4793 = vrcp.f32 %v500_v27 }
 0x3cc   :  { %v4794_v28 = vpop.eup %4793 }
 0x411   :  { %v510_v29 = vpop.permute.xlu1 %509 }
 0x412   :  { %v512_v30 = vmul.f32 %v4794_v28, %v510_v29 }
 0x414   :  { %v513_v32 = vadd.f32 %v512_v30, %v5254_v56 }
 0x416   :  { %686 = vrot.lane.b32.xlu0 %v513_v32, %s5104_s2  ;;  %4376 = vmatmul.mubr.msk.f32.vlgmr.msra.gmra.mxu0 %vm99_vm1, %v513_v32  ;;  %v696_v52 = vadd.f32 %v513_v32, %v5254_v56 }
 0x417   :  { %4390 = vmatpush3.msra.mxu0 %v5190_v12  ;;  %4397 = vmatprep.mubr.msk.f32.mxu0 %vm5103_vm0, %v5102_v0 }
 0x418   :  { %4391 = vmatprep.subr.mxu0 %v5102_v0 }
 0x419   :  { %4392 = vmatpush3.msra.mxu0 %v5192_v13 }
 0x41a   :  { %4393 = vmatprep.subr.mxu0 %v5102_v0 }
 0x41b   :  { %4394 = vmatpush3.msra.mxu0 %v5200_v19 }
 0x41c   :  { %4395 = vmatprep.subr.mxu0 %v5102_v0 }
 0x41d   :  { %4396 = vmatpush3.msra.mxu0 %v5204_v20 }
 0x41e   :  { %4411 = vmatprep.subr.mxu0 %v5102_v0 }
 0x430   :  { %v598_v47 = vpop.permute.xlu1 %597 }
 0x431   :  { %v600_v48 = vmul.f32 %v4790_v23, %v598_v47 }
 0x433   :  { %v601_v49 = vadd.f32 %v600_v48, %v5254_v56 }
 0x435   :  { %v697_v54 = vadd.f32 %v696_v52, %v601_v49 }
 0x488   :  { %v687_v33 = vpop.permute.xlu0 %686 }
 0x4d6   :  { %v676_v35 = vpop.f32.mrf.mxu0 }
 0x4d7   :  { %v689_v38 = vsub.f32 %v676_v35, %v687_v33  ;;  %v4020_v41 = vmul.f32 -1.442695, %v676_v35 }
 0x4d8   :  { %v4377_v39 = vpop.f32.mrf.mxu0 }
 0x4d9   :  { %691 = vrot.lane.b32.xlu0 %v689_v38, %s5105_s4  ;;  %4795 = vpow2.f32 %v4020_v41 }
 0x4e6   :  { %v4796_v42 = vpop.eup %4795 }
 0x4e7   :  { %v683_v43 = vadd.f32 1.0, %v4796_v42 }
 0x4e9   :  { %4797 = vrcp.f32 %v683_v43 }
 0x4f6   :  { %v4798_v50 = vpop.eup %4797 }
 0x54b   :  { %v692_v51 = vpop.permute.xlu0 %691 }
 0x54c   :  { %v694_v53 = vmul.f32 %v4798_v50, %v692_v51 }
 0x54e   :  { %v695_v55 = vadd.f32 %v694_v53, %v513_v32 }
 0x550   :  { %v698_v7 = vadd.f32 %v697_v54, %v695_v55 }
 0x552   :  { %v699_v8 = vmul.f32 0.25, %v698_v7 }
 0x554   :  { %700 = vst.msk [vmem:[#allocation11] sm:$0xff] %vm99_vm1, %v699_v8  ;;  %786 = vrot.lane.b32.xlu1 %v699_v8, %s5104_s2  ;;  %4387 = vmatmul.mubr.msk.f32.vlgmr.msra.gmra.mxu1 %vm99_vm1, %v699_v8 }
 0x555   :  { %4401 = vmatpush3.msra.mxu1 %v5213_v31  ;;  %4408 = vmatprep.mubr.msk.f32.mxu1 %vm5103_vm0, %v5102_v0 }
 0x556   :  { %4402 = vmatprep.subr.mxu1 %v5102_v0 }
 0x557   :  { %4403 = vmatpush3.msra.mxu1 %v5217_v34 }
 0x558   :  { %4404 = vmatprep.subr.mxu1 %v5102_v0 }
 0x559   :  { %4405 = vmatpush3.msra.mxu1 %v5221_v36 }
 0x55a   :  { %4406 = vmatprep.subr.mxu1 %v5102_v0 }
 0x55b   :  { %4407 = vmatpush3.msra.mxu1 %v5244_v45 }
 0x55c   :  { %4422 = vmatprep.subr.mxu1 %v5102_v0 }
 0x5c6   :  { %v787_v16 = vpop.permute.xlu1 %786 }
 0x614   :  { %v774_v56 = vpop.f32.mrf.mxu1 }
 0x615   :  { %v778_v10 = vadd.f32 %v5198_v14, %v774_v56 }
 0x616   :  { %v4388_v11 = vpop.f32.mrf.mxu1 }
 0x617   :  { %4799 = vtanh.f32 %v778_v10  ;;  %v4022_v18 = vmul.f32 -1.442695, %v778_v10 }
 0x619   :  { %4801 = vpow2.f32 %v4022_v18 }
 0x624   :  { %v4800_v15 = vpop.eup %4799 }
 0x625   :  { %v789_v17 = vsub.f32 %v4800_v15, %v787_v16 }
 0x626   :  { %v4802_v21 = vpop.eup %4801 }
 0x627   :  { %791 = vrot.lane.b32.xlu0 %v789_v17, %s5105_s4  ;;  %v782_v22 = vadd.f32 1.0, %v4802_v21 }
 0x629   :  { %4803 = vrcp.f32 %v782_v22 }
 0x636   :  { %v4804_v23 = vpop.eup %4803 }
 0x699   :  { %v792_v24 = vpop.permute.xlu0 %791 }
 0x69a   :  { %v794_v25 = vmul.f32 %v4804_v23, %v792_v24 }
 0x69c   :  { %v795_v26 = vadd.f32 %v794_v25, %v699_v8 }
 0x69e   :  { %880 = vrot.lane.b32.xlu1 %v795_v26, %s5104_s2  ;;  %4398 = vmatmul.mubr.msk.f32.vlgmr.msra.gmra.mxu0 %vm99_vm1, %v795_v26 }
 0x69f   :  { %4412 = vmatpush3.msra.mxu0 %v5223_v37  ;;  %4419 = vmatprep.mubr.msk.f32.mxu0 %vm5103_vm0, %v5102_v0 }
 0x6a0   :  { %4413 = vmatprep.subr.mxu0 %v5102_v0 }
 0x6a1   :  { %4414 = vmatpush3.msra.mxu0 %v5229_v40 }
 0x6a2   :  { %4415 = vmatprep.subr.mxu0 %v5102_v0 }
 0x6a3   :  { %4416 = vmatpush3.msra.mxu0 %v5241_v44 }
 0x6a4   :  { %4417 = vmatprep.subr.mxu0 %v5102_v0 }
 0x6a5   :  { %4418 = vmatpush3.msra.mxu0 %v5247_v46 }
 0x6a6   :  { %4433 = vmatprep.subr.mxu0 %v5102_v0 }
 0x710   :  { %v881_v29 = vpop.permute.xlu1 %880 }
 0x75e   :  { %v869_v14 = vpop.f32.mrf.mxu0 }
 0x75f   :  { %4805 = vtanh.f32 %v869_v14  ;;  %v4024_v32 = vmul.f32 -1.442695, %v869_v14 }
 0x760   :  { %v4399_v27 = vpop.f32.mrf.mxu0 }
 0x761   :  { %4807 = vpow2.f32 %v4024_v32 }
 0x76c   :  { %v4806_v28 = vpop.eup %4805 }
 0x76d   :  { %v883_v30 = vsub.f32 %v4806_v28, %v881_v29 }
 0x76e   :  { %v4808_v33 = vpop.eup %4807 }
 0x76f   :  { %885 = vrot.lane.b32.xlu0 %v883_v30, %s5105_s4  ;;  %v876_v35 = vadd.f32 1.0, %v4808_v33 }
 0x771   :  { %4809 = vrcp.f32 %v876_v35 }
 0x77e   :  { %v4810_v38 = vpop.eup %4809 }
 0x7e1   :  { %v886_v39 = vpop.permute.xlu0 %885 }
 0x7e2   :  { %v888_v41 = vmul.f32 %v4810_v38, %v886_v39 }
 0x7e4   :  { %v5348_v42 = vadd.f32 %v888_v41, %v795_v26 }
 0x7e6   :  { %974 = vrot.lane.b32.xlu1 %v5348_v42, %s5104_s2  ;;  %4409 = vmatmul.mubr.msk.f32.vlgmr.msra.gmra.mxu1 %vm99_vm1, %v5348_v42 }
 0x7e7   :  { %4420 = vmatmul.mubr.msk.f32.vlgmr.msra.gmra.mxu0 %vm99_vm1, %v5348_v42  ;;  %4423 = vmatpush3.msra.mxu1 %v5274_v57 }
 0x7e8   :  { %4424 = vmatprep.subr.mxu1 %v5102_v0  ;;  %4430 = vmatprep.mubr.msk.f32.mxu1 %vm5103_vm0, %v5102_v0 }
 0x7e9   :  { %4425 = vmatpush3.msra.mxu1 %v5276_v58  ;;  %4434 = vmatpush3.msra.mxu0 %v5167_v2 }
 0x7ea   :  { %4426 = vmatprep.subr.mxu1 %v5102_v0  ;;  %4435 = vmatprep.subr.mxu0 %v5102_v0 }
 0x7eb   :  { %4427 = vmatpush3.msra.mxu1 %v5290_v63  ;;  %4436 = vmatpush3.msra.mxu0 %v5170_v4 }
 0x7ec   :  { %4428 = vmatprep.subr.mxu1 %v5102_v0  ;;  %4437 = vmatprep.subr.mxu0 %v5102_v0 }
 0x7ed   :  { %4429 = vmatpush3.msra.mxu1 %v5295_v3  ;;  %4438 = vmatpush3.msra.mxu0 %v5173_v6 }
 0x7ee   :  { %4439 = vmatprep.subr.mxu0 %v5102_v0  ;;  %4441 = vmatprep.mubr.msk.f32.mxu0 %vm5103_vm0, %v5102_v0 }
 0x7ef   :  { %4440 = vmatpush3.msra.mxu0 %v5178_v9  ;;  %4444 = vmatprep.subr.mxu1 %v5102_v0 }
 0x7f0   :  { %4455 = vmatprep.subr.mxu0 %v5102_v0 }
 0x858   :  { %v975_v49 = vpop.permute.xlu1 %974 }
 0x8a6   :  { %v963_v43 = vpop.f32.mrf.mxu1 }
 0x8a7   :  { %v973_v47 = vmax.f32 %v963_v43, 0.0  ;;  %v1054_v48 = vpop.f32.mrf.mxu0  ;;  %v4026_v56 = vmul.f32 -1.442695, %v963_v43 }
 0x8a8   :  { %v4028_v50 = vmul.f32 -1.442695, %v1054_v48  ;;  %v4410_v51 = vpop.f32.mrf.mxu1 }
 0x8a9   :  { %v977_v52 = vsub.f32 %v973_v47, %v975_v49  ;;  %v4421_v53 = vpop.f32.mrf.mxu0 }
 0x8aa   :  { %4811 = vpow2.f32 %v4028_v50 }
 0x8ab   :  { %979 = vrot.lane.b32.xlu0 %v977_v52, %s5105_s4 }
 0x8b7   :  { %v4812_v54 = vpop.eup %4811 }
 0x8b8   :  { %v1061_v55 = vadd.f32 1.0, %v4812_v54 }
 0x8ba   :  { %4813 = vrcp.f32 %v1061_v55 }
 0x8bb   :  { %4815 = vpow2.f32 %v4026_v56 }
 0x8c7   :  { %v4814_v7 = vpop.eup %4813 }
 0x8c8   :  { %v1064_v8 = vsub.f32 %v4814_v7, %v975_v49  ;;  %v4816_v10 = vpop.eup %4815 }
 0x8c9   :  { %v970_v11 = vadd.f32 1.0, %v4816_v10 }
 0x8ca   :  { %1066 = vrot.lane.b32.xlu0 %v1064_v8, %s5105_s4 }
 0x8cb   :  { %4817 = vrcp.f32 %v970_v11 }
 0x8d8   :  { %v4818_v15 = vpop.eup %4817 }
 0x91d   :  { %v980_v16 = vpop.permute.xlu0 %979 }
 0x91e   :  { %v982_v17 = vmul.f32 %v4818_v15, %v980_v16 }
 0x920   :  { %v983_v18 = vadd.f32 %v982_v17, %v5348_v42 }
 0x922   :  { %1154 = vrot.lane.b32.xlu1 %v983_v18, %s5104_s2  ;;  %4431 = vmatmul.mubr.msk.f32.vlgmr.msra.gmra.mxu1 %vm99_vm1, %v983_v18  ;;  %v1164_v33 = vadd.f32 %v983_v18, %v5348_v42 }
 0x923   :  { %4445 = vmatpush3.msra.mxu1 %v5190_v12  ;;  %4452 = vmatprep.mubr.msk.f32.mxu1 %vm5103_vm0, %v5102_v0 }
 0x924   :  { %4446 = vmatprep.subr.mxu1 %v5102_v0 }
 0x925   :  { %4447 = vmatpush3.msra.mxu1 %v5192_v13 }
 0x926   :  { %4448 = vmatprep.subr.mxu1 %v5102_v0 }
 0x927   :  { %4449 = vmatpush3.msra.mxu1 %v5200_v19 }
 0x928   :  { %4450 = vmatprep.subr.mxu1 %v5102_v0 }
 0x929   :  { %4451 = vmatpush3.msra.mxu1 %v5204_v20 }
 0x92a   :  { %4466 = vmatprep.subr.mxu1 %v5102_v0 }
 0x93c   :  { %v1067_v27 = vpop.permute.xlu0 %1066 }
 0x93d   :  { %v1069_v28 = vmul.f32 %v4814_v7, %v1067_v27 }
 0x93f   :  { %v1070_v29 = vadd.f32 %v1069_v28, %v5348_v42 }
 0x941   :  { %v1165_v38 = vadd.f32 %v1164_v33, %v1070_v29 }
 0x994   :  { %v1155_v21 = vpop.permute.xlu1 %1154 }
 0x9e2   :  { %v1144_v22 = vpop.f32.mrf.mxu1 }
 0x9e3   :  { %v1157_v23 = vsub.f32 %v1144_v22, %v1155_v21  ;;  %v4030_v25 = vmul.f32 -1.442695, %v1144_v22 }
 0x9e4   :  { %v4432_v24 = vpop.f32.mrf.mxu1 }
 0x9e5   :  { %1159 = vrot.lane.b32.xlu1 %v1157_v23, %s5105_s4  ;;  %4819 = vpow2.f32 %v4030_v25 }
 0x9f2   :  { %v4820_v26 = vpop.eup %4819 }
 0x9f3   :  { %v1151_v14 = vadd.f32 1.0, %v4820_v26 }
 0x9f5   :  { %4821 = vrcp.f32 %v1151_v14 }
 0xa02   :  { %v4822_v30 = vpop.eup %4821 }
 0xa57   :  { %v1160_v32 = vpop.permute.xlu1 %1159 }
 0xa58   :  { %v1162_v35 = vmul.f32 %v4822_v30, %v1160_v32 }
 0xa5a   :  { %v1163_v39 = vadd.f32 %v1162_v35, %v983_v18 }
 0xa5c   :  { %v1166_v41 = vadd.f32 %v1165_v38, %v1163_v39 }
 0xa5e   :  { %v1167_v43 = vmul.f32 0.25, %v1166_v41 }
 0xa60   :  { %1169 = vst.msk [vmem:[#allocation11 + $0x8] sm:$0xff] %vm99_vm1, %v1167_v43  ;;  %1255 = vrot.lane.b32.xlu0 %v1167_v43, %s5104_s2  ;;  %4442 = vmatmul.mubr.msk.f32.vlgmr.msra.gmra.mxu0 %vm99_vm1, %v1167_v43 }
 0xa61   :  { %4456 = vmatpush3.msra.mxu0 %v5213_v31  ;;  %4463 = vmatprep.mubr.msk.f32.mxu0 %vm5103_vm0, %v5102_v0 }
 0xa62   :  { %4457 = vmatprep.subr.mxu0 %v5102_v0 }
 0xa63   :  { %4458 = vmatpush3.msra.mxu0 %v5217_v34 }
 0xa64   :  { %4459 = vmatprep.subr.mxu0 %v5102_v0 }
 0xa65   :  { %4460 = vmatpush3.msra.mxu0 %v5221_v36 }
 0xa66   :  { %4461 = vmatprep.subr.mxu0 %v5102_v0 }
 0xa67   :  { %4462 = vmatpush3.msra.mxu0 %v5244_v45 }
 0xa68   :  { %4477 = vmatprep.subr.mxu0 %v5102_v0 }
 0xad2   :  { %v1256_v50 = vpop.permute.xlu0 %1255 }
 0xb20   :  { %v1243_v42 = vpop.f32.mrf.mxu0 }
 0xb21   :  { %v1247_v47 = vadd.f32 %v1243_v42, %v5284_v60 }
 0xb22   :  { %v4443_v48 = vpop.f32.mrf.mxu0 }
 0xb23   :  { %4823 = vtanh.f32 %v1247_v47  ;;  %v4032_v52 = vmul.f32 -1.442695, %v1247_v47 }
 0xb25   :  { %4825 = vpow2.f32 %v4032_v52 }
 0xb30   :  { %v4824_v49 = vpop.eup %4823 }
 0xb31   :  { %v1258_v51 = vsub.f32 %v4824_v49, %v1256_v50 }
 0xb32   :  { %v4826_v53 = vpop.eup %4825 }
 0xb33   :  { %1260 = vrot.lane.b32.xlu1 %v1258_v51, %s5105_s4  ;;  %v1251_v54 = vadd.f32 1.0, %v4826_v53 }
 0xb35   :  { %4827 = vrcp.f32 %v1251_v54 }
 0xb42   :  { %v4828_v55 = vpop.eup %4827 }
 0xba5   :  { %v1261_v7 = vpop.permute.xlu1 %1260 }
 0xba6   :  { %v1263_v8 = vmul.f32 %v4828_v55, %v1261_v7 }
 0xba8   :  { %v1264_v56 = vadd.f32 %v1263_v8, %v1167_v43 }
 0xbaa   :  { %1349 = vrot.lane.b32.xlu0 %v1264_v56, %s5104_s2  ;;  %4453 = vmatmul.mubr.msk.f32.vlgmr.msra.gmra.mxu1 %vm99_vm1, %v1264_v56 }
 0xbab   :  { %4467 = vmatpush3.msra.mxu1 %v5223_v37  ;;  %4474 = vmatprep.mubr.msk.f32.mxu1 %vm5103_vm0, %v5102_v0 }
 0xbac   :  { %4468 = vmatprep.subr.mxu1 %v5102_v0 }
 0xbad   :  { %4469 = vmatpush3.msra.mxu1 %v5229_v40 }
 0xbae   :  { %4470 = vmatprep.subr.mxu1 %v5102_v0 }
 0xbaf   :  { %4471 = vmatpush3.msra.mxu1 %v5241_v44 }
 0xbb0   :  { %4472 = vmatprep.subr.mxu1 %v5102_v0 }
 0xbb1   :  { %4473 = vmatpush3.msra.mxu1 %v5247_v46 }
 0xbb2   :  { %4488 = vmatprep.subr.mxu1 %v5102_v0 }
 0xc1c   :  { %v1350_v15 = vpop.permute.xlu0 %1349 }
 0xc6a   :  { %v1338_v60 = vpop.f32.mrf.mxu1 }
 0xc6b   :  { %4829 = vtanh.f32 %v1338_v60  ;;  %v4034_v17 = vmul.f32 -1.442695, %v1338_v60 }
 0xc6c   :  { %v4454_v10 = vpop.f32.mrf.mxu1 }
 0xc6d   :  { %4831 = vpow2.f32 %v4034_v17 }
 0xc78   :  { %v4830_v11 = vpop.eup %4829 }
 0xc79   :  { %v1352_v16 = vsub.f32 %v4830_v11, %v1350_v15 }
 0xc7a   :  { %v4832_v18 = vpop.eup %4831 }
 0xc7b   :  { %1354 = vrot.lane.b32.xlu1 %v1352_v16, %s5105_s4  ;;  %v1345_v21 = vadd.f32 1.0, %v4832_v18 }
 0xc7d   :  { %4833 = vrcp.f32 %v1345_v21 }
 0xc8a   :  { %v4834_v22 = vpop.eup %4833 }
 0xced   :  { %v1355_v23 = vpop.permute.xlu1 %1354 }
 0xcee   :  { %v1357_v24 = vmul.f32 %v4834_v22, %v1355_v23 }
 0xcf0   :  { %v5422_v25 = vadd.f32 %v1357_v24, %v1264_v56 }
 0xcf2   :  { %1443 = vrot.lane.b32.xlu0 %v5422_v25, %s5104_s2  ;;  %4464 = vmatmul.mubr.msk.f32.vlgmr.msra.gmra.mxu0 %vm99_vm1, %v5422_v25 }
 0xcf3   :  { %4475 = vmatmul.mubr.msk.f32.vlgmr.msra.gmra.mxu1 %vm99_vm1, %v5422_v25  ;;  %4478 = vmatpush3.msra.mxu0 %v5274_v57 }
 0xcf4   :  { %4479 = vmatprep.subr.mxu0 %v5102_v0  ;;  %4485 = vmatprep.mubr.msk.f32.mxu0 %vm5103_vm0, %v5102_v0 }
 0xcf5   :  { %4480 = vmatpush3.msra.mxu0 %v5276_v58  ;;  %4489 = vmatpush3.msra.mxu1 %v5167_v2 }
 0xcf6   :  { %4481 = vmatprep.subr.mxu0 %v5102_v0  ;;  %4490 = vmatprep.subr.mxu1 %v5102_v0 }
 0xcf7   :  { %4482 = vmatpush3.msra.mxu0 %v5290_v63  ;;  %4491 = vmatpush3.msra.mxu1 %v5170_v4 }
 0xcf8   :  { %4483 = vmatprep.subr.mxu0 %v5102_v0  ;;  %4492 = vmatprep.subr.mxu1 %v5102_v0 }
 0xcf9   :  { %4484 = vmatpush3.msra.mxu0 %v5295_v3  ;;  %4493 = vmatpush3.msra.mxu1 %v5173_v6 }
 0xcfa   :  { %4494 = vmatprep.subr.mxu1 %v5102_v0  ;;  %4496 = vmatprep.mubr.msk.f32.mxu1 %vm5103_vm0, %v5102_v0 }
 0xcfb   :  { %4495 = vmatpush3.msra.mxu1 %v5178_v9  ;;  %4499 = vmatprep.subr.mxu0 %v5102_v0 }
 0xcfc   :  { %4510 = vmatprep.subr.mxu1 %v5102_v0 }
 0xd64   :  { %v1444_v14 = vpop.permute.xlu0 %1443 }
 0xdb2   :  { %v1432_v2 = vpop.f32.mrf.mxu0 }
 0xdb3   :  { %v1442_v4 = vmax.f32 %v1432_v2, 0.0  ;;  %v1523_v26 = vpop.f32.mrf.mxu1  ;;  %v4036_v35 = vmul.f32 -1.442695, %v1432_v2 }
 0xdb4   :  { %v4038_v27 = vmul.f32 -1.442695, %v1523_v26  ;;  %v4465_v28 = vpop.f32.mrf.mxu0 }
 0xdb5   :  { %v1446_v29 = vsub.f32 %v1442_v4, %v1444_v14  ;;  %v4476_v30 = vpop.f32.mrf.mxu1 }
 0xdb6   :  { %4835 = vpow2.f32 %v4038_v27 }
 0xdb7   :  { %1448 = vrot.lane.b32.xlu1 %v1446_v29, %s5105_s4 }
 0xdc3   :  { %v4836_v6 = vpop.eup %4835 }
 0xdc4   :  { %v1530_v32 = vadd.f32 1.0, %v4836_v6 }
 0xdc6   :  { %4837 = vrcp.f32 %v1530_v32 }
 0xdc7   :  { %4839 = vpow2.f32 %v4036_v35 }
 0xdd3   :  { %v4838_v33 = vpop.eup %4837 }
 0xdd4   :  { %v1533_v9 = vsub.f32 %v4838_v33, %v1444_v14  ;;  %v4840_v38 = vpop.eup %4839 }
 0xdd5   :  { %v1439_v39 = vadd.f32 1.0, %v4840_v38 }
 0xdd6   :  { %1535 = vrot.lane.b32.xlu1 %v1533_v9, %s5105_s4 }
 0xdd7   :  { %4841 = vrcp.f32 %v1439_v39 }
 0xde4   :  { %v4842_v41 = vpop.eup %4841 }
 0xe29   :  { %v1449_v43 = vpop.permute.xlu1 %1448 }
 0xe2a   :  { %v1451_v42 = vmul.f32 %v4842_v41, %v1449_v43 }
 0xe2c   :  { %v1452_v47 = vadd.f32 %v1451_v42, %v5422_v25 }
 0xe2e   :  { %1623 = vrot.lane.b32.xlu0 %v1452_v47, %s5104_s2  ;;  %4486 = vmatmul.mubr.msk.f32.vlgmr.msra.gmra.mxu0 %vm99_vm1, %v1452_v47 }
 0xe2f   :  { %4500 = vmatpush3.msra.mxu0 %v5190_v12  ;;  %4507 = vmatprep.mubr.msk.f32.mxu0 %vm5103_vm0, %v5102_v0 }
 0xe30   :  { %4501 = vmatprep.subr.mxu0 %v5102_v0 }
 0xe31   :  { %4502 = vmatpush3.msra.mxu0 %v5192_v13 }
 0xe32   :  { %4503 = vmatprep.subr.mxu0 %v5102_v0 }
 0xe33   :  { %4504 = vmatpush3.msra.mxu0 %v5200_v19 }
 0xe34   :  { %4505 = vmatprep.subr.mxu0 %v5102_v0 }
 0xe35   :  { %4506 = vmatpush3.msra.mxu0 %v5204_v20  ;;  %v1633_v20 = vadd.f32 %v1452_v47, %v5422_v25 }
 0xe36   :  { %4521 = vmatprep.subr.mxu0 %v5102_v0 }
 0xe48   :  { %v1536_v53 = vpop.permute.xlu1 %1535 }
 0xe49   :  { %v1538_v54 = vmul.f32 %v4838_v33, %v1536_v53 }
 0xe4b   :  { %v1539_v19 = vadd.f32 %v1538_v54, %v5422_v25 }
 0xe4d   :  { %v1634_v56 = vadd.f32 %v1633_v20, %v1539_v19 }
 0xea0   :  { %v1624_v48 = vpop.permute.xlu0 %1623 }
 0xeee   :  { %v1613_v49 = vpop.f32.mrf.mxu0 }
 0xeef   :  { %v1626_v12 = vsub.f32 %v1613_v49, %v1624_v48  ;;  %v4040_v51 = vmul.f32 -1.442695, %v1613_v49 }
 0xef0   :  { %v4487_v50 = vpop.f32.mrf.mxu0 }
 0xef1   :  { %1628 = vrot.lane.b32.xlu0 %v1626_v12, %s5105_s4  ;;  %4843 = vpow2.f32 %v4040_v51  ;;  %v5523_v50 = vld [vmem:[#allocation8 + $0x18] sm:$0xff]  ;;  %v5527_v51 = vld [vmem:[#allocation8 + $0x10] sm:$0xff] }
 0xefe   :  { %v4844_v52 = vpop.eup %4843 }
 0xeff   :  { %v1620_v13 = vadd.f32 1.0, %v4844_v52  ;;  %v5531_v52 = vld [vmem:[#allocation8 + $0x8] sm:$0xff] }
 0xf01   :  { %4845 = vrcp.f32 %v1620_v13  ;;  %v5535_v13 = vld [vmem:[#allocation8] sm:$0xff] }
 0xf0e   :  { %v4846_v55 = vpop.eup %4845 }
 0xf63   :  { %v1629_v7 = vpop.permute.xlu0 %1628 }
 0xf64   :  { %v1631_v8 = vmul.f32 %v4846_v55, %v1629_v7 }
 0xf66   :  { %v1632_v60 = vadd.f32 %v1631_v8, %v1452_v47 }
 0xf68   :  { %v1635_v10 = vadd.f32 %v1634_v56, %v1632_v60 }
 0xf6a   :  { %v1636_v11 = vmul.f32 0.25, %v1635_v10 }
 0xf6c   :  { %1638 = vst.msk [vmem:[#allocation11 + $0x10] sm:$0xff] %vm99_vm1, %v1636_v11  ;;  %1724 = vrot.lane.b32.xlu1 %v1636_v11, %s5104_s2  ;;  %4497 = vmatmul.mubr.msk.f32.vlgmr.msra.gmra.mxu1 %vm99_vm1, %v1636_v11 }
 0xf6d   :  { %4511 = vmatpush3.msra.mxu1 %v5213_v31  ;;  %4518 = vmatprep.mubr.msk.f32.mxu1 %vm5103_vm0, %v5102_v0 }
 0xf6e   :  { %4512 = vmatprep.subr.mxu1 %v5102_v0 }
 0xf6f   :  { %4513 = vmatpush3.msra.mxu1 %v5217_v34 }
 0xf70   :  { %4514 = vmatprep.subr.mxu1 %v5102_v0 }
 0xf71   :  { %4515 = vmatpush3.msra.mxu1 %v5221_v36 }
 0xf72   :  { %4516 = vmatprep.subr.mxu1 %v5102_v0 }
 0xf73   :  { %4517 = vmatpush3.msra.mxu1 %v5244_v45 }
 0xf74   :  { %4532 = vmatprep.subr.mxu1 %v5102_v0 }
 0xfde   :  { %v1725_v18 = vpop.permute.xlu1 %1724 }
0x102c   :  { %v1712_v15 = vpop.f32.mrf.mxu1 }
0x102d   :  { %v1716_v31 = vadd.f32 %v5282_v59, %v1712_v15 }
0x102e   :  { %v4498_v16 = vpop.f32.mrf.mxu1 }
0x102f   :  { %4847 = vtanh.f32 %v1716_v31  ;;  %v4042_v34 = vmul.f32 -1.442695, %v1716_v31 }
0x1031   :  { %4849 = vpow2.f32 %v4042_v34 }
0x103c   :  { %v4848_v17 = vpop.eup %4847 }
0x103d   :  { %v1727_v21 = vsub.f32 %v4848_v17, %v1725_v18 }
0x103e   :  { %v4850_v22 = vpop.eup %4849 }
0x103f   :  { %1729 = vrot.lane.b32.xlu0 %v1727_v21, %s5105_s4  ;;  %v1720_v36 = vadd.f32 1.0, %v4850_v22  ;;  %v5547_v22 = vld [vmem:[#allocation10 + $0x18] sm:$0xff] }
0x1041   :  { %4851 = vrcp.f32 %v1720_v36  ;;  %v5549_v36 = vld [vmem:[#allocation10 + $0x10] sm:$0xff] }
0x104e   :  { %v4852_v23 = vpop.eup %4851 }
0x10b1   :  { %v1730_v24 = vpop.permute.xlu0 %1729 }
0x10b2   :  { %v1732_v45 = vmul.f32 %v4852_v23, %v1730_v24 }
0x10b4   :  { %v1733_v25 = vadd.f32 %v1732_v45, %v1636_v11 }
0x10b6   :  { %1818 = vrot.lane.b32.xlu1 %v1733_v25, %s5104_s2  ;;  %4508 = vmatmul.mubr.msk.f32.vlgmr.msra.gmra.mxu0 %vm99_vm1, %v1733_v25 }
0x10b7   :  { %4522 = vmatpush3.msra.mxu0 %v5223_v37  ;;  %4529 = vmatprep.mubr.msk.f32.mxu0 %vm5103_vm0, %v5102_v0 }
0x10b8   :  { %4523 = vmatprep.subr.mxu0 %v5102_v0 }
0x10b9   :  { %4524 = vmatpush3.msra.mxu0 %v5229_v40 }
0x10ba   :  { %4525 = vmatprep.subr.mxu0 %v5102_v0 }
0x10bb   :  { %4526 = vmatpush3.msra.mxu0 %v5241_v44 }
0x10bc   :  { %4527 = vmatprep.subr.mxu0 %v5102_v0 }
0x10bd   :  { %4528 = vmatpush3.msra.mxu0 %v5247_v46 }
0x10be   :  { %4543 = vmatprep.subr.mxu0 %v5102_v0 }
0x1128   :  { %v1819_v4 = vpop.permute.xlu1 %1818 }
0x1176   :  { %v1807_v59 = vpop.f32.mrf.mxu0 }
0x1177   :  { %4853 = vtanh.f32 %v1807_v59  ;;  %v4044_v14 = vmul.f32 -1.442695, %v1807_v59  ;;  %v5559_v59 = vld [vmem:[#allocation10] sm:$0xff] }
0x1178   :  { %v4509_v37 = vpop.f32.mrf.mxu0 }
0x1179   :  { %4855 = vpow2.f32 %v4044_v14 }
0x1184   :  { %v4854_v2 = vpop.eup %4853 }
0x1185   :  { %v1821_v26 = vsub.f32 %v4854_v2, %v1819_v4 }
0x1186   :  { %v4856_v40 = vpop.eup %4855 }
0x1187   :  { %1823 = vrot.lane.b32.xlu0 %v1821_v26, %s5105_s4  ;;  %v1814_v27 = vadd.f32 1.0, %v4856_v40 }
0x1189   :  { %4857 = vrcp.f32 %v1814_v27 }
0x1196   :  { %v4858_v44 = vpop.eup %4857 }
0x11f9   :  { %v1824_v28 = vpop.permute.xlu0 %1823 }
0x11fa   :  { %v1826_v29 = vmul.f32 %v4858_v44, %v1824_v28 }
0x11fc   :  { %v5496_v30 = vadd.f32 %v1826_v29, %v1733_v25  ;;  %v5556_v25 = vld [vmem:[#allocation10 + $0x8] sm:$0xff]  ;;  %v5569_v29 = vld [vmem:[#allocation10 + $0x38] sm:$0xff] }
0x11fe   :  { %1912 = vrot.lane.b32.xlu1 %v5496_v30, %s5104_s2  ;;  %4519 = vmatmul.mubr.msk.f32.vlgmr.msra.gmra.mxu1 %vm99_vm1, %v5496_v30 }
0x11ff   :  { %4530 = vmatmul.mubr.msk.f32.vlgmr.msra.gmra.mxu0 %vm99_vm1, %v5496_v30  ;;  %4533 = vmatpush3.msra.mxu1 %v5274_v57 }
0x1200   :  { %4534 = vmatprep.subr.mxu1 %v5102_v0  ;;  %4540 = vmatprep.mubr.msk.f32.mxu1 %vm5103_vm0, %v5102_v0 }
0x1201   :  { %4535 = vmatpush3.msra.mxu1 %v5276_v58  ;;  %4551 = vmatprep.mubr.msk.f32.mxu0 %vm5103_vm0, %v5102_v0 }
0x1202   :  { %4536 = vmatprep.subr.mxu1 %v5102_v0  ;;  %4544 = vmatpush3.msra.mxu0 %v5523_v50 }
0x1203   :  { %4537 = vmatpush3.msra.mxu1 %v5290_v63  ;;  %4545 = vmatprep.subr.mxu0 %v5102_v0 }
0x1204   :  { %4538 = vmatprep.subr.mxu1 %v5102_v0  ;;  %4546 = vmatpush3.msra.mxu0 %v5527_v51 }
0x1205   :  { %4539 = vmatpush3.msra.mxu1 %v5295_v3  ;;  %4547 = vmatprep.subr.mxu0 %v5102_v0 }
0x1206   :  { %4554 = vmatprep.subr.mxu1 %v5102_v0  ;;  %4548 = vmatpush3.msra.mxu0 %v5531_v52 }
0x1207   :  { %4549 = vmatprep.subr.mxu0 %v5102_v0 }
0x1208   :  { %4550 = vmatpush3.msra.mxu0 %v5535_v13 }
0x1209   :  { %4565 = vmatprep.subr.mxu0 %v5102_v0 }
0x1270   :  { %v1913_v32 = vpop.permute.xlu1 %1912 }
0x12be   :  { %v1901_v46 = vpop.f32.mrf.mxu1 }
0x12bf   :  { %v1911_v57 = vmax.f32 %v1901_v46, 0.0  ;;  %v1992_v6 = vpop.f32.mrf.mxu0  ;;  %v4046_v3 = vmul.f32 -1.442695, %v1901_v46  ;;  %v5573_v46 = vld [vmem:[#allocation10 + $0x30] sm:$0xff] }
0x12c0   :  { %v4048_v33 = vmul.f32 -1.442695, %v1992_v6  ;;  %v4520_v9 = vpop.f32.mrf.mxu1 }
0x12c1   :  { %v1915_v58 = vsub.f32 %v1911_v57, %v1913_v32  ;;  %v4531_v35 = vpop.f32.mrf.mxu0  ;;  %v5577_v57 = vld [vmem:[#allocation10 + $0x50] sm:$0xff]  ;;  %v5587_v9 = vld [vmem:[#allocation10 + $0x48] sm:$0xff] }
0x12c2   :  { %4859 = vpow2.f32 %v4048_v33  ;;  %v5585_v33 = vld [vmem:[#allocation10 + $0x28] sm:$0xff]  ;;  %v5593_v35 = vld [vmem:[#allocation10 + $0x40] sm:$0xff] }
0x12c3   :  { %1917 = vrot.lane.b32.xlu0 %v1915_v58, %s5105_s4  ;;  %v5591_v58 = vld [vmem:[#allocation10 + $0x20] sm:$0xff] }
0x12cf   :  { %v4860_v38 = vpop.eup %4859 }
0x12d0   :  { %v1999_v39 = vadd.f32 1.0, %v4860_v38 }
0x12d2   :  { %4861 = vrcp.f32 %v1999_v39 }
0x12d3   :  { %4863 = vpow2.f32 %v4046_v3 }
0x12df   :  { %v4862_v63 = vpop.eup %4861 }
0x12e0   :  { %v2002_v41 = vsub.f32 %v4862_v63, %v1913_v32  ;;  %v4864_v43 = vpop.eup %4863 }
0x12e1   :  { %v1908_v42 = vadd.f32 1.0, %v4864_v43 }
0x12e2   :  { %2004 = vrot.lane.b32.xlu0 %v2002_v41, %s5105_s4 }
0x12e3   :  { %4865 = vrcp.f32 %v1908_v42 }
0x12f0   :  { %v4866_v47 = vpop.eup %4865 }
0x1335   :  { %v1918_v48 = vpop.permute.xlu0 %1917 }
0x1336   :  { %v1920_v49 = vmul.f32 %v4866_v47, %v1918_v48 }
0x1338   :  { %v1921_v12 = vadd.f32 %v1920_v49, %v5496_v30 }
0x133a   :  { %2092 = vrot.lane.b32.xlu1 %v1921_v12, %s5104_s2  ;;  %4541 = vmatmul.mubr.msk.f32.vlgmr.msra.gmra.mxu1 %vm99_vm1, %v1921_v12  ;;  %v2102_v31 = vadd.f32 %v1921_v12, %v5496_v30 }
0x133b   :  { %4562 = vmatprep.mubr.msk.f32.mxu1 %vm5103_vm0, %v5102_v0  ;;  %4555 = vmatpush3.msra.mxu1 %v5547_v22 }
0x133c   :  { %4556 = vmatprep.subr.mxu1 %v5102_v0 }
0x133d   :  { %4557 = vmatpush3.msra.mxu1 %v5549_v36 }
0x133e   :  { %4558 = vmatprep.subr.mxu1 %v5102_v0 }
0x133f   :  { %4559 = vmatpush3.msra.mxu1 %v5556_v25 }
0x1340   :  { %4560 = vmatprep.subr.mxu1 %v5102_v0 }
0x1341   :  { %4561 = vmatpush3.msra.mxu1 %v5559_v59 }
0x1342   :  { %4576 = vmatprep.subr.mxu1 %v5102_v0 }
0x1354   :  { %v2005_v56 = vpop.permute.xlu0 %2004 }
0x1355   :  { %v2007_v60 = vmul.f32 %v4862_v63, %v2005_v56 }
0x1357   :  { %v2008_v10 = vadd.f32 %v2007_v60, %v5496_v30  ;;  %v5571_v30 = vld [vmem:[#allocation10 + $0x58] sm:$0xff] }
0x1359   :  { %v2103_v17 = vadd.f32 %v2102_v31, %v2008_v10 }
0x13ac   :  { %v2093_v53 = vpop.permute.xlu1 %2092 }
0x13fa   :  { %v2082_v54 = vpop.f32.mrf.mxu1 }
0x13fb   :  { %v2095_v19 = vsub.f32 %v2082_v54, %v2093_v53  ;;  %v4050_v7 = vmul.f32 -1.442695, %v2082_v54  ;;  %v5624_v53 = vld [vmem:[#allocation10 + $0x70] sm:$0xff]  ;;  %v5630_v54 = vld [vmem:[#allocation10 + $0x68] sm:$0xff] }
0x13fc   :  { %v4542_v55 = vpop.f32.mrf.mxu1 }
0x13fd   :  { %2097 = vrot.lane.b32.xlu1 %v2095_v19, %s5105_s4  ;;  %4867 = vpow2.f32 %v4050_v7  ;;  %v5633_v19 = vld [vmem:[#allocation10 + $0x60] sm:$0xff] }
0x140a   :  { %v4868_v20 = vpop.eup %4867 }
0x140b   :  { %v2089_v8 = vadd.f32 1.0, %v4868_v20 }
0x140d   :  { %4869 = vrcp.f32 %v2089_v8 }
0x141a   :  { %v4870_v11 = vpop.eup %4869 }
0x146f   :  { %v2098_v15 = vpop.permute.xlu1 %2097 }
0x1470   :  { %v2100_v16 = vmul.f32 %v4870_v11, %v2098_v15 }
0x1472   :  { %v2101_v18 = vadd.f32 %v2100_v16, %v1921_v12  ;;  %v5622_v12 = vld [vmem:[#allocation10 + $0x78] sm:$0xff] }
0x1474   :  { %v2104_v21 = vadd.f32 %v2103_v17, %v2101_v18 }
0x1476   :  { %v2105_v34 = vmul.f32 0.25, %v2104_v21 }
0x1478   :  { %2107 = vst.msk [vmem:[#allocation11 + $0x18] sm:$0xff] %vm99_vm1, %v2105_v34  ;;  %2193 = vrot.lane.b32.xlu0 %v2105_v34, %s5104_s2  ;;  %4552 = vmatmul.mubr.msk.f32.vlgmr.msra.gmra.mxu0 %vm99_vm1, %v2105_v34 }
0x1479   :  { %4573 = vmatprep.mubr.msk.f32.mxu0 %vm5103_vm0, %v5102_v0  ;;  %4566 = vmatpush3.msra.mxu0 %v5569_v29 }
0x147a   :  { %4567 = vmatprep.subr.mxu0 %v5102_v0 }
0x147b   :  { %4568 = vmatpush3.msra.mxu0 %v5573_v46 }
0x147c   :  { %4569 = vmatprep.subr.mxu0 %v5102_v0 }
0x147d   :  { %4570 = vmatpush3.msra.mxu0 %v5585_v33 }
0x147e   :  { %4571 = vmatprep.subr.mxu0 %v5102_v0 }
0x147f   :  { %4572 = vmatpush3.msra.mxu0 %v5591_v58 }
0x1480   :  { %4587 = vmatprep.subr.mxu0 %v5102_v0 }
0x14ea   :  { %v2194_v2 = vpop.permute.xlu0 %2193 }
0x1538   :  { %v2181_v23 = vpop.f32.mrf.mxu0 }
0x1539   :  { %v2185_v24 = vadd.f32 %v2181_v23, %v5288_v62 }
0x153a   :  { %v4553_v45 = vpop.f32.mrf.mxu0 }
0x153b   :  { %4871 = vtanh.f32 %v2185_v24  ;;  %v4052_v62 = vmul.f32 -1.442695, %v2185_v24 }
0x153d   :  { %4873 = vpow2.f32 %v4052_v62 }
0x1548   :  { %v4872_v37 = vpop.eup %4871 }
0x1549   :  { %v2196_v4 = vsub.f32 %v4872_v37, %v2194_v2 }
0x154a   :  { %v4874_v26 = vpop.eup %4873 }
0x154b   :  { %2198 = vrot.lane.b32.xlu1 %v2196_v4, %s5105_s4  ;;  %v2189_v14 = vadd.f32 1.0, %v4874_v26 }
0x154d   :  { %4875 = vrcp.f32 %v2189_v14 }
0x155a   :  { %v4876_v40 = vpop.eup %4875 }
0x15bd   :  { %v2199_v27 = vpop.permute.xlu1 %2198 }
0x15be   :  { %v2201_v44 = vmul.f32 %v4876_v40, %v2199_v27 }
0x15c0   :  { %v2202_v28 = vadd.f32 %v2201_v44, %v2105_v34 }
0x15c2   :  { %2287 = vrot.lane.b32.xlu0 %v2202_v28, %s5104_s2  ;;  %4563 = vmatmul.mubr.msk.f32.vlgmr.msra.gmra.mxu1 %vm99_vm1, %v2202_v28 }
0x15c3   :  { %4584 = vmatprep.mubr.msk.f32.mxu1 %vm5103_vm0, %v5102_v0  ;;  %4577 = vmatpush3.msra.mxu1 %v5571_v30 }
0x15c4   :  { %4578 = vmatprep.subr.mxu1 %v5102_v0 }
0x15c5   :  { %4579 = vmatpush3.msra.mxu1 %v5577_v57 }
0x15c6   :  { %4580 = vmatprep.subr.mxu1 %v5102_v0 }
0x15c7   :  { %4581 = vmatpush3.msra.mxu1 %v5587_v9 }
0x15c8   :  { %4582 = vmatprep.subr.mxu1 %v5102_v0 }
0x15c9   :  { %4583 = vmatpush3.msra.mxu1 %v5593_v35 }
0x15ca   :  { %4598 = vmatprep.subr.mxu1 %v5102_v0 }
0x1634   :  { %v2288_v39 = vpop.permute.xlu0 %2287 }
0x1682   :  { %v2276_v6 = vpop.f32.mrf.mxu1 }
0x1683   :  { %4877 = vtanh.f32 %v2276_v6  ;;  %v4054_v41 = vmul.f32 -1.442695, %v2276_v6 }
0x1684   :  { %v4564_v32 = vpop.f32.mrf.mxu1 }
0x1685   :  { %4879 = vpow2.f32 %v4054_v41 }
0x1690   :  { %v4878_v38 = vpop.eup %4877 }
0x1691   :  { %v2290_v63 = vsub.f32 %v4878_v38, %v2288_v39 }
0x1692   :  { %v4880_v3 = vpop.eup %4879 }
0x1693   :  { %2292 = vrot.lane.b32.xlu1 %v2290_v63, %s5105_s4  ;;  %v2283_v43 = vadd.f32 1.0, %v4880_v3 }
0x1695   :  { %4881 = vrcp.f32 %v2283_v43 }
0x16a2   :  { %v4882_v42 = vpop.eup %4881 }
0x1705   :  { %v2293_v47 = vpop.permute.xlu1 %2292 }
0x1706   :  { %v2295_v48 = vmul.f32 %v4882_v42, %v2293_v47 }
0x1708   :  { %v5602_v49 = vadd.f32 %v2295_v48, %v2202_v28 }
0x170a   :  { %2381 = vrot.lane.b32.xlu0 %v5602_v49, %s5104_s2  ;;  %4574 = vmatmul.mubr.msk.f32.vlgmr.msra.gmra.mxu0 %vm99_vm1, %v5602_v49 }
0x170b   :  { %4585 = vmatmul.mubr.msk.f32.vlgmr.msra.gmra.mxu1 %vm99_vm1, %v5602_v49  ;;  %4595 = vmatprep.mubr.msk.f32.mxu0 %vm5103_vm0, %v5102_v0 }
0x170c   :  { %4599 = vmatpush3.msra.mxu1 %v5523_v50  ;;  %4606 = vmatprep.mubr.msk.f32.mxu1 %vm5103_vm0, %v5102_v0 }
0x170d   :  { %4600 = vmatprep.subr.mxu1 %v5102_v0  ;;  %4588 = vmatpush3.msra.mxu0 %v5622_v12 }
0x170e   :  { %4601 = vmatpush3.msra.mxu1 %v5527_v51  ;;  %4589 = vmatprep.subr.mxu0 %v5102_v0 }
0x170f   :  { %4602 = vmatprep.subr.mxu1 %v5102_v0  ;;  %4590 = vmatpush3.msra.mxu0 %v5624_v53 }
0x1710   :  { %4603 = vmatpush3.msra.mxu1 %v5531_v52  ;;  %4591 = vmatprep.subr.mxu0 %v5102_v0 }
0x1711   :  { %4604 = vmatprep.subr.mxu1 %v5102_v0  ;;  %4592 = vmatpush3.msra.mxu0 %v5630_v54 }
0x1712   :  { %4605 = vmatpush3.msra.mxu1 %v5535_v13  ;;  %4593 = vmatprep.subr.mxu0 %v5102_v0 }
0x1713   :  { %4620 = vmatprep.subr.mxu1 %v5102_v0  ;;  %4594 = vmatpush3.msra.mxu0 %v5633_v19 }
0x1714   :  { %4609 = vmatprep.subr.mxu0 %v5102_v0 }
0x177c   :  { %v2382_v8 = vpop.permute.xlu0 %2381 }
0x17ca   :  { %v2370_v55 = vpop.f32.mrf.mxu0 }
0x17cb   :  { %v2380_v7 = vmax.f32 %v2370_v55, 0.0  ;;  %v2461_v20 = vpop.f32.mrf.mxu1  ;;  %v4056_v18 = vmul.f32 -1.442695, %v2370_v55 }
0x17cc   :  { %v4058_v56 = vmul.f32 -1.442695, %v2461_v20  ;;  %v4575_v60 = vpop.f32.mrf.mxu0 }
0x17cd   :  { %v2384_v10 = vsub.f32 %v2380_v7, %v2382_v8  ;;  %v4586_v11 = vpop.f32.mrf.mxu1 }
0x17ce   :  { %4883 = vpow2.f32 %v4058_v56 }
0x17cf   :  { %2386 = vrot.lane.b32.xlu1 %v2384_v10, %s5105_s4 }
0x17db   :  { %v4884_v15 = vpop.eup %4883 }
0x17dc   :  { %v2468_v31 = vadd.f32 1.0, %v4884_v15 }
0x17de   :  { %4885 = vrcp.f32 %v2468_v31 }
0x17df   :  { %4887 = vpow2.f32 %v4056_v18 }
0x17eb   :  { %v4886_v16 = vpop.eup %4885 }
0x17ec   :  { %v2471_v17 = vsub.f32 %v4886_v16, %v2382_v8  ;;  %v4888_v21 = vpop.eup %4887 }
0x17ed   :  { %v2377_v34 = vadd.f32 1.0, %v4888_v21 }
0x17ee   :  { %2473 = vrot.lane.b32.xlu1 %v2471_v17, %s5105_s4 }
0x17ef   :  { %4889 = vrcp.f32 %v2377_v34 }
0x17fc   :  { %v4890_v23 = vpop.eup %4889 }
0x1841   :  { %v2387_v24 = vpop.permute.xlu1 %2386 }
0x1842   :  { %v2389_v45 = vmul.f32 %v4890_v23, %v2387_v24 }
0x1844   :  { %v2390_v37 = vadd.f32 %v2389_v45, %v5602_v49 }
0x1846   :  { %2561 = vrot.lane.b32.xlu0 %v2390_v37, %s5104_s2  ;;  %4596 = vmatmul.mubr.msk.f32.vlgmr.msra.gmra.mxu0 %vm99_vm1, %v2390_v37  ;;  %v2571_v39 = vadd.f32 %v2390_v37, %v5602_v49 }
0x1847   :  { %4610 = vmatpush3.msra.mxu0 %v5547_v22  ;;  %4617 = vmatprep.mubr.msk.f32.mxu0 %vm5103_vm0, %v5102_v0 }
0x1848   :  { %4611 = vmatprep.subr.mxu0 %v5102_v0 }
0x1849   :  { %4612 = vmatpush3.msra.mxu0 %v5549_v36 }
0x184a   :  { %4613 = vmatprep.subr.mxu0 %v5102_v0 }
0x184b   :  { %4614 = vmatpush3.msra.mxu0 %v5556_v25 }
0x184c   :  { %4615 = vmatprep.subr.mxu0 %v5102_v0 }
0x184d   :  { %4616 = vmatpush3.msra.mxu0 %v5559_v59 }
0x184e   :  { %4631 = vmatprep.subr.mxu0 %v5102_v0 }
0x1860   :  { %v2474_v44 = vpop.permute.xlu1 %2473 }
0x1861   :  { %v2476_v28 = vmul.f32 %v4886_v16, %v2474_v44 }
0x1863   :  { %v2477_v6 = vadd.f32 %v2476_v28, %v5602_v49 }
0x1865   :  { %v2572_v41 = vadd.f32 %v2571_v39, %v2477_v6 }
0x18b8   :  { %v2562_v2 = vpop.permute.xlu0 %2561 }
0x1906   :  { %v2551_v4 = vpop.f32.mrf.mxu0 }
0x1907   :  { %v2564_v62 = vsub.f32 %v2551_v4, %v2562_v2  ;;  %v4060_v14 = vmul.f32 -1.442695, %v2551_v4 }
0x1908   :  { %v4597_v26 = vpop.f32.mrf.mxu0 }
0x1909   :  { %2566 = vrot.lane.b32.xlu0 %v2564_v62, %s5105_s4  ;;  %4891 = vpow2.f32 %v4060_v14 }
0x1916   :  { %v4892_v40 = vpop.eup %4891 }
0x1917   :  { %v2558_v27 = vadd.f32 1.0, %v4892_v40 }
0x1919   :  { %4893 = vrcp.f32 %v2558_v27 }
0x1926   :  { %v4894_v32 = vpop.eup %4893 }
0x197b   :  { %v2567_v38 = vpop.permute.xlu0 %2566 }
0x197c   :  { %v2569_v63 = vmul.f32 %v4894_v32, %v2567_v38 }
0x197e   :  { %v2570_v3 = vadd.f32 %v2569_v63, %v2390_v37 }
0x1980   :  { %v2573_v43 = vadd.f32 %v2572_v41, %v2570_v3 }
0x1982   :  { %v2574_v42 = vmul.f32 0.25, %v2573_v43 }
0x1984   :  { %2576 = vst.msk [vmem:[#allocation11 + $0x20] sm:$0xff] %vm99_vm1, %v2574_v42  ;;  %2662 = vrot.lane.b32.xlu1 %v2574_v42, %s5104_s2  ;;  %4607 = vmatmul.mubr.msk.f32.vlgmr.msra.gmra.mxu1 %vm99_vm1, %v2574_v42 }
0x1985   :  { %4621 = vmatpush3.msra.mxu1 %v5569_v29  ;;  %4628 = vmatprep.mubr.msk.f32.mxu1 %vm5103_vm0, %v5102_v0 }
0x1986   :  { %4622 = vmatprep.subr.mxu1 %v5102_v0 }
0x1987   :  { %4623 = vmatpush3.msra.mxu1 %v5573_v46 }
0x1988   :  { %4624 = vmatprep.subr.mxu1 %v5102_v0 }
0x1989   :  { %4625 = vmatpush3.msra.mxu1 %v5585_v33 }
0x198a   :  { %4626 = vmatprep.subr.mxu1 %v5102_v0 }
0x198b   :  { %4627 = vmatpush3.msra.mxu1 %v5591_v58 }
0x198c   :  { %4642 = vmatprep.subr.mxu1 %v5102_v0 }
0x19f6   :  { %v2663_v7 = vpop.permute.xlu1 %2662 }
0x1a44   :  { %v2650_v47 = vpop.f32.mrf.mxu1 }
0x1a45   :  { %v2654_v48 = vadd.f32 %v5286_v61, %v2650_v47 }
0x1a46   :  { %v4608_v49 = vpop.f32.mrf.mxu1 }
0x1a47   :  { %4895 = vtanh.f32 %v2654_v48  ;;  %v4062_v8 = vmul.f32 -1.442695, %v2654_v48 }
0x1a49   :  { %4897 = vpow2.f32 %v4062_v8 }
0x1a54   :  { %v4896_v55 = vpop.eup %4895 }
0x1a55   :  { %v2665_v20 = vsub.f32 %v4896_v55, %v2663_v7 }
0x1a56   :  { %v4898_v56 = vpop.eup %4897 }
0x1a57   :  { %2667 = vrot.lane.b32.xlu0 %v2665_v20, %s5105_s4  ;;  %v2658_v60 = vadd.f32 1.0, %v4898_v56 }
0x1a59   :  { %4899 = vrcp.f32 %v2658_v60 }
0x1a66   :  { %v4900_v10 = vpop.eup %4899 }
0x1ac9   :  { %v2668_v11 = vpop.permute.xlu0 %2667 }
0x1aca   :  { %v2670_v15 = vmul.f32 %v4900_v10, %v2668_v11 }
0x1acc   :  { %v2671_v31 = vadd.f32 %v2670_v15, %v2574_v42 }
0x1ace   :  { %2756 = vrot.lane.b32.xlu1 %v2671_v31, %s5104_s2  ;;  %4618 = vmatmul.mubr.msk.f32.vlgmr.msra.gmra.mxu0 %vm99_vm1, %v2671_v31 }
0x1acf   :  { %4632 = vmatpush3.msra.mxu0 %v5571_v30  ;;  %4639 = vmatprep.mubr.msk.f32.mxu0 %vm5103_vm0, %v5102_v0 }
0x1ad0   :  { %4633 = vmatprep.subr.mxu0 %v5102_v0 }
0x1ad1   :  { %4634 = vmatpush3.msra.mxu0 %v5577_v57 }
0x1ad2   :  { %4635 = vmatprep.subr.mxu0 %v5102_v0 }
0x1ad3   :  { %4636 = vmatpush3.msra.mxu0 %v5587_v9 }
0x1ad4   :  { %4637 = vmatprep.subr.mxu0 %v5102_v0 }
0x1ad5   :  { %4638 = vmatpush3.msra.mxu0 %v5593_v35 }
0x1ad6   :  { %4653 = vmatprep.subr.mxu0 %v5102_v0 }
0x1b40   :  { %v2757_v18 = vpop.permute.xlu1 %2756 }
0x1b8e   :  { %v2745_v61 = vpop.f32.mrf.mxu0 }
0x1b8f   :  { %4901 = vtanh.f32 %v2745_v61  ;;  %v4064_v34 = vmul.f32 -1.442695, %v2745_v61 }
0x1b90   :  { %v4619_v16 = vpop.f32.mrf.mxu0 }
0x1b91   :  { %4903 = vpow2.f32 %v4064_v34 }
0x1b9c   :  { %v4902_v17 = vpop.eup %4901 }
0x1b9d   :  { %v2759_v21 = vsub.f32 %v4902_v17, %v2757_v18 }
0x1b9e   :  { %v4904_v23 = vpop.eup %4903 }
0x1b9f   :  { %2761 = vrot.lane.b32.xlu0 %v2759_v21, %s5105_s4  ;;  %v2752_v24 = vadd.f32 1.0, %v4904_v23 }
0x1ba1   :  { %4905 = vrcp.f32 %v2752_v24 }
0x1bae   :  { %v4906_v45 = vpop.eup %4905 }
0x1c11   :  { %v2762_v37 = vpop.permute.xlu0 %2761 }
0x1c12   :  { %v2764_v2 = vmul.f32 %v4906_v45, %v2762_v37 }
0x1c14   :  { %v5684_v4 = vadd.f32 %v2764_v2, %v2671_v31 }
0x1c16   :  { %2850 = vrot.lane.b32.xlu1 %v5684_v4, %s5104_s2  ;;  %4629 = vmatmul.mubr.msk.f32.vlgmr.msra.gmra.mxu1 %vm99_vm1, %v5684_v4 }
0x1c17   :  { %4640 = vmatmul.mubr.msk.f32.vlgmr.msra.gmra.mxu0 %vm99_vm1, %v5684_v4  ;;  %4643 = vmatpush3.msra.mxu1 %v5622_v12 }
0x1c18   :  { %4644 = vmatprep.subr.mxu1 %v5102_v0  ;;  %4650 = vmatprep.mubr.msk.f32.mxu1 %vm5103_vm0, %v5102_v0 }
0x1c19   :  { %4645 = vmatpush3.msra.mxu1 %v5624_v53  ;;  %4654 = vmatpush3.msra.mxu0 %v5523_v50 }
0x1c1a   :  { %4646 = vmatprep.subr.mxu1 %v5102_v0  ;;  %4655 = vmatprep.subr.mxu0 %v5102_v0 }
0x1c1b   :  { %4647 = vmatpush3.msra.mxu1 %v5630_v54  ;;  %4656 = vmatpush3.msra.mxu0 %v5527_v51 }
0x1c1c   :  { %4648 = vmatprep.subr.mxu1 %v5102_v0  ;;  %4657 = vmatprep.subr.mxu0 %v5102_v0 }
0x1c1d   :  { %4649 = vmatpush3.msra.mxu1 %v5633_v19  ;;  %4658 = vmatpush3.msra.mxu0 %v5531_v52 }
0x1c1e   :  { %4659 = vmatprep.subr.mxu0 %v5102_v0  ;;  %4661 = vmatprep.mubr.msk.f32.mxu0 %vm5103_vm0, %v5102_v0 }
0x1c1f   :  { %4660 = vmatpush3.msra.mxu0 %v5535_v13  ;;  %4664 = vmatprep.subr.mxu1 %v5102_v0 }
0x1c20   :  { %4675 = vmatprep.subr.mxu0 %v5102_v0 }
0x1c88   :  { %v2851_v40 = vpop.permute.xlu1 %2850 }
0x1cd6   :  { %v2839_v62 = vpop.f32.mrf.mxu1 }
0x1cd7   :  { %v2849_v26 = vmax.f32 %v2839_v62, 0.0  ;;  %v2930_v14 = vpop.f32.mrf.mxu0  ;;  %v4066_v41 = vmul.f32 -1.442695, %v2839_v62 }
0x1cd8   :  { %v4068_v27 = vmul.f32 -1.442695, %v2930_v14  ;;  %v4630_v44 = vpop.f32.mrf.mxu1 }
0x1cd9   :  { %v2853_v28 = vsub.f32 %v2849_v26, %v2851_v40  ;;  %v4641_v6 = vpop.f32.mrf.mxu0 }
0x1cda   :  { %4907 = vpow2.f32 %v4068_v27 }
0x1cdb   :  { %2855 = vrot.lane.b32.xlu0 %v2853_v28, %s5105_s4 }
0x1ce7   :  { %v4908_v32 = vpop.eup %4907 }
0x1ce8   :  { %v2937_v38 = vadd.f32 1.0, %v4908_v32 }
0x1cea   :  { %4909 = vrcp.f32 %v2937_v38 }
0x1ceb   :  { %4911 = vpow2.f32 %v4066_v41 }
0x1cf7   :  { %v4910_v39 = vpop.eup %4909 }
0x1cf8   :  { %v2940_v63 = vsub.f32 %v4910_v39, %v2851_v40  ;;  %v4912_v3 = vpop.eup %4911 }
0x1cf9   :  { %v2846_v43 = vadd.f32 1.0, %v4912_v3 }
0x1cfa   :  { %2942 = vrot.lane.b32.xlu0 %v2940_v63, %s5105_s4 }
0x1cfb   :  { %4913 = vrcp.f32 %v2846_v43 }
0x1d08   :  { %v4914_v42 = vpop.eup %4913 }
0x1d4d   :  { %v2856_v47 = vpop.permute.xlu0 %2855 }
0x1d4e   :  { %v2858_v48 = vmul.f32 %v4914_v42, %v2856_v47 }
0x1d50   :  { %v2859_v49 = vadd.f32 %v2858_v48, %v5684_v4 }
0x1d52   :  { %3030 = vrot.lane.b32.xlu1 %v2859_v49, %s5104_s2  ;;  %4651 = vmatmul.mubr.msk.f32.vlgmr.msra.gmra.mxu1 %vm99_vm1, %v2859_v49  ;;  %v3040_v17 = vadd.f32 %v2859_v49, %v5684_v4 }
0x1d53   :  { %4665 = vmatpush3.msra.mxu1 %v5547_v22  ;;  %4672 = vmatprep.mubr.msk.f32.mxu1 %vm5103_vm0, %v5102_v0 }
0x1d54   :  { %4666 = vmatprep.subr.mxu1 %v5102_v0 }
0x1d55   :  { %4667 = vmatpush3.msra.mxu1 %v5549_v36 }
0x1d56   :  { %4668 = vmatprep.subr.mxu1 %v5102_v0 }
0x1d57   :  { %4669 = vmatpush3.msra.mxu1 %v5556_v25 }
0x1d58   :  { %4670 = vmatprep.subr.mxu1 %v5102_v0 }
0x1d59   :  { %4671 = vmatpush3.msra.mxu1 %v5559_v59 }
0x1d5a   :  { %4686 = vmatprep.subr.mxu1 %v5102_v0 }
0x1d6c   :  { %v2943_v11 = vpop.permute.xlu0 %2942 }
0x1d6d   :  { %v2945_v15 = vmul.f32 %v4910_v39, %v2943_v11 }
0x1d6f   :  { %v2946_v31 = vadd.f32 %v2945_v15, %v5684_v4 }
0x1d71   :  { %v3041_v21 = vadd.f32 %v3040_v17, %v2946_v31 }
0x1dc4   :  { %v3031_v55 = vpop.permute.xlu1 %3030 }
0x1e12   :  { %v3020_v7 = vpop.f32.mrf.mxu1 }
0x1e13   :  { %v3033_v20 = vsub.f32 %v3020_v7, %v3031_v55  ;;  %v4070_v56 = vmul.f32 -1.442695, %v3020_v7 }
0x1e14   :  { %v4652_v8 = vpop.f32.mrf.mxu1 }
0x1e15   :  { %3035 = vrot.lane.b32.xlu1 %v3033_v20, %s5105_s4  ;;  %4915 = vpow2.f32 %v4070_v56 }
0x1e22   :  { %v4916_v60 = vpop.eup %4915 }
0x1e23   :  { %v3027_v10 = vadd.f32 1.0, %v4916_v60 }
0x1e25   :  { %4917 = vrcp.f32 %v3027_v10 }
0x1e32   :  { %v4918_v61 = vpop.eup %4917 }
0x1e87   :  { %v3036_v16 = vpop.permute.xlu1 %3035 }
0x1e88   :  { %v3038_v18 = vmul.f32 %v4918_v61, %v3036_v16 }
0x1e8a   :  { %v3039_v34 = vadd.f32 %v3038_v18, %v2859_v49 }
0x1e8c   :  { %v3042_v23 = vadd.f32 %v3041_v21, %v3039_v34 }
0x1e8e   :  { %v3043_v24 = vmul.f32 0.25, %v3042_v23 }
0x1e90   :  { %3045 = vst.msk [vmem:[#allocation11 + $0x28] sm:$0xff] %vm99_vm1, %v3043_v24  ;;  %3131 = vrot.lane.b32.xlu0 %v3043_v24, %s5104_s2  ;;  %4662 = vmatmul.mubr.msk.f32.vlgmr.msra.gmra.mxu0 %vm99_vm1, %v3043_v24 }
0x1e91   :  { %4676 = vmatpush3.msra.mxu0 %v5569_v29  ;;  %4683 = vmatprep.mubr.msk.f32.mxu0 %vm5103_vm0, %v5102_v0 }
0x1e92   :  { %4677 = vmatprep.subr.mxu0 %v5102_v0 }
0x1e93   :  { %4678 = vmatpush3.msra.mxu0 %v5573_v46 }
0x1e94   :  { %4679 = vmatprep.subr.mxu0 %v5102_v0 }
0x1e95   :  { %4680 = vmatpush3.msra.mxu0 %v5585_v33 }
0x1e96   :  { %4681 = vmatprep.subr.mxu0 %v5102_v0 }
0x1e97   :  { %4682 = vmatpush3.msra.mxu0 %v5591_v58 }
0x1e98   :  { %4697 = vmatprep.subr.mxu0 %v5102_v0 }
0x1f02   :  { %v3132_v62 = vpop.permute.xlu0 %3131 }
0x1f50   :  { %v3119_v45 = vpop.f32.mrf.mxu0 }
0x1f51   :  { %v3123_v37 = vadd.f32 %v3119_v45, %v5300_v5 }
0x1f52   :  { %v4663_v2 = vpop.f32.mrf.mxu0 }
0x1f53   :  { %4919 = vtanh.f32 %v3123_v37  ;;  %v4072_v14 = vmul.f32 -1.442695, %v3123_v37 }
0x1f55   :  { %4921 = vpow2.f32 %v4072_v14 }
0x1f60   :  { %v4920_v4 = vpop.eup %4919 }
0x1f61   :  { %v3134_v26 = vsub.f32 %v4920_v4, %v3132_v62 }
0x1f62   :  { %v4922_v40 = vpop.eup %4921 }
0x1f63   :  { %3136 = vrot.lane.b32.xlu1 %v3134_v26, %s5105_s4  ;;  %v3127_v27 = vadd.f32 1.0, %v4922_v40 }
0x1f65   :  { %4923 = vrcp.f32 %v3127_v27 }
0x1f72   :  { %v4924_v44 = vpop.eup %4923 }
0x1fd5   :  { %v3137_v28 = vpop.permute.xlu1 %3136 }
0x1fd6   :  { %v3139_v6 = vmul.f32 %v4924_v44, %v3137_v28 }
0x1fd8   :  { %v3140_v32 = vadd.f32 %v3139_v6, %v3043_v24 }
0x1fda   :  { %3225 = vrot.lane.b32.xlu0 %v3140_v32, %s5104_s2  ;;  %4673 = vmatmul.mubr.msk.f32.vlgmr.msra.gmra.mxu1 %vm99_vm1, %v3140_v32 }
0x1fdb   :  { %4687 = vmatpush3.msra.mxu1 %v5571_v30  ;;  %4694 = vmatprep.mubr.msk.f32.mxu1 %vm5103_vm0, %v5102_v0 }
0x1fdc   :  { %4688 = vmatprep.subr.mxu1 %v5102_v0 }
0x1fdd   :  { %4689 = vmatpush3.msra.mxu1 %v5577_v57 }
0x1fde   :  { %4690 = vmatprep.subr.mxu1 %v5102_v0 }
0x1fdf   :  { %4691 = vmatpush3.msra.mxu1 %v5587_v9 }
0x1fe0   :  { %4692 = vmatprep.subr.mxu1 %v5102_v0 }
0x1fe1   :  { %4693 = vmatpush3.msra.mxu1 %v5593_v35 }
0x1fe2   :  { %4708 = vmatprep.subr.mxu1 %v5102_v0 }
0x204c   :  { %v3226_v63 = vpop.permute.xlu0 %3225 }
0x209a   :  { %v3214_v5 = vpop.f32.mrf.mxu1 }
0x209b   :  { %4925 = vtanh.f32 %v3214_v5  ;;  %v4074_v3 = vmul.f32 -1.442695, %v3214_v5 }
0x209c   :  { %v4674_v38 = vpop.f32.mrf.mxu1 }
0x209d   :  { %4927 = vpow2.f32 %v4074_v3 }
0x20a8   :  { %v4926_v39 = vpop.eup %4925 }
0x20a9   :  { %v3228_v41 = vsub.f32 %v4926_v39, %v3226_v63 }
0x20aa   :  { %v4928_v43 = vpop.eup %4927 }
0x20ab   :  { %3230 = vrot.lane.b32.xlu1 %v3228_v41, %s5105_s4  ;;  %v3221_v42 = vadd.f32 1.0, %v4928_v43 }
0x20ad   :  { %4929 = vrcp.f32 %v3221_v42 }
0x20ba   :  { %v4930_v47 = vpop.eup %4929 }
0x211d   :  { %v3231_v48 = vpop.permute.xlu1 %3230 }
0x211e   :  { %v3233_v49 = vmul.f32 %v4930_v47, %v3231_v48 }
0x2120   :  { %v5758_v55 = vadd.f32 %v3233_v49, %v3140_v32 }
0x2122   :  { %3319 = vrot.lane.b32.xlu0 %v5758_v55, %s5104_s2  ;;  %4684 = vmatmul.mubr.msk.f32.vlgmr.msra.gmra.mxu0 %vm99_vm1, %v5758_v55 }
0x2123   :  { %4695 = vmatmul.mubr.msk.f32.vlgmr.msra.gmra.mxu1 %vm99_vm1, %v5758_v55  ;;  %4698 = vmatpush3.msra.mxu0 %v5622_v12 }
0x2124   :  { %4699 = vmatprep.subr.mxu0 %v5102_v0  ;;  %4705 = vmatprep.mubr.msk.f32.mxu0 %vm5103_vm0, %v5102_v0 }
0x2125   :  { %4700 = vmatpush3.msra.mxu0 %v5624_v53  ;;  %4709 = vmatpush3.msra.mxu1 %v5523_v50 }
0x2126   :  { %4701 = vmatprep.subr.mxu0 %v5102_v0  ;;  %4710 = vmatprep.subr.mxu1 %v5102_v0 }
0x2127   :  { %4702 = vmatpush3.msra.mxu0 %v5630_v54  ;;  %4711 = vmatpush3.msra.mxu1 %v5527_v51 }
0x2128   :  { %4703 = vmatprep.subr.mxu0 %v5102_v0  ;;  %4712 = vmatprep.subr.mxu1 %v5102_v0 }
0x2129   :  { %4704 = vmatpush3.msra.mxu0 %v5633_v19  ;;  %4713 = vmatpush3.msra.mxu1 %v5531_v52 }
0x212a   :  { %4714 = vmatprep.subr.mxu1 %v5102_v0  ;;  %4716 = vmatprep.mubr.msk.f32.mxu1 %vm5103_vm0, %v5102_v0 }
0x212b   :  { %4715 = vmatpush3.msra.mxu1 %v5535_v13  ;;  %4719 = vmatprep.subr.mxu0 %v5102_v0 }
0x212c   :  { %4730 = vmatprep.subr.mxu1 %v5102_v0 }
0x2194   :  { %v3320_v20 = vpop.permute.xlu0 %3319 }
0x21e2   :  { %v3308_v50 = vpop.f32.mrf.mxu0 }
0x21e3   :  { %v3318_v51 = vmax.f32 %v3308_v50, 0.0  ;;  %v3399_v7 = vpop.f32.mrf.mxu1  ;;  %v4076_v31 = vmul.f32 -1.442695, %v3308_v50 }
0x21e4   :  { %v4078_v8 = vmul.f32 -1.442695, %v3399_v7  ;;  %v4685_v56 = vpop.f32.mrf.mxu0 }
0x21e5   :  { %v3322_v60 = vsub.f32 %v3318_v51, %v3320_v20  ;;  %v4696_v10 = vpop.f32.mrf.mxu1 }
0x21e6   :  { %4931 = vpow2.f32 %v4078_v8 }
0x21e7   :  { %3324 = vrot.lane.b32.xlu1 %v3322_v60, %s5105_s4 }
0x21f3   :  { %v4932_v52 = vpop.eup %4931 }
0x21f4   :  { %v3406_v11 = vadd.f32 1.0, %v4932_v52 }
0x21f6   :  { %4933 = vrcp.f32 %v3406_v11 }
0x21f7   :  { %4935 = vpow2.f32 %v4076_v31 }
0x2203   :  { %v4934_v15 = vpop.eup %4933 }
0x2204   :  { %v3409_v13 = vsub.f32 %v4934_v15, %v3320_v20  ;;  %v4936_v61 = vpop.eup %4935 }
0x2205   :  { %v3315_v16 = vadd.f32 1.0, %v4936_v61 }
0x2206   :  { %3411 = vrot.lane.b32.xlu1 %v3409_v13, %s5105_s4 }
0x2207   :  { %4937 = vrcp.f32 %v3315_v16 }
0x2214   :  { %v4938_v17 = vpop.eup %4937 }
0x2259   :  { %v3325_v18 = vpop.permute.xlu1 %3324 }
0x225a   :  { %v3327_v21 = vmul.f32 %v4938_v17, %v3325_v18 }
0x225c   :  { %v3328_v34 = vadd.f32 %v3327_v21, %v5758_v55 }
0x225e   :  { %3499 = vrot.lane.b32.xlu0 %v3328_v34, %s5104_s2  ;;  %4706 = vmatmul.mubr.msk.f32.vlgmr.msra.gmra.mxu0 %vm99_vm1, %v3328_v34 }
0x225f   :  { %4720 = vmatpush3.msra.mxu0 %v5547_v22  ;;  %4727 = vmatprep.mubr.msk.f32.mxu0 %vm5103_vm0, %v5102_v0 }
0x2260   :  { %4721 = vmatprep.subr.mxu0 %v5102_v0 }
0x2261   :  { %4722 = vmatpush3.msra.mxu0 %v5549_v36 }
0x2262   :  { %4723 = vmatprep.subr.mxu0 %v5102_v0 }
0x2263   :  { %4724 = vmatpush3.msra.mxu0 %v5556_v25 }
0x2264   :  { %4725 = vmatprep.subr.mxu0 %v5102_v0 }
0x2265   :  { %4726 = vmatpush3.msra.mxu0 %v5559_v59  ;;  %v3509_v59 = vadd.f32 %v3328_v34, %v5758_v55 }
0x2266   :  { %4741 = vmatprep.subr.mxu0 %v5102_v0 }
0x2278   :  { %v3412_v4 = vpop.permute.xlu1 %3411 }
0x2279   :  { %v3414_v62 = vmul.f32 %v4934_v15, %v3412_v4 }
0x227b   :  { %v3415_v25 = vadd.f32 %v3414_v62, %v5758_v55 }
0x227d   :  { %v3510_v27 = vadd.f32 %v3509_v59, %v3415_v25 }
0x22d0   :  { %v3500_v23 = vpop.permute.xlu0 %3499 }
0x231e   :  { %v3489_v24 = vpop.f32.mrf.mxu0 }
0x231f   :  { %v3502_v22 = vsub.f32 %v3489_v24, %v3500_v23  ;;  %v4080_v37 = vmul.f32 -1.442695, %v3489_v24 }
0x2320   :  { %v4707_v45 = vpop.f32.mrf.mxu0 }
0x2321   :  { %3504 = vrot.lane.b32.xlu0 %v3502_v22, %s5105_s4  ;;  %4939 = vpow2.f32 %v4080_v37 }
0x232e   :  { %v4940_v2 = vpop.eup %4939 }
0x232f   :  { %v3496_v36 = vadd.f32 1.0, %v4940_v2 }
0x2331   :  { %4941 = vrcp.f32 %v3496_v36 }
0x233e   :  { %v4942_v26 = vpop.eup %4941 }
0x2393   :  { %v3505_v14 = vpop.permute.xlu0 %3504 }
0x2394   :  { %v3507_v40 = vmul.f32 %v4942_v26, %v3505_v14 }
0x2396   :  { %v3508_v44 = vadd.f32 %v3507_v40, %v3328_v34 }
0x2398   :  { %v3511_v28 = vadd.f32 %v3510_v27, %v3508_v44 }
0x239a   :  { %v3512_v6 = vmul.f32 0.25, %v3511_v28 }
0x239c   :  { %3514 = vst.msk [vmem:[#allocation11 + $0x30] sm:$0xff] %vm99_vm1, %v3512_v6  ;;  %3600 = vrot.lane.b32.xlu1 %v3512_v6, %s5104_s2  ;;  %4717 = vmatmul.mubr.msk.f32.vlgmr.msra.gmra.mxu1 %vm99_vm1, %v3512_v6 }
0x239d   :  { %4731 = vmatpush3.msra.mxu1 %v5569_v29  ;;  %4738 = vmatprep.mubr.msk.f32.mxu1 %vm5103_vm0, %v5102_v0 }
0x239e   :  { %4732 = vmatprep.subr.mxu1 %v5102_v0 }
0x239f   :  { %4733 = vmatpush3.msra.mxu1 %v5573_v46 }
0x23a0   :  { %4734 = vmatprep.subr.mxu1 %v5102_v0 }
0x23a1   :  { %4735 = vmatpush3.msra.mxu1 %v5585_v33 }
0x23a2   :  { %4736 = vmatprep.subr.mxu1 %v5102_v0 }
0x23a3   :  { %4737 = vmatpush3.msra.mxu1 %v5591_v58 }
0x23a4   :  { %4752 = vmatprep.subr.mxu1 %v5102_v0 }
0x240e   :  { %v3601_v39 = vpop.permute.xlu1 %3600 }
0x245c   :  { %v3588_v32 = vpop.f32.mrf.mxu1 }
0x245d   :  { %v3592_v29 = vadd.f32 %v5292_v1, %v3588_v32 }
0x245e   :  { %v4718_v5 = vpop.f32.mrf.mxu1 }
0x245f   :  { %4943 = vtanh.f32 %v3592_v29  ;;  %v4082_v46 = vmul.f32 -1.442695, %v3592_v29 }
0x2461   :  { %4945 = vpow2.f32 %v4082_v46 }
0x246c   :  { %v4944_v38 = vpop.eup %4943 }
0x246d   :  { %v3603_v63 = vsub.f32 %v4944_v38, %v3601_v39 }
0x246e   :  { %v4946_v41 = vpop.eup %4945 }
0x246f   :  { %3605 = vrot.lane.b32.xlu0 %v3603_v63, %s5105_s4  ;;  %v3596_v33 = vadd.f32 1.0, %v4946_v41 }
0x2471   :  { %4947 = vrcp.f32 %v3596_v33 }
0x247e   :  { %v4948_v3 = vpop.eup %4947 }
0x24e1   :  { %v3606_v43 = vpop.permute.xlu0 %3605 }
0x24e2   :  { %v3608_v58 = vmul.f32 %v4948_v3, %v3606_v43 }
0x24e4   :  { %v3609_v42 = vadd.f32 %v3608_v58, %v3512_v6 }
0x24e6   :  { %3694 = vrot.lane.b32.xlu1 %v3609_v42, %s5104_s2  ;;  %4728 = vmatmul.mubr.msk.f32.vlgmr.msra.gmra.mxu0 %vm99_vm1, %v3609_v42 }
0x24e7   :  { %4742 = vmatpush3.msra.mxu0 %v5571_v30  ;;  %4749 = vmatprep.mubr.msk.f32.mxu0 %vm5103_vm0, %v5102_v0 }
0x24e8   :  { %4743 = vmatprep.subr.mxu0 %v5102_v0 }
0x24e9   :  { %4744 = vmatpush3.msra.mxu0 %v5577_v57 }
0x24ea   :  { %4745 = vmatprep.subr.mxu0 %v5102_v0 }
0x24eb   :  { %4746 = vmatpush3.msra.mxu0 %v5587_v9 }
0x24ec   :  { %4747 = vmatprep.subr.mxu0 %v5102_v0 }
0x24ed   :  { %4748 = vmatpush3.msra.mxu0 %v5593_v35 }
0x2558   :  { %v3695_v30 = vpop.permute.xlu1 %3694 }
0x25a6   :  { %v3683_v1 = vpop.f32.mrf.mxu0 }
0x25a7   :  { %4949 = vtanh.f32 %v3683_v1  ;;  %v4084_v55 = vmul.f32 -1.442695, %v3683_v1 }
0x25a8   :  { %v4729_v47 = vpop.f32.mrf.mxu0 }
0x25a9   :  { %4951 = vpow2.f32 %v4084_v55 }
0x25b4   :  { %v4950_v48 = vpop.eup %4949 }
0x25b5   :  { %v3697_v49 = vsub.f32 %v4950_v48, %v3695_v30 }
0x25b6   :  { %v4952_v50 = vpop.eup %4951 }
0x25b7   :  { %3699 = vrot.lane.b32.xlu0 %v3697_v49, %s5105_s4  ;;  %v3690_v57 = vadd.f32 1.0, %v4952_v50 }
0x25b9   :  { %4953 = vrcp.f32 %v3690_v57 }
0x25c6   :  { %v4954_v51 = vpop.eup %4953 }
0x2629   :  { %v3700_v7 = vpop.permute.xlu0 %3699 }
0x262a   :  { %v3702_v9 = vmul.f32 %v4954_v51, %v3700_v7 }
0x262c   :  { %v3703_v20 = vadd.f32 %v3702_v9, %v3609_v42 }
0x262e   :  { %3788 = vrot.lane.b32.xlu1 %v3703_v20, %s5104_s2  ;;  %4739 = vmatmul.mubr.msk.f32.vlgmr.msra.gmra.mxu1 %vm99_vm1, %v3703_v20 }
0x262f   :  { %4750 = vmatmul.mubr.msk.f32.vlgmr.msra.gmra.mxu0 %vm99_vm1, %v3703_v20  ;;  %4753 = vmatpush3.msra.mxu1 %v5622_v12 }
0x2630   :  { %4754 = vmatprep.subr.mxu1 %v5102_v0  ;;  %4760 = vmatprep.mubr.msk.f32.mxu1 %vm5103_vm0, %v5102_v0 }
0x2631   :  { %4755 = vmatpush3.msra.mxu1 %v5624_v53 }
0x2632   :  { %4756 = vmatprep.subr.mxu1 %v5102_v0 }
0x2633   :  { %4757 = vmatpush3.msra.mxu1 %v5630_v54 }
0x2634   :  { %4758 = vmatprep.subr.mxu1 %v5102_v0 }
0x2635   :  { %4759 = vmatpush3.msra.mxu1 %v5633_v19 }
0x26a0   :  { %v3789_v60 = vpop.permute.xlu1 %3788 }
0x26ee   :  { %v3777_v35 = vpop.f32.mrf.mxu1 }
0x26ef   :  { %v3787_v8 = vmax.f32 %v3777_v35, 0.0  ;;  %v3868_v56 = vpop.f32.mrf.mxu0  ;;  %v4086_v0 = vmul.f32 -1.442695, %v3777_v35 }
0x26f0   :  { %v4088_v12 = vmul.f32 -1.442695, %v3868_v56  ;;  %v4740_v10 = vpop.f32.mrf.mxu1 }
0x26f1   :  { %v3791_v52 = vsub.f32 %v3787_v8, %v3789_v60  ;;  %v4751_v11 = vpop.f32.mrf.mxu0 }
0x26f2   :  { %4955 = vpow2.f32 %v4088_v12 }
0x26f3   :  { %3793 = vrot.lane.b32.xlu0 %v3791_v52, %s5105_s4 }
0x26ff   :  { %v4956_v53 = vpop.eup %4955 }
0x2700   :  { %v3875_v15 = vadd.f32 1.0, %v4956_v53 }
0x2702   :  { %4957 = vrcp.f32 %v3875_v15 }
0x2703   :  { %4959 = vpow2.f32 %v4086_v0 }
0x270f   :  { %v4958_v13 = vpop.eup %4957 }
0x2710   :  { %v3878_v54 = vsub.f32 %v4958_v13, %v3789_v60  ;;  %v4960_v19 = vpop.eup %4959 }
0x2711   :  { %v3784_v31 = vadd.f32 1.0, %v4960_v19 }
0x2712   :  { %3880 = vrot.lane.b32.xlu0 %v3878_v54, %s5105_s4 }
0x2713   :  { %4961 = vrcp.f32 %v3784_v31 }
0x2720   :  { %v4962_v61 = vpop.eup %4961 }
0x2765   :  { %v3794_v16 = vpop.permute.xlu0 %3793 }
0x2766   :  { %v3796_v17 = vmul.f32 %v4962_v61, %v3794_v16 }
0x2768   :  { %v3797_v18 = vadd.f32 %v3796_v17, %v3703_v20 }
0x276a   :  { %3968 = vrot.lane.b32.xlu1 %v3797_v18, %s5104_s2  ;;  %4761 = vmatmul.mubr.msk.f32.vlgmr.msra.gmra.mxu1 %vm99_vm1, %v3797_v18  ;;  %v3978_v26 = vadd.f32 %v3797_v18, %v3703_v20 }
0x2784   :  { %v3881_v2 = vpop.permute.xlu0 %3880 }
0x2785   :  { %v3883_v36 = vmul.f32 %v4958_v13, %v3881_v2 }
0x2787   :  { %v3884_v4 = vadd.f32 %v3883_v36, %v3703_v20 }
0x2789   :  { %v3979_v59 = vadd.f32 %v3978_v26, %v3884_v4 }
0x27dc   :  { %v3969_v21 = vpop.permute.xlu1 %3968 }
0x282a   :  { %v3958_v34 = vpop.f32.mrf.mxu1 }
0x282b   :  { %v3971_v23 = vsub.f32 %v3958_v34, %v3969_v21  ;;  %v4090_v22 = vmul.f32 -1.442695, %v3958_v34 }
0x282c   :  { %v4762_v24 = vpop.f32.mrf.mxu1 }
0x282d   :  { %3973 = vrot.lane.b32.xlu1 %v3971_v23, %s5105_s4  ;;  %4963 = vpow2.f32 %v4090_v22 }
0x283a   :  { %v4964_v45 = vpop.eup %4963 }
0x283b   :  { %v3965_v37 = vadd.f32 1.0, %v4964_v45 }
0x283d   :  { %4965 = vrcp.f32 %v3965_v37 }
0x284a   :  { %v4966_v62 = vpop.eup %4965 }
0x289f   :  { %v3974_v25 = vpop.permute.xlu1 %3973 }
0x28a0   :  { %v3976_v14 = vmul.f32 %v4966_v62, %v3974_v25 }
0x28a2   :  { %v3977_v40 = vadd.f32 %v3976_v14, %v3797_v18 }
0x28a4   :  { %v3980_v27 = vadd.f32 %v3979_v59, %v3977_v40 }
0x28a6   :  { %v3981_v44 = vmul.f32 0.25, %v3980_v27 }
0x28a8   :  { %3983 = vst.msk [vmem:[#allocation11 + $0x38] sm:$0xff] %vm99_vm1, %v3981_v44 }
0x28a9   :  { %5078 = shalt.err (!%p5075_p1)
}
0x28aa   :  { %3995 = dma.vmem_to_hbm [thread:$0]  %s3990_s18, 1024, %s5860_s5, [#allocation4], %s5098_s28, %s5098_s28, %s5099_s29  }
0x28ab   :  { %5093 = dma.done.wait [#allocation4], 1024  }
0x28ac   :  { %5094 = vsyncadd [#allocation4], 4294966272 }
0x28ad   :  { %3999 = vsyncpa [#allocation3], 1 }
0x28ae   :  { %4000 = vsyncpa [#allocation6], 1 }
0x28af   :  { %4001 = vsyncpa [#allocation9], 1 }
0x28b0   :  { %4002 = vsyncpa [#allocation4], 1 }

</bundles_post_ra>
